<compile_context>
chip_gen: v7x
topology: tpu7x:2x2x1
jax: 0.10.0
libtpu: 0.0.40
codegen_flags: <defaults>
</compile_context>

<pallas_src>
import math
import functools

import jax
import jax.numpy as jnp
from jax import lax
from jax.experimental import pallas as pl
from jax.experimental.pallas import tpu as pltpu

VMEM_SPEC = pl.BlockSpec(memory_space=pltpu.MemorySpace.VMEM)
LANE = 128
NEG = -1e30          # finite mask sentinel (avoids NaN on fully-masked rows)


def _ru(n, m=LANE):
    """Round n up to a multiple of m (lane-aligned slab offsets)."""
    return ((n + m - 1) // m) * m


# ----------------------------------------------------------------- the kernel

def _fused_kernel(tok_bl_ref, tok_col_ref, src_ref, pe_ref, emb_ref,
                  wa_ref, wb_ref, vec_ref, out_ref, *,
                  B, S, Lt, E, H, OUT, ML, n_enc, n_dec,
                  output_pdt, use_data_memory, use_tgt_pad):
    f32 = jnp.float32
    DH = E // H

    # ---- static slab readers (must mirror prepare_fused_params order) ------
    _a = [0]

    def next_a(width):                       # (E, width) weight from slab A
        w = wa_ref[:, _a[0]:_a[0] + width]
        _a[0] += _ru(width)
        return w

    _b = [0]

    def next_b(width):                       # (FFN, width) weight from slab B
        w = wb_ref[:, _b[0]:_b[0] + width]
        _b[0] += _ru(width)
        return w

    _v = [0]

    def next_v(width):                       # (1, width) bias / LN vector
        v = vec_ref[_v[0]:_v[0] + 1, 0:width]
        _v[0] += 1
        return v

    # ---- tiny helpers -------------------------------------------------------
    def matmul(a, b):
        return jnp.dot(a, b, preferred_element_type=f32)

    def layer_norm(x, g, b):                 # residual already folded into x
        mean = jnp.mean(x, axis=-1, keepdims=True)
        xc = x - mean
        var = jnp.mean(xc * xc, axis=-1, keepdims=True)
        return xc * lax.rsqrt(var + 1e-5) * g + b

    def mha(q2, kv2, Lq, Lk, add_mask=None, extra_kv0=None):
        """Batched multi-head attention.
           q2:  (B*Lq, E)  pre-projected, pre-scaled queries (batch-major).
           kv2: (B*Lk, 2E) pre-projected [keys || values].
           add_mask: additive f32 mask of shape (1|B, Lq, Lk).
           extra_kv0: optional (1, 2E) key||value of the prepended all-zero
           memory row (= the K/V projection biases); the softmax streams over
           the two chunks, which equals concatenating that row in front of the
           memory (softmax is order invariant)."""
        q3 = q2.reshape(B, Lq, E)
        k3 = kv2[:, 0:E].reshape(B, Lk, E)
        v3 = kv2[:, E:2 * E].reshape(B, Lk, E)
        heads = []
        for h in range(H):                   # H == 1 for this module config
            hs = slice(h * DH, (h + 1) * DH)
            qh, kh, vh = q3[..., hs], k3[..., hs], v3[..., hs]
            s = jnp.einsum('bqd,bkd->bqk', qh, kh,
                           preferred_element_type=f32)        # (B, Lq, Lk)
            if add_mask is not None:
                s = s + add_mask
            m = jnp.max(s, axis=-1, keepdims=True)            # (B, Lq, 1)
            if extra_kv0 is not None:
                k0 = extra_kv0[:, hs]                         # (1, DH)
                v0 = extra_kv0[:, E + h * DH:E + (h + 1) * DH]
                s0 = lax.dot_general(q2[:, hs], k0, (((1,), (1,)), ((), ())),
                                     preferred_element_type=f32)
                s0 = s0.reshape(B, Lq, 1)
                m = jnp.maximum(m, s0)
            p = jnp.exp(s - m)
            denom = jnp.sum(p, axis=-1, keepdims=True)
            num = jnp.einsum('bqk,bkd->bqd', p, vh,
                             preferred_element_type=f32)      # (B, Lq, DH)
            if extra_kv0 is not None:
                p0 = jnp.exp(s0 - m)
                denom = denom + p0
                num = num + p0 * v0
            heads.append(num * pl.reciprocal(denom, approx=False))
        ctx3 = heads[0] if H == 1 else jnp.concatenate(heads, axis=-1)
        return ctx3.reshape(B * Lq, E)

    def encoder_layer(x):
        qkv_w = next_a(3 * E); o_w = next_a(E); lin1_w = next_a(4 * E)
        lin2_w = next_b(E)
        qkv_b = next_v(3 * E); o_b = next_v(E)
        ln1_g = next_v(E); ln1_b = next_v(E)
        lin1_b = next_v(4 * E); lin2_b = next_v(E)
        ln2_g = next_v(E); ln2_b = next_v(E)

        qkv = matmul(x, qkv_w) + qkv_b                        # (B*S, 3E)
        ctx = mha(qkv[:, 0:E], qkv[:, E:3 * E], S, S)
        x = layer_norm(x + matmul(ctx, o_w) + o_b, ln1_g, ln1_b)
        h1 = jnp.maximum(matmul(x, lin1_w) + lin1_b, 0.0)     # relu
        x = layer_norm(x + matmul(h1, lin2_w) + lin2_b, ln2_g, ln2_b)
        return x

    def decoder_layer(x, mem, dec_mask):
        sqkv_w = next_a(3 * E); so_w = next_a(E)
        cq_w = next_a(E); ckv_w = next_a(2 * E); co_w = next_a(E)
        lin1_w = next_a(4 * E)
        lin2_w = next_b(E)
        sqkv_b = next_v(3 * E); so_b = next_v(E)
        ln1_g = next_v(E); ln1_b = next_v(E)
        cq_b = next_v(E); ckv_b = next_v(2 * E); co_b = next_v(E)
        ln2_g = next_v(E); ln2_b = next_v(E)
        lin1_b = next_v(4 * E); lin2_b = next_v(E)
        ln3_g = next_v(E); ln3_b = next_v(E)

        qkv = matmul(x, sqkv_w) + sqkv_b                      # (B*Lt, 3E)
        ctx = mha(qkv[:, 0:E], qkv[:, E:3 * E], Lt, Lt, add_mask=dec_mask)
        x = layer_norm(x + matmul(ctx, so_w) + so_b, ln1_g, ln1_b)

        q = matmul(x, cq_w) + cq_b                            # (B*Lt, E)
        kv = matmul(mem, ckv_w) + ckv_b                       # (B*S, 2E)
        extra = ckv_b if use_data_memory else None            # zero-row K/V
        ctx = mha(q, kv, Lt, S, extra_kv0=extra)
        x = layer_norm(x + matmul(ctx, co_w) + co_b, ln2_g, ln2_b)

        h1 = jnp.maximum(matmul(x, lin1_w) + lin1_b, 0.0)
        x = layer_norm(x + matmul(h1, lin2_w) + lin2_b, ln3_g, ln3_b)
        return x

    # ---- encoder: native (S, B, E) src -> batch-major rows + pos-enc add ----
    pe_enc = pe_ref[0:S, :]                                   # pre-scaled
    rows = [src_ref[:, b, :] + pe_enc for b in range(B)]
    mem = rows[0] if B == 1 else jnp.concatenate(rows, axis=0)   # (B*S, E)
    for _ in range(n_enc):
        mem = encoder_layer(mem)
    enc_g = next_v(E); enc_b = next_v(E)
    mem = layer_norm(mem, enc_g, enc_b)                       # final encoder norm

    # ---- decoder input: one-hot embedding gather (MXU) + pos-enc add --------
    one_hot = (tok_col_ref[...] ==
               lax.broadcasted_iota(jnp.int32, (B * Lt, OUT), 1)).astype(f32)
    x = matmul(one_hot, emb_ref[...])                         # (B*Lt, E)
    pe_dec = pe_ref[ML:ML + Lt, :]                            # pre-scaled
    x = (x.reshape(B, Lt, E) + pe_dec[None]).reshape(B * Lt, E)

    # ---- decoder self-attn mask: built once, additive, finite sentinel ------
    rowi = lax.broadcasted_iota(jnp.int32, (Lt, Lt), 0)
    coli = lax.broadcasted_iota(jnp.int32, (Lt, Lt), 1)
    causal = jnp.where(coli > rowi, f32(NEG), f32(0.0))       # (Lt, Lt)
    if use_tgt_pad:
        parts = []
        for b in range(B):
            prow = jnp.where(tok_bl_ref[b:b + 1, :] == output_pdt,
                             f32(NEG), f32(0.0))              # (1, Lt)
            parts.append(causal + jnp.broadcast_to(prow, (Lt, Lt)))
        dec_mask = jnp.stack(parts, axis=0) if B > 1 else parts[0][None]
    else:
        dec_mask = causal[None]                               # (1, Lt, Lt)

    for _ in range(n_dec):
        x = decoder_layer(x, mem, dec_mask)
    dec_g = next_v(E); dec_b = next_v(E)
    x = layer_norm(x, dec_g, dec_b)                           # final decoder norm

    # ---- fc_out, written directly in the module's (Lt, B, OUT) layout -------
    fc_w = next_a(OUT)
    fc_b = next_v(OUT)
    logits = matmul(x, fc_w) + fc_b                           # (B*Lt, OUT)
    for b in range(B):
        out_ref[:, b, :] = logits[b * Lt:(b + 1) * Lt, :]


# --------------------------------------------------------- parameter packing

def prepare_fused_params(params, nhead):
    """One-time packing into three lane-aligned VMEM slabs:
         wA : every (E, X) weight, columns 128-aligned (Q/K/V and K/V fused);
         wB : every (FFN, X) weight (FFN down-projections);
         vec: every 1-row bias / LayerNorm vector, zero-padded rows.
       1/sqrt(head_dim) is folded into the Q projections and the
       PositionalEncoding scales into the PE tables."""
    E = params['fc_out']['w'].shape[0]
    scale = 1.0 / math.sqrt(E // nhead)

    a_blocks, b_blocks, vecs = [], [], []

    def add_a(w):
        a_blocks.append(jnp.pad(w, ((0, 0), (0, _ru(w.shape[1]) - w.shape[1]))))

    def add_b(w):
        b_blocks.append(jnp.pad(w, ((0, 0), (0, _ru(w.shape[1]) - w.shape[1]))))

    def add_v(v):
        vecs.append(v)

    for lp in params['enc_layers']:
        sa = lp['self_attn']
        add_a(jnp.concatenate([sa['q']['w'] * scale, sa['k']['w'], sa['v']['w']],
                              axis=1))
        add_a(sa['o']['w'])
        add_a(lp['lin1']['w'])
        add_b(lp['lin2']['w'])
        add_v(jnp.concatenate([sa['q']['b'] * scale, sa['k']['b'], sa['v']['b']]))
        add_v(sa['o']['b'])
        add_v(lp['norm1']['g']); add_v(lp['norm1']['b'])
        add_v(lp['lin1']['b']); add_v(lp['lin2']['b'])
        add_v(lp['norm2']['g']); add_v(lp['norm2']['b'])
    add_v(params['enc_norm']['g']); add_v(params['enc_norm']['b'])

    for lp in params['dec_layers']:
        sa, ca = lp['self_attn'], lp['cross_attn']
        add_a(jnp.concatenate([sa['q']['w'] * scale, sa['k']['w'], sa['v']['w']],
                              axis=1))
        add_a(sa['o']['w'])
        add_a(ca['q']['w'] * scale)
        add_a(jnp.concatenate([ca['k']['w'], ca['v']['w']], axis=1))
        add_a(ca['o']['w'])
        add_a(lp['lin1']['w'])
        add_b(lp['lin2']['w'])
        add_v(jnp.concatenate([sa['q']['b'] * scale, sa['k']['b'], sa['v']['b']]))
        add_v(sa['o']['b'])
        add_v(lp['norm1']['g']); add_v(lp['norm1']['b'])
        add_v(ca['q']['b'] * scale)
        add_v(jnp.concatenate([ca['k']['b'], ca['v']['b']]))
        add_v(ca['o']['b'])
        add_v(lp['norm2']['g']); add_v(lp['norm2']['b'])
        add_v(lp['lin1']['b']); add_v(lp['lin2']['b'])
        add_v(lp['norm3']['g']); add_v(lp['norm3']['b'])
    add_v(params['dec_norm']['g']); add_v(params['dec_norm']['b'])

    add_a(params['fc_out']['w'])
    add_v(params['fc_out']['b'])

    vw = _ru(max(v.shape[0] for v in vecs))
    vec_slab = jnp.stack([jnp.pad(v, (0, vw - v.shape[0])) for v in vecs])

    pe_enc = params['pe_enc'][:, 0, :] * params['pos_enc_scale'][0]
    pe_dec = params['pe_dec'][:, 0, :] * params['pos_dec_scale'][0]

    return {
        'wA': jnp.concatenate(a_blocks, axis=1),               # (E, NA)
        'wB': jnp.concatenate(b_blocks, axis=1),               # (FFN, NB)
        'vec': vec_slab,                                       # (NV, 128)
        'emb': params['decoder_emb'],                          # (OUT, E)
        'pe': jnp.concatenate([pe_enc, pe_dec], axis=0),       # (2*max_len, E)
    }


# -------------------------------------------------------------- host wrapper

def transformer_forward_fused(fused, src, tgt_tokens, *, nhead, n_enc, n_dec,
                              out_dim, output_pdt, use_data_memory):
    S, B, E = src.shape
    Lt = tgt_tokens.shape[0]
    ML = fused['pe'].shape[0] // 2

    # Only host-side prep left: two tiny integer ops on the (Lt, B) token
    # matrix (fuse into one fusion under jit).  src and the output stay in the
    # module's native (seq, batch, .) layouts.
    tok_bl = jnp.transpose(tgt_tokens).astype(jnp.int32)       # (B, Lt)
    tok_col = tok_bl.reshape(B * Lt, 1)                        # (B*Lt, 1)

    inputs = (tok_bl, tok_col, src, fused['pe'], fused['emb'],
              fused['wA'], fused['wB'], fused['vec'])

    # All-resident, grid-less design.  Guard the VMEM budget (v7x: 64 MiB).
    # TODO(synk): tile over rows / vocab with a real grid + scalar-prefetch
    # embedding gather if batch, sequence length or out_dim leave the toy
    # all-resident regime.
    vmem_bytes = sum(a.size * a.dtype.itemsize for a in inputs)
    assert vmem_bytes < 32 * 1024 * 1024, "fused all-resident kernel too large"

    kernel = functools.partial(
        _fused_kernel, B=B, S=S, Lt=Lt, E=E, H=nhead, OUT=out_dim, ML=ML,
        n_enc=n_enc, n_dec=n_dec, output_pdt=output_pdt,
        use_data_memory=use_data_memory,
        use_tgt_pad=bool(output_pdt))   # reference only masks if output_pdt truthy

    return pl.pallas_call(
        kernel,
        out_shape=jax.ShapeDtypeStruct((Lt, B, out_dim), jnp.float32),
        in_specs=[VMEM_SPEC] * len(inputs),
        out_specs=VMEM_SPEC,
    )(*inputs)


# ---------------------------------------------------------------- parameters

def positional_encoding_table(d_model, max_len):
    position = jnp.arange(max_len, dtype=jnp.float32)[:, None]
    div_term = jnp.exp(jnp.arange(0, d_model, 2, dtype=jnp.float32)
                       * (-math.log(10000.0) / d_model))
    pe = jnp.zeros((max_len, d_model), jnp.float32)
    pe = pe.at[:, 0::2].set(jnp.sin(position * div_term))
    if d_model % 2 == 1:
        pe = pe.at[:, 1::2].set(jnp.cos(position * div_term[:-1]))
    else:
        pe = pe.at[:, 1::2].set(jnp.cos(position * div_term))
    return pe[:, None, :]   # (max_len, 1, d_model)


def _dense(key, din, dout):
    return {'w': 0.02 * jax.random.normal(key, (din, dout), jnp.float32),
            'b': jnp.zeros((dout,), jnp.float32)}


def _mha_params(key, e):
    ks = jax.random.split(key, 4)
    return {'q': _dense(ks[0], e, e), 'k': _dense(ks[1], e, e),
            'v': _dense(ks[2], e, e), 'o': _dense(ks[3], e, e)}


def _ln_params(e):
    return {'g': jnp.ones((e,), jnp.float32), 'b': jnp.zeros((e,), jnp.float32)}


def _enc_layer_params(key, e, ffn):
    ks = jax.random.split(key, 3)
    return {'self_attn': _mha_params(ks[0], e),
            'lin1': _dense(ks[1], e, ffn), 'lin2': _dense(ks[2], ffn, e),
            'norm1': _ln_params(e), 'norm2': _ln_params(e)}


def _dec_layer_params(key, e, ffn):
    ks = jax.random.split(key, 4)
    return {'self_attn': _mha_params(ks[0], e), 'cross_attn': _mha_params(ks[1], e),
            'lin1': _dense(ks[2], e, ffn), 'lin2': _dense(ks[3], ffn, e),
            'norm1': _ln_params(e), 'norm2': _ln_params(e), 'norm3': _ln_params(e)}


def init_params(key, *, in_dim, out_dim, hidden, enc_layers, dec_layers, ffn, max_len):
    keys = jax.random.split(key, 2 + enc_layers + dec_layers)
    params = {}
    params['decoder_emb'] = 0.02 * jax.random.normal(keys[0], (out_dim, hidden),
                                                     jnp.float32)
    params['pos_enc_scale'] = jnp.ones((1,), jnp.float32)   # PositionalEncoding.scale
    params['pos_dec_scale'] = jnp.ones((1,), jnp.float32)
    params['pe_enc'] = positional_encoding_table(in_dim, max_len)
    params['pe_dec'] = positional_encoding_table(hidden, max_len)
    params['enc_layers'] = [_enc_layer_params(keys[1 + i], hidden, ffn)
                            for i in range(enc_layers)]
    params['dec_layers'] = [_dec_layer_params(keys[1 + enc_layers + i], hidden, ffn)
                            for i in range(dec_layers)]
    params['enc_norm'] = _ln_params(hidden)
    params['dec_norm'] = _ln_params(hidden)
    params['fc_out'] = _dense(keys[1 + enc_layers + dec_layers], hidden, out_dim)
    return params


# --------------------------------------------------------------------- main

if __name__ == "__main__":
    IN_DIM = 32                  # input_already_encoded=True -> hidden := in_dim
    HIDDEN = IN_DIM
    OUT_DIM = 10
    ENC_LAYERS = 3
    DEC_LAYERS = 1
    NHEAD = int(math.ceil(HIDDEN / 64))
    if HIDDEN % NHEAD != 0:
        NHEAD = 1
    FFN = HIDDEN * 4
    MAX_LEN = 1024
    OUTPUT_PDT = 1               # truthy -> reference builds the key-padding mask

    SRC_LEN, TGT_LEN, BATCH = 8, 8, 2

    root = jax.random.PRNGKey(0)
    k_par, k_src, k_tgt, k_data = jax.random.split(root, 4)
    params = init_params(k_par, in_dim=IN_DIM, out_dim=OUT_DIM, hidden=HIDDEN,
                         enc_layers=ENC_LAYERS, dec_layers=DEC_LAYERS,
                         ffn=FFN, max_len=MAX_LEN)
    fused = prepare_fused_params(params, NHEAD)

    src = jax.random.normal(k_src, (SRC_LEN, BATCH, IN_DIM), jnp.float32)
    tgt = jax.random.randint(k_tgt, (TGT_LEN, BATCH), 2, OUT_DIM, dtype=jnp.int32)
    tgt = tgt.at[3, 1].set(OUTPUT_PDT)      # one pad token -> exercises the pad mask
    data_src = jax.random.normal(k_data, (BATCH, 16, 2), jnp.float32)  # non-empty

    # data_src non-empty & has_encoder=False -> zero data_memory row prepended
    # to the encoder memory (handled analytically inside the cross attention).
    # TODO(synk): SetEncoder (has_encoder=True) is not defined in the reference
    # source; only the has_encoder=False zero-row path is implemented.
    use_dm = (data_src is not None) and (data_src.size != 0)

    fwd = jax.jit(functools.partial(
        transformer_forward_fused, nhead=NHEAD, n_enc=ENC_LAYERS,
        n_dec=DEC_LAYERS, out_dim=OUT_DIM, output_pdt=OUTPUT_PDT,
        use_data_memory=use_dm))
    out = fwd(fused, src, tgt)
    jax.block_until_ready(out)

    assert out.shape == (TGT_LEN, BATCH, OUT_DIM), out.shape
    assert not bool(jnp.isnan(out).any())
    print("KERNEL_OK")
</pallas_src>

<mosaic_0001>
module attributes {stable_mosaic.version = 11 : i64} {
  func.func @_fused_kernel(%arg0: memref<2x8xi32, #tpu.memory_space<vmem>>, %arg1: memref<16x1xi32, #tpu.memory_space<vmem>>, %arg2: memref<8x2x32xf32, #tpu.memory_space<vmem>>, %arg3: memref<2048x32xf32, #tpu.memory_space<vmem>>, %arg4: memref<10x32xf32, #tpu.memory_space<vmem>>, %arg5: memref<32x2048xf32, #tpu.memory_space<vmem>>, %arg6: memref<128x512xf32, #tpu.memory_space<vmem>>, %arg7: memref<42x128xf32, #tpu.memory_space<vmem>>, %arg8: memref<8x2x10xf32, #tpu.memory_space<vmem>>) attributes {dimension_semantics = [], scalar_prefetch = 0 : i64, scratch_operands = 0 : i64, tpu.core_type = #tpu.core_type<tc>} {
    %c0 = arith.constant 0 : index
    %c0_0 = arith.constant 0 : index
    %0 = vector.load %arg3[%c0, %c0_0] : memref<2048x32xf32, #tpu.memory_space<vmem>>, vector<8x32xf32>
    %c0_1 = arith.constant 0 : index
    %c0_2 = arith.constant 0 : index
    %c0_3 = arith.constant 0 : index
    %1 = vector.load %arg2[%c0_1, %c0_2, %c0_3] : memref<8x2x32xf32, #tpu.memory_space<vmem>>, vector<8x1x32xf32>
    %2 = vector.shape_cast %1 : vector<8x1x32xf32> to vector<8x32xf32>
    %3 = arith.addf %2, %0 : vector<8x32xf32>
    %c0_4 = arith.constant 0 : index
    %c1 = arith.constant 1 : index
    %c0_5 = arith.constant 0 : index
    %4 = vector.load %arg2[%c0_4, %c1, %c0_5] : memref<8x2x32xf32, #tpu.memory_space<vmem>>, vector<8x1x32xf32>
    %5 = vector.shape_cast %4 : vector<8x1x32xf32> to vector<8x32xf32>
    %6 = arith.addf %5, %0 : vector<8x32xf32>
    %7 = tpu.concatenate %3, %6 in 0 : vector<8x32xf32>, vector<8x32xf32> -> vector<16x32xf32>
    %c0_6 = arith.constant 0 : index
    %c0_7 = arith.constant 0 : index
    %8 = vector.load %arg5[%c0_6, %c0_7] : memref<32x2048xf32, #tpu.memory_space<vmem>>, vector<32x96xf32>
    %c0_8 = arith.constant 0 : index
    %c128 = arith.constant 128 : index
    %9 = vector.load %arg5[%c0_8, %c128] : memref<32x2048xf32, #tpu.memory_space<vmem>>, vector<32x32xf32>
    %c0_9 = arith.constant 0 : index
    %c256 = arith.constant 256 : index
    %10 = vector.load %arg5[%c0_9, %c256] : memref<32x2048xf32, #tpu.memory_space<vmem>>, vector<32x128xf32>
    %c0_10 = arith.constant 0 : index
    %c0_11 = arith.constant 0 : index
    %11 = vector.load %arg6[%c0_10, %c0_11] : memref<128x512xf32, #tpu.memory_space<vmem>>, vector<128x32xf32>
    %c0_12 = arith.constant 0 : index
    %c0_13 = arith.constant 0 : index
    %12 = vector.load %arg7[%c0_12, %c0_13] : memref<42x128xf32, #tpu.memory_space<vmem>>, vector<1x96xf32>
    %c1_14 = arith.constant 1 : index
    %c0_15 = arith.constant 0 : index
    %13 = vector.load %arg7[%c1_14, %c0_15] : memref<42x128xf32, #tpu.memory_space<vmem>>, vector<1x32xf32>
    %c2 = arith.constant 2 : index
    %c0_16 = arith.constant 0 : index
    %14 = vector.load %arg7[%c2, %c0_16] : memref<42x128xf32, #tpu.memory_space<vmem>>, vector<1x32xf32>
    %c3 = arith.constant 3 : index
    %c0_17 = arith.constant 0 : index
    %15 = vector.load %arg7[%c3, %c0_17] : memref<42x128xf32, #tpu.memory_space<vmem>>, vector<1x32xf32>
    %c4 = arith.constant 4 : index
    %c0_18 = arith.constant 0 : index
    %16 = vector.load %arg7[%c4, %c0_18] : memref<42x128xf32, #tpu.memory_space<vmem>>, vector<1x128xf32>
    %c5 = arith.constant 5 : index
    %c0_19 = arith.constant 0 : index
    %17 = vector.load %arg7[%c5, %c0_19] : memref<42x128xf32, #tpu.memory_space<vmem>>, vector<1x32xf32>
    %c6 = arith.constant 6 : index
    %c0_20 = arith.constant 0 : index
    %18 = vector.load %arg7[%c6, %c0_20] : memref<42x128xf32, #tpu.memory_space<vmem>>, vector<1x32xf32>
    %c7 = arith.constant 7 : index
    %c0_21 = arith.constant 0 : index
    %19 = vector.load %arg7[%c7, %c0_21] : memref<42x128xf32, #tpu.memory_space<vmem>>, vector<1x32xf32>
    %cst = arith.constant dense<0.000000e+00> : vector<16x96xf32>
    %20 = tpu.matmul %7, %8, %cst {dimension_numbers = #tpu.dot_dimension_numbers<[1], [0], [0], [1], [0, 0, 1, 1], [], []>} : vector<16x32xf32>, vector<32x96xf32>, vector<16x96xf32> -> vector<16x96xf32>
    %21 = vector.broadcast %12 : vector<1x96xf32> to vector<16x96xf32>
    %22 = arith.addf %20, %21 : vector<16x96xf32>
    %23 = vector.extract_strided_slice %22 {offsets = [0, 0], sizes = [16, 32], strides = [1, 1]} : vector<16x96xf32> to vector<16x32xf32>
    %24 = vector.extract_strided_slice %22 {offsets = [0, 32], sizes = [16, 64], strides = [1, 1]} : vector<16x96xf32> to vector<16x64xf32>
    %25 = vector.shape_cast %23 : vector<16x32xf32> to vector<2x8x32xf32>
    %26 = vector.extract_strided_slice %24 {offsets = [0, 0], sizes = [16, 32], strides = [1, 1]} : vector<16x64xf32> to vector<16x32xf32>
    %27 = vector.shape_cast %26 : vector<16x32xf32> to vector<2x8x32xf32>
    %28 = vector.extract_strided_slice %24 {offsets = [0, 32], sizes = [16, 32], strides = [1, 1]} : vector<16x64xf32> to vector<16x32xf32>
    %29 = vector.shape_cast %28 : vector<16x32xf32> to vector<2x8x32xf32>
    "tpu.trace_start"() <{level = 10 : i32, message = "bqd,bkd->bqk"}> : () -> ()
    %cst_22 = arith.constant dense<0.000000e+00> : vector<2x8x8xf32>
    %30 = tpu.matmul %25, %27, %cst_22 {dimension_numbers = #tpu.dot_dimension_numbers<[2], [2], [1], [1], [0, 0, 0, 1, 1, 1], [0], [0]>} : vector<2x8x32xf32>, vector<2x8x32xf32>, vector<2x8x8xf32> -> vector<2x8x8xf32>
    "tpu.trace_stop"() : () -> ()
    %cst_23 = arith.constant dense<0xFF800000> : vector<2x8xf32>
    %31 = vector.multi_reduction <maximumf>, %30, %cst_23 [2] : vector<2x8x8xf32> to vector<2x8xf32>
    %32 = vector.shape_cast %31 : vector<2x8xf32> to vector<2x8x1xf32>
    %33 = vector.broadcast %32 : vector<2x8x1xf32> to vector<2x8x8xf32>
    %34 = arith.subf %30, %33 : vector<2x8x8xf32>
    %35 = math.exp %34 : vector<2x8x8xf32>
    %cst_24 = arith.constant dense<0.000000e+00> : vector<2x8xf32>
    %36 = vector.multi_reduction <add>, %35, %cst_24 [2] : vector<2x8x8xf32> to vector<2x8xf32>
    %37 = vector.shape_cast %36 : vector<2x8xf32> to vector<2x8x1xf32>
    "tpu.trace_start"() <{level = 10 : i32, message = "bqk,bkd->bqd"}> : () -> ()
    %cst_25 = arith.constant dense<0.000000e+00> : vector<2x8x32xf32>
    %38 = tpu.matmul %35, %29, %cst_25 {dimension_numbers = #tpu.dot_dimension_numbers<[2], [1], [1], [2], [0, 0, 0, 1, 1, 2], [0], [0]>} : vector<2x8x8xf32>, vector<2x8x32xf32>, vector<2x8x32xf32> -> vector<2x8x32xf32>
    "tpu.trace_stop"() : () -> ()
    %39 = tpu.reciprocal %37 : vector<2x8x1xf32> -> vector<2x8x1xf32>
    %40 = vector.broadcast %39 : vector<2x8x1xf32> to vector<2x8x32xf32>
    %41 = arith.mulf %38, %40 : vector<2x8x32xf32>
    %42 = vector.shape_cast %41 : vector<2x8x32xf32> to vector<16x32xf32>
    %cst_26 = arith.constant dense<0.000000e+00> : vector<16x32xf32>
    %43 = tpu.matmul %42, %9, %cst_26 {dimension_numbers = #tpu.dot_dimension_numbers<[1], [0], [0], [1], [0, 0, 1, 1], [], []>} : vector<16x32xf32>, vector<32x32xf32>, vector<16x32xf32> -> vector<16x32xf32>
    %44 = arith.addf %7, %43 : vector<16x32xf32>
    %45 = vector.broadcast %13 : vector<1x32xf32> to vector<16x32xf32>
    %46 = arith.addf %44, %45 : vector<16x32xf32>
    %cst_27 = arith.constant dense<0.000000e+00> : vector<16xf32>
    %47 = vector.multi_reduction <add>, %46, %cst_27 [1] : vector<16x32xf32> to vector<16xf32>
    %48 = vector.shape_cast %47 : vector<16xf32> to vector<16x1xf32>
    %cst_28 = arith.constant 3.200000e+01 : f32
    %49 = vector.broadcast %cst_28 : f32 to vector<16x1xf32>
    %50 = arith.divf %48, %49 : vector<16x1xf32>
    %51 = vector.broadcast %50 : vector<16x1xf32> to vector<16x32xf32>
    %52 = arith.subf %46, %51 : vector<16x32xf32>
    %53 = arith.mulf %52, %52 : vector<16x32xf32>
    %cst_29 = arith.constant dense<0.000000e+00> : vector<16xf32>
    %54 = vector.multi_reduction <add>, %53, %cst_29 [1] : vector<16x32xf32> to vector<16xf32>
    %55 = vector.shape_cast %54 : vector<16xf32> to vector<16x1xf32>
    %cst_30 = arith.constant 3.200000e+01 : f32
    %56 = vector.broadcast %cst_30 : f32 to vector<16x1xf32>
    %57 = arith.divf %55, %56 : vector<16x1xf32>
    %cst_31 = arith.constant 9.99999974E-6 : f32
    %58 = vector.broadcast %cst_31 : f32 to vector<16x1xf32>
    %59 = arith.addf %57, %58 : vector<16x1xf32>
    %60 = math.rsqrt %59 : vector<16x1xf32>
    %61 = vector.broadcast %60 : vector<16x1xf32> to vector<16x32xf32>
    %62 = arith.mulf %52, %61 : vector<16x32xf32>
    %63 = vector.broadcast %14 : vector<1x32xf32> to vector<16x32xf32>
    %64 = arith.mulf %62, %63 : vector<16x32xf32>
    %65 = vector.broadcast %15 : vector<1x32xf32> to vector<16x32xf32>
    %66 = arith.addf %64, %65 : vector<16x32xf32>
    %cst_32 = arith.constant dense<0.000000e+00> : vector<16x128xf32>
    %67 = tpu.matmul %66, %10, %cst_32 {dimension_numbers = #tpu.dot_dimension_numbers<[1], [0], [0], [1], [0, 0, 1, 1], [], []>} : vector<16x32xf32>, vector<32x128xf32>, vector<16x128xf32> -> vector<16x128xf32>
    %68 = vector.broadcast %16 : vector<1x128xf32> to vector<16x128xf32>
    %69 = arith.addf %67, %68 : vector<16x128xf32>
    %cst_33 = arith.constant 0.000000e+00 : f32
    %70 = vector.broadcast %cst_33 : f32 to vector<16x128xf32>
    %71 = arith.maximumf %69, %70 : vector<16x128xf32>
    %cst_34 = arith.constant dense<0.000000e+00> : vector<16x32xf32>
    %72 = tpu.matmul %71, %11, %cst_34 {dimension_numbers = #tpu.dot_dimension_numbers<[1], [0], [0], [1], [0, 0, 1, 1], [], []>} : vector<16x128xf32>, vector<128x32xf32>, vector<16x32xf32> -> vector<16x32xf32>
    %73 = arith.addf %66, %72 : vector<16x32xf32>
    %74 = vector.broadcast %17 : vector<1x32xf32> to vector<16x32xf32>
    %75 = arith.addf %73, %74 : vector<16x32xf32>
    %cst_35 = arith.constant dense<0.000000e+00> : vector<16xf32>
    %76 = vector.multi_reduction <add>, %75, %cst_35 [1] : vector<16x32xf32> to vector<16xf32>
    %77 = vector.shape_cast %76 : vector<16xf32> to vector<16x1xf32>
    %cst_36 = arith.constant 3.200000e+01 : f32
    %78 = vector.broadcast %cst_36 : f32 to vector<16x1xf32>
    %79 = arith.divf %77, %78 : vector<16x1xf32>
    %80 = vector.broadcast %79 : vector<16x1xf32> to vector<16x32xf32>
    %81 = arith.subf %75, %80 : vector<16x32xf32>
    %82 = arith.mulf %81, %81 : vector<16x32xf32>
    %cst_37 = arith.constant dense<0.000000e+00> : vector<16xf32>
    %83 = vector.multi_reduction <add>, %82, %cst_37 [1] : vector<16x32xf32> to vector<16xf32>
    %84 = vector.shape_cast %83 : vector<16xf32> to vector<16x1xf32>
    %cst_38 = arith.constant 3.200000e+01 : f32
    %85 = vector.broadcast %cst_38 : f32 to vector<16x1xf32>
    %86 = arith.divf %84, %85 : vector<16x1xf32>
    %cst_39 = arith.constant 9.99999974E-6 : f32
    %87 = vector.broadcast %cst_39 : f32 to vector<16x1xf32>
    %88 = arith.addf %86, %87 : vector<16x1xf32>
    %89 = math.rsqrt %88 : vector<16x1xf32>
    %90 = vector.broadcast %89 : vector<16x1xf32> to vector<16x32xf32>
    %91 = arith.mulf %81, %90 : vector<16x32xf32>
    %92 = vector.broadcast %18 : vector<1x32xf32> to vector<16x32xf32>
    %93 = arith.mulf %91, %92 : vector<16x32xf32>
    %94 = vector.broadcast %19 : vector<1x32xf32> to vector<16x32xf32>
    %95 = arith.addf %93, %94 : vector<16x32xf32>
    %c0_40 = arith.constant 0 : index
    %c384 = arith.constant 384 : index
    %96 = vector.load %arg5[%c0_40, %c384] : memref<32x2048xf32, #tpu.memory_space<vmem>>, vector<32x96xf32>
    %c0_41 = arith.constant 0 : index
    %c512 = arith.constant 512 : index
    %97 = vector.load %arg5[%c0_41, %c512] : memref<32x2048xf32, #tpu.memory_space<vmem>>, vector<32x32xf32>
    %c0_42 = arith.constant 0 : index
    %c640 = arith.constant 640 : index
    %98 = vector.load %arg5[%c0_42, %c640] : memref<32x2048xf32, #tpu.memory_space<vmem>>, vector<32x128xf32>
    %c0_43 = arith.constant 0 : index
    %c128_44 = arith.constant 128 : index
    %99 = vector.load %arg6[%c0_43, %c128_44] : memref<128x512xf32, #tpu.memory_space<vmem>>, vector<128x32xf32>
    %c8 = arith.constant 8 : index
    %c0_45 = arith.constant 0 : index
    %100 = vector.load %arg7[%c8, %c0_45] : memref<42x128xf32, #tpu.memory_space<vmem>>, vector<1x96xf32>
    %c9 = arith.constant 9 : index
    %c0_46 = arith.constant 0 : index
    %101 = vector.load %arg7[%c9, %c0_46] : memref<42x128xf32, #tpu.memory_space<vmem>>, vector<1x32xf32>
    %c10 = arith.constant 10 : index
    %c0_47 = arith.constant 0 : index
    %102 = vector.load %arg7[%c10, %c0_47] : memref<42x128xf32, #tpu.memory_space<vmem>>, vector<1x32xf32>
    %c11 = arith.constant 11 : index
    %c0_48 = arith.constant 0 : index
    %103 = vector.load %arg7[%c11, %c0_48] : memref<42x128xf32, #tpu.memory_space<vmem>>, vector<1x32xf32>
    %c12 = arith.constant 12 : index
    %c0_49 = arith.constant 0 : index
    %104 = vector.load %arg7[%c12, %c0_49] : memref<42x128xf32, #tpu.memory_space<vmem>>, vector<1x128xf32>
    %c13 = arith.constant 13 : index
    %c0_50 = arith.constant 0 : index
    %105 = vector.load %arg7[%c13, %c0_50] : memref<42x128xf32, #tpu.memory_space<vmem>>, vector<1x32xf32>
    %c14 = arith.constant 14 : index
    %c0_51 = arith.constant 0 : index
    %106 = vector.load %arg7[%c14, %c0_51] : memref<42x128xf32, #tpu.memory_space<vmem>>, vector<1x32xf32>
    %c15 = arith.constant 15 : index
    %c0_52 = arith.constant 0 : index
    %107 = vector.load %arg7[%c15, %c0_52] : memref<42x128xf32, #tpu.memory_space<vmem>>, vector<1x32xf32>
    %cst_53 = arith.constant dense<0.000000e+00> : vector<16x96xf32>
    %108 = tpu.matmul %95, %96, %cst_53 {dimension_numbers = #tpu.dot_dimension_numbers<[1], [0], [0], [1], [0, 0, 1, 1], [], []>} : vector<16x32xf32>, vector<32x96xf32>, vector<16x96xf32> -> vector<16x96xf32>
    %109 = vector.broadcast %100 : vector<1x96xf32> to vector<16x96xf32>
    %110 = arith.addf %108, %109 : vector<16x96xf32>
    %111 = vector.extract_strided_slice %110 {offsets = [0, 0], sizes = [16, 32], strides = [1, 1]} : vector<16x96xf32> to vector<16x32xf32>
    %112 = vector.extract_strided_slice %110 {offsets = [0, 32], sizes = [16, 64], strides = [1, 1]} : vector<16x96xf32> to vector<16x64xf32>
    %113 = vector.shape_cast %111 : vector<16x32xf32> to vector<2x8x32xf32>
    %114 = vector.extract_strided_slice %112 {offsets = [0, 0], sizes = [16, 32], strides = [1, 1]} : vector<16x64xf32> to vector<16x32xf32>
    %115 = vector.shape_cast %114 : vector<16x32xf32> to vector<2x8x32xf32>
    %116 = vector.extract_strided_slice %112 {offsets = [0, 32], sizes = [16, 32], strides = [1, 1]} : vector<16x64xf32> to vector<16x32xf32>
    %117 = vector.shape_cast %116 : vector<16x32xf32> to vector<2x8x32xf32>
    "tpu.trace_start"() <{level = 10 : i32, message = "bqd,bkd->bqk"}> : () -> ()
    %cst_54 = arith.constant dense<0.000000e+00> : vector<2x8x8xf32>
    %118 = tpu.matmul %113, %115, %cst_54 {dimension_numbers = #tpu.dot_dimension_numbers<[2], [2], [1], [1], [0, 0, 0, 1, 1, 1], [0], [0]>} : vector<2x8x32xf32>, vector<2x8x32xf32>, vector<2x8x8xf32> -> vector<2x8x8xf32>
    "tpu.trace_stop"() : () -> ()
    %cst_55 = arith.constant dense<0xFF800000> : vector<2x8xf32>
    %119 = vector.multi_reduction <maximumf>, %118, %cst_55 [2] : vector<2x8x8xf32> to vector<2x8xf32>
    %120 = vector.shape_cast %119 : vector<2x8xf32> to vector<2x8x1xf32>
    %121 = vector.broadcast %120 : vector<2x8x1xf32> to vector<2x8x8xf32>
    %122 = arith.subf %118, %121 : vector<2x8x8xf32>
    %123 = math.exp %122 : vector<2x8x8xf32>
    %cst_56 = arith.constant dense<0.000000e+00> : vector<2x8xf32>
    %124 = vector.multi_reduction <add>, %123, %cst_56 [2] : vector<2x8x8xf32> to vector<2x8xf32>
    %125 = vector.shape_cast %124 : vector<2x8xf32> to vector<2x8x1xf32>
    "tpu.trace_start"() <{level = 10 : i32, message = "bqk,bkd->bqd"}> : () -> ()
    %cst_57 = arith.constant dense<0.000000e+00> : vector<2x8x32xf32>
    %126 = tpu.matmul %123, %117, %cst_57 {dimension_numbers = #tpu.dot_dimension_numbers<[2], [1], [1], [2], [0, 0, 0, 1, 1, 2], [0], [0]>} : vector<2x8x8xf32>, vector<2x8x32xf32>, vector<2x8x32xf32> -> vector<2x8x32xf32>
    "tpu.trace_stop"() : () -> ()
    %127 = tpu.reciprocal %125 : vector<2x8x1xf32> -> vector<2x8x1xf32>
    %128 = vector.broadcast %127 : vector<2x8x1xf32> to vector<2x8x32xf32>
    %129 = arith.mulf %126, %128 : vector<2x8x32xf32>
    %130 = vector.shape_cast %129 : vector<2x8x32xf32> to vector<16x32xf32>
    %cst_58 = arith.constant dense<0.000000e+00> : vector<16x32xf32>
    %131 = tpu.matmul %130, %97, %cst_58 {dimension_numbers = #tpu.dot_dimension_numbers<[1], [0], [0], [1], [0, 0, 1, 1], [], []>} : vector<16x32xf32>, vector<32x32xf32>, vector<16x32xf32> -> vector<16x32xf32>
    %132 = arith.addf %95, %131 : vector<16x32xf32>
    %133 = vector.broadcast %101 : vector<1x32xf32> to vector<16x32xf32>
    %134 = arith.addf %132, %133 : vector<16x32xf32>
    %cst_59 = arith.constant dense<0.000000e+00> : vector<16xf32>
    %135 = vector.multi_reduction <add>, %134, %cst_59 [1] : vector<16x32xf32> to vector<16xf32>
    %136 = vector.shape_cast %135 : vector<16xf32> to vector<16x1xf32>
    %cst_60 = arith.constant 3.200000e+01 : f32
    %137 = vector.broadcast %cst_60 : f32 to vector<16x1xf32>
    %138 = arith.divf %136, %137 : vector<16x1xf32>
    %139 = vector.broadcast %138 : vector<16x1xf32> to vector<16x32xf32>
    %140 = arith.subf %134, %139 : vector<16x32xf32>
    %141 = arith.mulf %140, %140 : vector<16x32xf32>
    %cst_61 = arith.constant dense<0.000000e+00> : vector<16xf32>
    %142 = vector.multi_reduction <add>, %141, %cst_61 [1] : vector<16x32xf32> to vector<16xf32>
    %143 = vector.shape_cast %142 : vector<16xf32> to vector<16x1xf32>
    %cst_62 = arith.constant 3.200000e+01 : f32
    %144 = vector.broadcast %cst_62 : f32 to vector<16x1xf32>
    %145 = arith.divf %143, %144 : vector<16x1xf32>
    %cst_63 = arith.constant 9.99999974E-6 : f32
    %146 = vector.broadcast %cst_63 : f32 to vector<16x1xf32>
    %147 = arith.addf %145, %146 : vector<16x1xf32>
    %148 = math.rsqrt %147 : vector<16x1xf32>
    %149 = vector.broadcast %148 : vector<16x1xf32> to vector<16x32xf32>
    %150 = arith.mulf %140, %149 : vector<16x32xf32>
    %151 = vector.broadcast %102 : vector<1x32xf32> to vector<16x32xf32>
    %152 = arith.mulf %150, %151 : vector<16x32xf32>
    %153 = vector.broadcast %103 : vector<1x32xf32> to vector<16x32xf32>
    %154 = arith.addf %152, %153 : vector<16x32xf32>
    %cst_64 = arith.constant dense<0.000000e+00> : vector<16x128xf32>
    %155 = tpu.matmul %154, %98, %cst_64 {dimension_numbers = #tpu.dot_dimension_numbers<[1], [0], [0], [1], [0, 0, 1, 1], [], []>} : vector<16x32xf32>, vector<32x128xf32>, vector<16x128xf32> -> vector<16x128xf32>
    %156 = vector.broadcast %104 : vector<1x128xf32> to vector<16x128xf32>
    %157 = arith.addf %155, %156 : vector<16x128xf32>
    %cst_65 = arith.constant 0.000000e+00 : f32
    %158 = vector.broadcast %cst_65 : f32 to vector<16x128xf32>
    %159 = arith.maximumf %157, %158 : vector<16x128xf32>
    %cst_66 = arith.constant dense<0.000000e+00> : vector<16x32xf32>
    %160 = tpu.matmul %159, %99, %cst_66 {dimension_numbers = #tpu.dot_dimension_numbers<[1], [0], [0], [1], [0, 0, 1, 1], [], []>} : vector<16x128xf32>, vector<128x32xf32>, vector<16x32xf32> -> vector<16x32xf32>
    %161 = arith.addf %154, %160 : vector<16x32xf32>
    %162 = vector.broadcast %105 : vector<1x32xf32> to vector<16x32xf32>
    %163 = arith.addf %161, %162 : vector<16x32xf32>
    %cst_67 = arith.constant dense<0.000000e+00> : vector<16xf32>
    %164 = vector.multi_reduction <add>, %163, %cst_67 [1] : vector<16x32xf32> to vector<16xf32>
    %165 = vector.shape_cast %164 : vector<16xf32> to vector<16x1xf32>
    %cst_68 = arith.constant 3.200000e+01 : f32
    %166 = vector.broadcast %cst_68 : f32 to vector<16x1xf32>
    %167 = arith.divf %165, %166 : vector<16x1xf32>
    %168 = vector.broadcast %167 : vector<16x1xf32> to vector<16x32xf32>
    %169 = arith.subf %163, %168 : vector<16x32xf32>
    %170 = arith.mulf %169, %169 : vector<16x32xf32>
    %cst_69 = arith.constant dense<0.000000e+00> : vector<16xf32>
    %171 = vector.multi_reduction <add>, %170, %cst_69 [1] : vector<16x32xf32> to vector<16xf32>
    %172 = vector.shape_cast %171 : vector<16xf32> to vector<16x1xf32>
    %cst_70 = arith.constant 3.200000e+01 : f32
    %173 = vector.broadcast %cst_70 : f32 to vector<16x1xf32>
    %174 = arith.divf %172, %173 : vector<16x1xf32>
    %cst_71 = arith.constant 9.99999974E-6 : f32
    %175 = vector.broadcast %cst_71 : f32 to vector<16x1xf32>
    %176 = arith.addf %174, %175 : vector<16x1xf32>
    %177 = math.rsqrt %176 : vector<16x1xf32>
    %178 = vector.broadcast %177 : vector<16x1xf32> to vector<16x32xf32>
    %179 = arith.mulf %169, %178 : vector<16x32xf32>
    %180 = vector.broadcast %106 : vector<1x32xf32> to vector<16x32xf32>
    %181 = arith.mulf %179, %180 : vector<16x32xf32>
    %182 = vector.broadcast %107 : vector<1x32xf32> to vector<16x32xf32>
    %183 = arith.addf %181, %182 : vector<16x32xf32>
    %c0_72 = arith.constant 0 : index
    %c768 = arith.constant 768 : index
    %184 = vector.load %arg5[%c0_72, %c768] : memref<32x2048xf32, #tpu.memory_space<vmem>>, vector<32x96xf32>
    %c0_73 = arith.constant 0 : index
    %c896 = arith.constant 896 : index
    %185 = vector.load %arg5[%c0_73, %c896] : memref<32x2048xf32, #tpu.memory_space<vmem>>, vector<32x32xf32>
    %c0_74 = arith.constant 0 : index
    %c1024 = arith.constant 1024 : index
    %186 = vector.load %arg5[%c0_74, %c1024] : memref<32x2048xf32, #tpu.memory_space<vmem>>, vector<32x128xf32>
    %c0_75 = arith.constant 0 : index
    %c256_76 = arith.constant 256 : index
    %187 = vector.load %arg6[%c0_75, %c256_76] : memref<128x512xf32, #tpu.memory_space<vmem>>, vector<128x32xf32>
    %c16 = arith.constant 16 : index
    %c0_77 = arith.constant 0 : index
    %188 = vector.load %arg7[%c16, %c0_77] : memref<42x128xf32, #tpu.memory_space<vmem>>, vector<1x96xf32>
    %c17 = arith.constant 17 : index
    %c0_78 = arith.constant 0 : index
    %189 = vector.load %arg7[%c17, %c0_78] : memref<42x128xf32, #tpu.memory_space<vmem>>, vector<1x32xf32>
    %c18 = arith.constant 18 : index
    %c0_79 = arith.constant 0 : index
    %190 = vector.load %arg7[%c18, %c0_79] : memref<42x128xf32, #tpu.memory_space<vmem>>, vector<1x32xf32>
    %c19 = arith.constant 19 : index
    %c0_80 = arith.constant 0 : index
    %191 = vector.load %arg7[%c19, %c0_80] : memref<42x128xf32, #tpu.memory_space<vmem>>, vector<1x32xf32>
    %c20 = arith.constant 20 : index
    %c0_81 = arith.constant 0 : index
    %192 = vector.load %arg7[%c20, %c0_81] : memref<42x128xf32, #tpu.memory_space<vmem>>, vector<1x128xf32>
    %c21 = arith.constant 21 : index
    %c0_82 = arith.constant 0 : index
    %193 = vector.load %arg7[%c21, %c0_82] : memref<42x128xf32, #tpu.memory_space<vmem>>, vector<1x32xf32>
    %c22 = arith.constant 22 : index
    %c0_83 = arith.constant 0 : index
    %194 = vector.load %arg7[%c22, %c0_83] : memref<42x128xf32, #tpu.memory_space<vmem>>, vector<1x32xf32>
    %c23 = arith.constant 23 : index
    %c0_84 = arith.constant 0 : index
    %195 = vector.load %arg7[%c23, %c0_84] : memref<42x128xf32, #tpu.memory_space<vmem>>, vector<1x32xf32>
    %cst_85 = arith.constant dense<0.000000e+00> : vector<16x96xf32>
    %196 = tpu.matmul %183, %184, %cst_85 {dimension_numbers = #tpu.dot_dimension_numbers<[1], [0], [0], [1], [0, 0, 1, 1], [], []>} : vector<16x32xf32>, vector<32x96xf32>, vector<16x96xf32> -> vector<16x96xf32>
    %197 = vector.broadcast %188 : vector<1x96xf32> to vector<16x96xf32>
    %198 = arith.addf %196, %197 : vector<16x96xf32>
    %199 = vector.extract_strided_slice %198 {offsets = [0, 0], sizes = [16, 32], strides = [1, 1]} : vector<16x96xf32> to vector<16x32xf32>
    %200 = vector.extract_strided_slice %198 {offsets = [0, 32], sizes = [16, 64], strides = [1, 1]} : vector<16x96xf32> to vector<16x64xf32>
    %201 = vector.shape_cast %199 : vector<16x32xf32> to vector<2x8x32xf32>
    %202 = vector.extract_strided_slice %200 {offsets = [0, 0], sizes = [16, 32], strides = [1, 1]} : vector<16x64xf32> to vector<16x32xf32>
    %203 = vector.shape_cast %202 : vector<16x32xf32> to vector<2x8x32xf32>
    %204 = vector.extract_strided_slice %200 {offsets = [0, 32], sizes = [16, 32], strides = [1, 1]} : vector<16x64xf32> to vector<16x32xf32>
    %205 = vector.shape_cast %204 : vector<16x32xf32> to vector<2x8x32xf32>
    "tpu.trace_start"() <{level = 10 : i32, message = "bqd,bkd->bqk"}> : () -> ()
    %cst_86 = arith.constant dense<0.000000e+00> : vector<2x8x8xf32>
    %206 = tpu.matmul %201, %203, %cst_86 {dimension_numbers = #tpu.dot_dimension_numbers<[2], [2], [1], [1], [0, 0, 0, 1, 1, 1], [0], [0]>} : vector<2x8x32xf32>, vector<2x8x32xf32>, vector<2x8x8xf32> -> vector<2x8x8xf32>
    "tpu.trace_stop"() : () -> ()
    %cst_87 = arith.constant dense<0xFF800000> : vector<2x8xf32>
    %207 = vector.multi_reduction <maximumf>, %206, %cst_87 [2] : vector<2x8x8xf32> to vector<2x8xf32>
    %208 = vector.shape_cast %207 : vector<2x8xf32> to vector<2x8x1xf32>
    %209 = vector.broadcast %208 : vector<2x8x1xf32> to vector<2x8x8xf32>
    %210 = arith.subf %206, %209 : vector<2x8x8xf32>
    %211 = math.exp %210 : vector<2x8x8xf32>
    %cst_88 = arith.constant dense<0.000000e+00> : vector<2x8xf32>
    %212 = vector.multi_reduction <add>, %211, %cst_88 [2] : vector<2x8x8xf32> to vector<2x8xf32>
    %213 = vector.shape_cast %212 : vector<2x8xf32> to vector<2x8x1xf32>
    "tpu.trace_start"() <{level = 10 : i32, message = "bqk,bkd->bqd"}> : () -> ()
    %cst_89 = arith.constant dense<0.000000e+00> : vector<2x8x32xf32>
    %214 = tpu.matmul %211, %205, %cst_89 {dimension_numbers = #tpu.dot_dimension_numbers<[2], [1], [1], [2], [0, 0, 0, 1, 1, 2], [0], [0]>} : vector<2x8x8xf32>, vector<2x8x32xf32>, vector<2x8x32xf32> -> vector<2x8x32xf32>
    "tpu.trace_stop"() : () -> ()
    %215 = tpu.reciprocal %213 : vector<2x8x1xf32> -> vector<2x8x1xf32>
    %216 = vector.broadcast %215 : vector<2x8x1xf32> to vector<2x8x32xf32>
    %217 = arith.mulf %214, %216 : vector<2x8x32xf32>
    %218 = vector.shape_cast %217 : vector<2x8x32xf32> to vector<16x32xf32>
    %cst_90 = arith.constant dense<0.000000e+00> : vector<16x32xf32>
    %219 = tpu.matmul %218, %185, %cst_90 {dimension_numbers = #tpu.dot_dimension_numbers<[1], [0], [0], [1], [0, 0, 1, 1], [], []>} : vector<16x32xf32>, vector<32x32xf32>, vector<16x32xf32> -> vector<16x32xf32>
    %220 = arith.addf %183, %219 : vector<16x32xf32>
    %221 = vector.broadcast %189 : vector<1x32xf32> to vector<16x32xf32>
    %222 = arith.addf %220, %221 : vector<16x32xf32>
    %cst_91 = arith.constant dense<0.000000e+00> : vector<16xf32>
    %223 = vector.multi_reduction <add>, %222, %cst_91 [1] : vector<16x32xf32> to vector<16xf32>
    %224 = vector.shape_cast %223 : vector<16xf32> to vector<16x1xf32>
    %cst_92 = arith.constant 3.200000e+01 : f32
    %225 = vector.broadcast %cst_92 : f32 to vector<16x1xf32>
    %226 = arith.divf %224, %225 : vector<16x1xf32>
    %227 = vector.broadcast %226 : vector<16x1xf32> to vector<16x32xf32>
    %228 = arith.subf %222, %227 : vector<16x32xf32>
    %229 = arith.mulf %228, %228 : vector<16x32xf32>
    %cst_93 = arith.constant dense<0.000000e+00> : vector<16xf32>
    %230 = vector.multi_reduction <add>, %229, %cst_93 [1] : vector<16x32xf32> to vector<16xf32>
    %231 = vector.shape_cast %230 : vector<16xf32> to vector<16x1xf32>
    %cst_94 = arith.constant 3.200000e+01 : f32
    %232 = vector.broadcast %cst_94 : f32 to vector<16x1xf32>
    %233 = arith.divf %231, %232 : vector<16x1xf32>
    %cst_95 = arith.constant 9.99999974E-6 : f32
    %234 = vector.broadcast %cst_95 : f32 to vector<16x1xf32>
    %235 = arith.addf %233, %234 : vector<16x1xf32>
    %236 = math.rsqrt %235 : vector<16x1xf32>
    %237 = vector.broadcast %236 : vector<16x1xf32> to vector<16x32xf32>
    %238 = arith.mulf %228, %237 : vector<16x32xf32>
    %239 = vector.broadcast %190 : vector<1x32xf32> to vector<16x32xf32>
    %240 = arith.mulf %238, %239 : vector<16x32xf32>
    %241 = vector.broadcast %191 : vector<1x32xf32> to vector<16x32xf32>
    %242 = arith.addf %240, %241 : vector<16x32xf32>
    %cst_96 = arith.constant dense<0.000000e+00> : vector<16x128xf32>
    %243 = tpu.matmul %242, %186, %cst_96 {dimension_numbers = #tpu.dot_dimension_numbers<[1], [0], [0], [1], [0, 0, 1, 1], [], []>} : vector<16x32xf32>, vector<32x128xf32>, vector<16x128xf32> -> vector<16x128xf32>
    %244 = vector.broadcast %192 : vector<1x128xf32> to vector<16x128xf32>
    %245 = arith.addf %243, %244 : vector<16x128xf32>
    %cst_97 = arith.constant 0.000000e+00 : f32
    %246 = vector.broadcast %cst_97 : f32 to vector<16x128xf32>
    %247 = arith.maximumf %245, %246 : vector<16x128xf32>
    %cst_98 = arith.constant dense<0.000000e+00> : vector<16x32xf32>
    %248 = tpu.matmul %247, %187, %cst_98 {dimension_numbers = #tpu.dot_dimension_numbers<[1], [0], [0], [1], [0, 0, 1, 1], [], []>} : vector<16x128xf32>, vector<128x32xf32>, vector<16x32xf32> -> vector<16x32xf32>
    %249 = arith.addf %242, %248 : vector<16x32xf32>
    %250 = vector.broadcast %193 : vector<1x32xf32> to vector<16x32xf32>
    %251 = arith.addf %249, %250 : vector<16x32xf32>
    %cst_99 = arith.constant dense<0.000000e+00> : vector<16xf32>
    %252 = vector.multi_reduction <add>, %251, %cst_99 [1] : vector<16x32xf32> to vector<16xf32>
    %253 = vector.shape_cast %252 : vector<16xf32> to vector<16x1xf32>
    %cst_100 = arith.constant 3.200000e+01 : f32
    %254 = vector.broadcast %cst_100 : f32 to vector<16x1xf32>
    %255 = arith.divf %253, %254 : vector<16x1xf32>
    %256 = vector.broadcast %255 : vector<16x1xf32> to vector<16x32xf32>
    %257 = arith.subf %251, %256 : vector<16x32xf32>
    %258 = arith.mulf %257, %257 : vector<16x32xf32>
    %cst_101 = arith.constant dense<0.000000e+00> : vector<16xf32>
    %259 = vector.multi_reduction <add>, %258, %cst_101 [1] : vector<16x32xf32> to vector<16xf32>
    %260 = vector.shape_cast %259 : vector<16xf32> to vector<16x1xf32>
    %cst_102 = arith.constant 3.200000e+01 : f32
    %261 = vector.broadcast %cst_102 : f32 to vector<16x1xf32>
    %262 = arith.divf %260, %261 : vector<16x1xf32>
    %cst_103 = arith.constant 9.99999974E-6 : f32
    %263 = vector.broadcast %cst_103 : f32 to vector<16x1xf32>
    %264 = arith.addf %262, %263 : vector<16x1xf32>
    %265 = math.rsqrt %264 : vector<16x1xf32>
    %266 = vector.broadcast %265 : vector<16x1xf32> to vector<16x32xf32>
    %267 = arith.mulf %257, %266 : vector<16x32xf32>
    %268 = vector.broadcast %194 : vector<1x32xf32> to vector<16x32xf32>
    %269 = arith.mulf %267, %268 : vector<16x32xf32>
    %270 = vector.broadcast %195 : vector<1x32xf32> to vector<16x32xf32>
    %271 = arith.addf %269, %270 : vector<16x32xf32>
    %c24 = arith.constant 24 : index
    %c0_104 = arith.constant 0 : index
    %272 = vector.load %arg7[%c24, %c0_104] : memref<42x128xf32, #tpu.memory_space<vmem>>, vector<1x32xf32>
    %c25 = arith.constant 25 : index
    %c0_105 = arith.constant 0 : index
    %273 = vector.load %arg7[%c25, %c0_105] : memref<42x128xf32, #tpu.memory_space<vmem>>, vector<1x32xf32>
    %cst_106 = arith.constant dense<0.000000e+00> : vector<16xf32>
    %274 = vector.multi_reduction <add>, %271, %cst_106 [1] : vector<16x32xf32> to vector<16xf32>
    %275 = vector.shape_cast %274 : vector<16xf32> to vector<16x1xf32>
    %cst_107 = arith.constant 3.200000e+01 : f32
    %276 = vector.broadcast %cst_107 : f32 to vector<16x1xf32>
    %277 = arith.divf %275, %276 : vector<16x1xf32>
    %278 = vector.broadcast %277 : vector<16x1xf32> to vector<16x32xf32>
    %279 = arith.subf %271, %278 : vector<16x32xf32>
    %280 = arith.mulf %279, %279 : vector<16x32xf32>
    %cst_108 = arith.constant dense<0.000000e+00> : vector<16xf32>
    %281 = vector.multi_reduction <add>, %280, %cst_108 [1] : vector<16x32xf32> to vector<16xf32>
    %282 = vector.shape_cast %281 : vector<16xf32> to vector<16x1xf32>
    %cst_109 = arith.constant 3.200000e+01 : f32
    %283 = vector.broadcast %cst_109 : f32 to vector<16x1xf32>
    %284 = arith.divf %282, %283 : vector<16x1xf32>
    %cst_110 = arith.constant 9.99999974E-6 : f32
    %285 = vector.broadcast %cst_110 : f32 to vector<16x1xf32>
    %286 = arith.addf %284, %285 : vector<16x1xf32>
    %287 = math.rsqrt %286 : vector<16x1xf32>
    %288 = vector.broadcast %287 : vector<16x1xf32> to vector<16x32xf32>
    %289 = arith.mulf %279, %288 : vector<16x32xf32>
    %290 = vector.broadcast %272 : vector<1x32xf32> to vector<16x32xf32>
    %291 = arith.mulf %289, %290 : vector<16x32xf32>
    %292 = vector.broadcast %273 : vector<1x32xf32> to vector<16x32xf32>
    %293 = arith.addf %291, %292 : vector<16x32xf32>
    %c0_111 = arith.constant 0 : index
    %c0_112 = arith.constant 0 : index
    %294 = vector.load %arg1[%c0_111, %c0_112] : memref<16x1xi32, #tpu.memory_space<vmem>>, vector<16x1xi32>
    %295 = tpu.iota {dimensions = array<i32: 1>} : vector<16x10xi32>
    %296 = vector.broadcast %294 : vector<16x1xi32> to vector<16x10xi32>
    %297 = arith.cmpi eq, %296, %295 : vector<16x10xi32>
    %298 = arith.extui %297 : vector<16x10xi1> to vector<16x10xi32>
    %299 = arith.sitofp %298 : vector<16x10xi32> to vector<16x10xf32>
    %c0_113 = arith.constant 0 : index
    %c0_114 = arith.constant 0 : index
    %300 = vector.load %arg4[%c0_113, %c0_114] : memref<10x32xf32, #tpu.memory_space<vmem>>, vector<10x32xf32>
    %cst_115 = arith.constant dense<0.000000e+00> : vector<16x32xf32>
    %301 = tpu.matmul %299, %300, %cst_115 {dimension_numbers = #tpu.dot_dimension_numbers<[1], [0], [0], [1], [0, 0, 1, 1], [], []>} : vector<16x10xf32>, vector<10x32xf32>, vector<16x32xf32> -> vector<16x32xf32>
    %c1024_116 = arith.constant 1024 : index
    %c0_117 = arith.constant 0 : index
    %302 = vector.load %arg3[%c1024_116, %c0_117] : memref<2048x32xf32, #tpu.memory_space<vmem>>, vector<8x32xf32>
    %303 = vector.shape_cast %301 : vector<16x32xf32> to vector<2x8x32xf32>
    %304 = vector.shape_cast %302 : vector<8x32xf32> to vector<1x8x32xf32>
    %305 = vector.broadcast %304 : vector<1x8x32xf32> to vector<2x8x32xf32>
    %306 = arith.addf %303, %305 : vector<2x8x32xf32>
    %307 = vector.shape_cast %306 : vector<2x8x32xf32> to vector<16x32xf32>
    %308 = tpu.iota {dimensions = array<i32: 0>} : vector<8x8xi32>
    %309 = tpu.iota {dimensions = array<i32: 1>} : vector<8x8xi32>
    %310 = arith.cmpi sgt, %309, %308 : vector<8x8xi32>
    %cst_118 = arith.constant -1.000000e+30 : f32
    %cst_119 = arith.constant 0.000000e+00 : f32
    %311 = vector.broadcast %cst_118 : f32 to vector<8x8xf32>
    %312 = vector.broadcast %cst_119 : f32 to vector<8x8xf32>
    %313 = arith.select %310, %311, %312 : vector<8x8xi1>, vector<8x8xf32>
    %c0_120 = arith.constant 0 : index
    %c0_121 = arith.constant 0 : index
    %314 = vector.load %arg0[%c0_120, %c0_121] : memref<2x8xi32, #tpu.memory_space<vmem>>, vector<1x8xi32>
    %c1_i32 = arith.constant 1 : i32
    %315 = vector.broadcast %c1_i32 : i32 to vector<1x8xi32>
    %316 = arith.cmpi eq, %314, %315 : vector<1x8xi32>
    %cst_122 = arith.constant -1.000000e+30 : f32
    %cst_123 = arith.constant 0.000000e+00 : f32
    %317 = vector.broadcast %cst_122 : f32 to vector<1x8xf32>
    %318 = vector.broadcast %cst_123 : f32 to vector<1x8xf32>
    %319 = arith.select %316, %317, %318 : vector<1x8xi1>, vector<1x8xf32>
    %320 = vector.shape_cast %319 : vector<1x8xf32> to vector<1x8xf32>
    %321 = vector.broadcast %320 : vector<1x8xf32> to vector<8x8xf32>
    %322 = arith.addf %313, %321 : vector<8x8xf32>
    %c1_124 = arith.constant 1 : index
    %c0_125 = arith.constant 0 : index
    %323 = vector.load %arg0[%c1_124, %c0_125] : memref<2x8xi32, #tpu.memory_space<vmem>>, vector<1x8xi32>
    %c1_i32_126 = arith.constant 1 : i32
    %324 = vector.broadcast %c1_i32_126 : i32 to vector<1x8xi32>
    %325 = arith.cmpi eq, %323, %324 : vector<1x8xi32>
    %cst_127 = arith.constant -1.000000e+30 : f32
    %cst_128 = arith.constant 0.000000e+00 : f32
    %326 = vector.broadcast %cst_127 : f32 to vector<1x8xf32>
    %327 = vector.broadcast %cst_128 : f32 to vector<1x8xf32>
    %328 = arith.select %325, %326, %327 : vector<1x8xi1>, vector<1x8xf32>
    %329 = vector.shape_cast %328 : vector<1x8xf32> to vector<1x8xf32>
    %330 = vector.broadcast %329 : vector<1x8xf32> to vector<8x8xf32>
    %331 = arith.addf %313, %330 : vector<8x8xf32>
    %332 = vector.shape_cast %322 : vector<8x8xf32> to vector<1x8x8xf32>
    %333 = vector.shape_cast %331 : vector<8x8xf32> to vector<1x8x8xf32>
    %334 = tpu.concatenate %332, %333 in 0 : vector<1x8x8xf32>, vector<1x8x8xf32> -> vector<2x8x8xf32>
    %c0_129 = arith.constant 0 : index
    %c1152 = arith.constant 1152 : index
    %335 = vector.load %arg5[%c0_129, %c1152] : memref<32x2048xf32, #tpu.memory_space<vmem>>, vector<32x96xf32>
    %c0_130 = arith.constant 0 : index
    %c1280 = arith.constant 1280 : index
    %336 = vector.load %arg5[%c0_130, %c1280] : memref<32x2048xf32, #tpu.memory_space<vmem>>, vector<32x32xf32>
    %c0_131 = arith.constant 0 : index
    %c1408 = arith.constant 1408 : index
    %337 = vector.load %arg5[%c0_131, %c1408] : memref<32x2048xf32, #tpu.memory_space<vmem>>, vector<32x32xf32>
    %c0_132 = arith.constant 0 : index
    %c1536 = arith.constant 1536 : index
    %338 = vector.load %arg5[%c0_132, %c1536] : memref<32x2048xf32, #tpu.memory_space<vmem>>, vector<32x64xf32>
    %c0_133 = arith.constant 0 : index
    %c1664 = arith.constant 1664 : index
    %339 = vector.load %arg5[%c0_133, %c1664] : memref<32x2048xf32, #tpu.memory_space<vmem>>, vector<32x32xf32>
    %c0_134 = arith.constant 0 : index
    %c1792 = arith.constant 1792 : index
    %340 = vector.load %arg5[%c0_134, %c1792] : memref<32x2048xf32, #tpu.memory_space<vmem>>, vector<32x128xf32>
    %c0_135 = arith.constant 0 : index
    %c384_136 = arith.constant 384 : index
    %341 = vector.load %arg6[%c0_135, %c384_136] : memref<128x512xf32, #tpu.memory_space<vmem>>, vector<128x32xf32>
    %c26 = arith.constant 26 : index
    %c0_137 = arith.constant 0 : index
    %342 = vector.load %arg7[%c26, %c0_137] : memref<42x128xf32, #tpu.memory_space<vmem>>, vector<1x96xf32>
    %c27 = arith.constant 27 : index
    %c0_138 = arith.constant 0 : index
    %343 = vector.load %arg7[%c27, %c0_138] : memref<42x128xf32, #tpu.memory_space<vmem>>, vector<1x32xf32>
    %c28 = arith.constant 28 : index
    %c0_139 = arith.constant 0 : index
    %344 = vector.load %arg7[%c28, %c0_139] : memref<42x128xf32, #tpu.memory_space<vmem>>, vector<1x32xf32>
    %c29 = arith.constant 29 : index
    %c0_140 = arith.constant 0 : index
    %345 = vector.load %arg7[%c29, %c0_140] : memref<42x128xf32, #tpu.memory_space<vmem>>, vector<1x32xf32>
    %c30 = arith.constant 30 : index
    %c0_141 = arith.constant 0 : index
    %346 = vector.load %arg7[%c30, %c0_141] : memref<42x128xf32, #tpu.memory_space<vmem>>, vector<1x32xf32>
    %c31 = arith.constant 31 : index
    %c0_142 = arith.constant 0 : index
    %347 = vector.load %arg7[%c31, %c0_142] : memref<42x128xf32, #tpu.memory_space<vmem>>, vector<1x64xf32>
    %c32 = arith.constant 32 : index
    %c0_143 = arith.constant 0 : index
    %348 = vector.load %arg7[%c32, %c0_143] : memref<42x128xf32, #tpu.memory_space<vmem>>, vector<1x32xf32>
    %c33 = arith.constant 33 : index
    %c0_144 = arith.constant 0 : index
    %349 = vector.load %arg7[%c33, %c0_144] : memref<42x128xf32, #tpu.memory_space<vmem>>, vector<1x32xf32>
    %c34 = arith.constant 34 : index
    %c0_145 = arith.constant 0 : index
    %350 = vector.load %arg7[%c34, %c0_145] : memref<42x128xf32, #tpu.memory_space<vmem>>, vector<1x32xf32>
    %c35 = arith.constant 35 : index
    %c0_146 = arith.constant 0 : index
    %351 = vector.load %arg7[%c35, %c0_146] : memref<42x128xf32, #tpu.memory_space<vmem>>, vector<1x128xf32>
    %c36 = arith.constant 36 : index
    %c0_147 = arith.constant 0 : index
    %352 = vector.load %arg7[%c36, %c0_147] : memref<42x128xf32, #tpu.memory_space<vmem>>, vector<1x32xf32>
    %c37 = arith.constant 37 : index
    %c0_148 = arith.constant 0 : index
    %353 = vector.load %arg7[%c37, %c0_148] : memref<42x128xf32, #tpu.memory_space<vmem>>, vector<1x32xf32>
    %c38 = arith.constant 38 : index
    %c0_149 = arith.constant 0 : index
    %354 = vector.load %arg7[%c38, %c0_149] : memref<42x128xf32, #tpu.memory_space<vmem>>, vector<1x32xf32>
    %cst_150 = arith.constant dense<0.000000e+00> : vector<16x96xf32>
    %355 = tpu.matmul %307, %335, %cst_150 {dimension_numbers = #tpu.dot_dimension_numbers<[1], [0], [0], [1], [0, 0, 1, 1], [], []>} : vector<16x32xf32>, vector<32x96xf32>, vector<16x96xf32> -> vector<16x96xf32>
    %356 = vector.broadcast %342 : vector<1x96xf32> to vector<16x96xf32>
    %357 = arith.addf %355, %356 : vector<16x96xf32>
    %358 = vector.extract_strided_slice %357 {offsets = [0, 0], sizes = [16, 32], strides = [1, 1]} : vector<16x96xf32> to vector<16x32xf32>
    %359 = vector.extract_strided_slice %357 {offsets = [0, 32], sizes = [16, 64], strides = [1, 1]} : vector<16x96xf32> to vector<16x64xf32>
    %360 = vector.shape_cast %358 : vector<16x32xf32> to vector<2x8x32xf32>
    %361 = vector.extract_strided_slice %359 {offsets = [0, 0], sizes = [16, 32], strides = [1, 1]} : vector<16x64xf32> to vector<16x32xf32>
    %362 = vector.shape_cast %361 : vector<16x32xf32> to vector<2x8x32xf32>
    %363 = vector.extract_strided_slice %359 {offsets = [0, 32], sizes = [16, 32], strides = [1, 1]} : vector<16x64xf32> to vector<16x32xf32>
    %364 = vector.shape_cast %363 : vector<16x32xf32> to vector<2x8x32xf32>
    "tpu.trace_start"() <{level = 10 : i32, message = "bqd,bkd->bqk"}> : () -> ()
    %cst_151 = arith.constant dense<0.000000e+00> : vector<2x8x8xf32>
    %365 = tpu.matmul %360, %362, %cst_151 {dimension_numbers = #tpu.dot_dimension_numbers<[2], [2], [1], [1], [0, 0, 0, 1, 1, 1], [0], [0]>} : vector<2x8x32xf32>, vector<2x8x32xf32>, vector<2x8x8xf32> -> vector<2x8x8xf32>
    "tpu.trace_stop"() : () -> ()
    %366 = arith.addf %365, %334 : vector<2x8x8xf32>
    %cst_152 = arith.constant dense<0xFF800000> : vector<2x8xf32>
    %367 = vector.multi_reduction <maximumf>, %366, %cst_152 [2] : vector<2x8x8xf32> to vector<2x8xf32>
    %368 = vector.shape_cast %367 : vector<2x8xf32> to vector<2x8x1xf32>
    %369 = vector.broadcast %368 : vector<2x8x1xf32> to vector<2x8x8xf32>
    %370 = arith.subf %366, %369 : vector<2x8x8xf32>
    %371 = math.exp %370 : vector<2x8x8xf32>
    %cst_153 = arith.constant dense<0.000000e+00> : vector<2x8xf32>
    %372 = vector.multi_reduction <add>, %371, %cst_153 [2] : vector<2x8x8xf32> to vector<2x8xf32>
    %373 = vector.shape_cast %372 : vector<2x8xf32> to vector<2x8x1xf32>
    "tpu.trace_start"() <{level = 10 : i32, message = "bqk,bkd->bqd"}> : () -> ()
    %cst_154 = arith.constant dense<0.000000e+00> : vector<2x8x32xf32>
    %374 = tpu.matmul %371, %364, %cst_154 {dimension_numbers = #tpu.dot_dimension_numbers<[2], [1], [1], [2], [0, 0, 0, 1, 1, 2], [0], [0]>} : vector<2x8x8xf32>, vector<2x8x32xf32>, vector<2x8x32xf32> -> vector<2x8x32xf32>
    "tpu.trace_stop"() : () -> ()
    %375 = tpu.reciprocal %373 : vector<2x8x1xf32> -> vector<2x8x1xf32>
    %376 = vector.broadcast %375 : vector<2x8x1xf32> to vector<2x8x32xf32>
    %377 = arith.mulf %374, %376 : vector<2x8x32xf32>
    %378 = vector.shape_cast %377 : vector<2x8x32xf32> to vector<16x32xf32>
    %cst_155 = arith.constant dense<0.000000e+00> : vector<16x32xf32>
    %379 = tpu.matmul %378, %336, %cst_155 {dimension_numbers = #tpu.dot_dimension_numbers<[1], [0], [0], [1], [0, 0, 1, 1], [], []>} : vector<16x32xf32>, vector<32x32xf32>, vector<16x32xf32> -> vector<16x32xf32>
    %380 = arith.addf %307, %379 : vector<16x32xf32>
    %381 = vector.broadcast %343 : vector<1x32xf32> to vector<16x32xf32>
    %382 = arith.addf %380, %381 : vector<16x32xf32>
    %cst_156 = arith.constant dense<0.000000e+00> : vector<16xf32>
    %383 = vector.multi_reduction <add>, %382, %cst_156 [1] : vector<16x32xf32> to vector<16xf32>
    %384 = vector.shape_cast %383 : vector<16xf32> to vector<16x1xf32>
    %cst_157 = arith.constant 3.200000e+01 : f32
    %385 = vector.broadcast %cst_157 : f32 to vector<16x1xf32>
    %386 = arith.divf %384, %385 : vector<16x1xf32>
    %387 = vector.broadcast %386 : vector<16x1xf32> to vector<16x32xf32>
    %388 = arith.subf %382, %387 : vector<16x32xf32>
    %389 = arith.mulf %388, %388 : vector<16x32xf32>
    %cst_158 = arith.constant dense<0.000000e+00> : vector<16xf32>
    %390 = vector.multi_reduction <add>, %389, %cst_158 [1] : vector<16x32xf32> to vector<16xf32>
    %391 = vector.shape_cast %390 : vector<16xf32> to vector<16x1xf32>
    %cst_159 = arith.constant 3.200000e+01 : f32
    %392 = vector.broadcast %cst_159 : f32 to vector<16x1xf32>
    %393 = arith.divf %391, %392 : vector<16x1xf32>
    %cst_160 = arith.constant 9.99999974E-6 : f32
    %394 = vector.broadcast %cst_160 : f32 to vector<16x1xf32>
    %395 = arith.addf %393, %394 : vector<16x1xf32>
    %396 = math.rsqrt %395 : vector<16x1xf32>
    %397 = vector.broadcast %396 : vector<16x1xf32> to vector<16x32xf32>
    %398 = arith.mulf %388, %397 : vector<16x32xf32>
    %399 = vector.broadcast %344 : vector<1x32xf32> to vector<16x32xf32>
    %400 = arith.mulf %398, %399 : vector<16x32xf32>
    %401 = vector.broadcast %345 : vector<1x32xf32> to vector<16x32xf32>
    %402 = arith.addf %400, %401 : vector<16x32xf32>
    %cst_161 = arith.constant dense<0.000000e+00> : vector<16x32xf32>
    %403 = tpu.matmul %402, %337, %cst_161 {dimension_numbers = #tpu.dot_dimension_numbers<[1], [0], [0], [1], [0, 0, 1, 1], [], []>} : vector<16x32xf32>, vector<32x32xf32>, vector<16x32xf32> -> vector<16x32xf32>
    %404 = vector.broadcast %346 : vector<1x32xf32> to vector<16x32xf32>
    %405 = arith.addf %403, %404 : vector<16x32xf32>
    %cst_162 = arith.constant dense<0.000000e+00> : vector<16x64xf32>
    %406 = tpu.matmul %293, %338, %cst_162 {dimension_numbers = #tpu.dot_dimension_numbers<[1], [0], [0], [1], [0, 0, 1, 1], [], []>} : vector<16x32xf32>, vector<32x64xf32>, vector<16x64xf32> -> vector<16x64xf32>
    %407 = vector.broadcast %347 : vector<1x64xf32> to vector<16x64xf32>
    %408 = arith.addf %406, %407 : vector<16x64xf32>
    %409 = vector.shape_cast %405 : vector<16x32xf32> to vector<2x8x32xf32>
    %410 = vector.extract_strided_slice %408 {offsets = [0, 0], sizes = [16, 32], strides = [1, 1]} : vector<16x64xf32> to vector<16x32xf32>
    %411 = vector.shape_cast %410 : vector<16x32xf32> to vector<2x8x32xf32>
    %412 = vector.extract_strided_slice %408 {offsets = [0, 32], sizes = [16, 32], strides = [1, 1]} : vector<16x64xf32> to vector<16x32xf32>
    %413 = vector.shape_cast %412 : vector<16x32xf32> to vector<2x8x32xf32>
    "tpu.trace_start"() <{level = 10 : i32, message = "bqd,bkd->bqk"}> : () -> ()
    %cst_163 = arith.constant dense<0.000000e+00> : vector<2x8x8xf32>
    %414 = tpu.matmul %409, %411, %cst_163 {dimension_numbers = #tpu.dot_dimension_numbers<[2], [2], [1], [1], [0, 0, 0, 1, 1, 1], [0], [0]>} : vector<2x8x32xf32>, vector<2x8x32xf32>, vector<2x8x8xf32> -> vector<2x8x8xf32>
    "tpu.trace_stop"() : () -> ()
    %cst_164 = arith.constant dense<0xFF800000> : vector<2x8xf32>
    %415 = vector.multi_reduction <maximumf>, %414, %cst_164 [2] : vector<2x8x8xf32> to vector<2x8xf32>
    %416 = vector.shape_cast %415 : vector<2x8xf32> to vector<2x8x1xf32>
    %417 = vector.extract_strided_slice %347 {offsets = [0, 0], sizes = [1, 32], strides = [1, 1]} : vector<1x64xf32> to vector<1x32xf32>
    %418 = vector.extract_strided_slice %347 {offsets = [0, 32], sizes = [1, 32], strides = [1, 1]} : vector<1x64xf32> to vector<1x32xf32>
    %cst_165 = arith.constant dense<0.000000e+00> : vector<16x1xf32>
    %419 = tpu.matmul %405, %417, %cst_165 {dimension_numbers = #tpu.dot_dimension_numbers<[1], [1], [0], [0], [0, 0, 1, 0], [], []>} : vector<16x32xf32>, vector<1x32xf32>, vector<16x1xf32> -> vector<16x1xf32>
    %420 = vector.shape_cast %419 : vector<16x1xf32> to vector<2x8x1xf32>
    %421 = arith.maximumf %416, %420 : vector<2x8x1xf32>
    %422 = vector.broadcast %421 : vector<2x8x1xf32> to vector<2x8x8xf32>
    %423 = arith.subf %414, %422 : vector<2x8x8xf32>
    %424 = math.exp %423 : vector<2x8x8xf32>
    %cst_166 = arith.constant dense<0.000000e+00> : vector<2x8xf32>
    %425 = vector.multi_reduction <add>, %424, %cst_166 [2] : vector<2x8x8xf32> to vector<2x8xf32>
    %426 = vector.shape_cast %425 : vector<2x8xf32> to vector<2x8x1xf32>
    "tpu.trace_start"() <{level = 10 : i32, message = "bqk,bkd->bqd"}> : () -> ()
    %cst_167 = arith.constant dense<0.000000e+00> : vector<2x8x32xf32>
    %427 = tpu.matmul %424, %413, %cst_167 {dimension_numbers = #tpu.dot_dimension_numbers<[2], [1], [1], [2], [0, 0, 0, 1, 1, 2], [0], [0]>} : vector<2x8x8xf32>, vector<2x8x32xf32>, vector<2x8x32xf32> -> vector<2x8x32xf32>
    "tpu.trace_stop"() : () -> ()
    %428 = arith.subf %420, %421 : vector<2x8x1xf32>
    %429 = math.exp %428 : vector<2x8x1xf32>
    %430 = arith.addf %426, %429 : vector<2x8x1xf32>
    %431 = vector.shape_cast %418 : vector<1x32xf32> to vector<1x1x32xf32>
    %432 = vector.broadcast %429 : vector<2x8x1xf32> to vector<2x8x32xf32>
    %433 = vector.broadcast %431 : vector<1x1x32xf32> to vector<2x8x32xf32>
    %434 = arith.mulf %432, %433 : vector<2x8x32xf32>
    %435 = arith.addf %427, %434 : vector<2x8x32xf32>
    %436 = tpu.reciprocal %430 : vector<2x8x1xf32> -> vector<2x8x1xf32>
    %437 = vector.broadcast %436 : vector<2x8x1xf32> to vector<2x8x32xf32>
    %438 = arith.mulf %435, %437 : vector<2x8x32xf32>
    %439 = vector.shape_cast %438 : vector<2x8x32xf32> to vector<16x32xf32>
    %cst_168 = arith.constant dense<0.000000e+00> : vector<16x32xf32>
    %440 = tpu.matmul %439, %339, %cst_168 {dimension_numbers = #tpu.dot_dimension_numbers<[1], [0], [0], [1], [0, 0, 1, 1], [], []>} : vector<16x32xf32>, vector<32x32xf32>, vector<16x32xf32> -> vector<16x32xf32>
    %441 = arith.addf %402, %440 : vector<16x32xf32>
    %442 = vector.broadcast %348 : vector<1x32xf32> to vector<16x32xf32>
    %443 = arith.addf %441, %442 : vector<16x32xf32>
    %cst_169 = arith.constant dense<0.000000e+00> : vector<16xf32>
    %444 = vector.multi_reduction <add>, %443, %cst_169 [1] : vector<16x32xf32> to vector<16xf32>
    %445 = vector.shape_cast %444 : vector<16xf32> to vector<16x1xf32>
    %cst_170 = arith.constant 3.200000e+01 : f32
    %446 = vector.broadcast %cst_170 : f32 to vector<16x1xf32>
    %447 = arith.divf %445, %446 : vector<16x1xf32>
    %448 = vector.broadcast %447 : vector<16x1xf32> to vector<16x32xf32>
    %449 = arith.subf %443, %448 : vector<16x32xf32>
    %450 = arith.mulf %449, %449 : vector<16x32xf32>
    %cst_171 = arith.constant dense<0.000000e+00> : vector<16xf32>
    %451 = vector.multi_reduction <add>, %450, %cst_171 [1] : vector<16x32xf32> to vector<16xf32>
    %452 = vector.shape_cast %451 : vector<16xf32> to vector<16x1xf32>
    %cst_172 = arith.constant 3.200000e+01 : f32
    %453 = vector.broadcast %cst_172 : f32 to vector<16x1xf32>
    %454 = arith.divf %452, %453 : vector<16x1xf32>
    %cst_173 = arith.constant 9.99999974E-6 : f32
    %455 = vector.broadcast %cst_173 : f32 to vector<16x1xf32>
    %456 = arith.addf %454, %455 : vector<16x1xf32>
    %457 = math.rsqrt %456 : vector<16x1xf32>
    %458 = vector.broadcast %457 : vector<16x1xf32> to vector<16x32xf32>
    %459 = arith.mulf %449, %458 : vector<16x32xf32>
    %460 = vector.broadcast %349 : vector<1x32xf32> to vector<16x32xf32>
    %461 = arith.mulf %459, %460 : vector<16x32xf32>
    %462 = vector.broadcast %350 : vector<1x32xf32> to vector<16x32xf32>
    %463 = arith.addf %461, %462 : vector<16x32xf32>
    %cst_174 = arith.constant dense<0.000000e+00> : vector<16x128xf32>
    %464 = tpu.matmul %463, %340, %cst_174 {dimension_numbers = #tpu.dot_dimension_numbers<[1], [0], [0], [1], [0, 0, 1, 1], [], []>} : vector<16x32xf32>, vector<32x128xf32>, vector<16x128xf32> -> vector<16x128xf32>
    %465 = vector.broadcast %351 : vector<1x128xf32> to vector<16x128xf32>
    %466 = arith.addf %464, %465 : vector<16x128xf32>
    %cst_175 = arith.constant 0.000000e+00 : f32
    %467 = vector.broadcast %cst_175 : f32 to vector<16x128xf32>
    %468 = arith.maximumf %466, %467 : vector<16x128xf32>
    %cst_176 = arith.constant dense<0.000000e+00> : vector<16x32xf32>
    %469 = tpu.matmul %468, %341, %cst_176 {dimension_numbers = #tpu.dot_dimension_numbers<[1], [0], [0], [1], [0, 0, 1, 1], [], []>} : vector<16x128xf32>, vector<128x32xf32>, vector<16x32xf32> -> vector<16x32xf32>
    %470 = arith.addf %463, %469 : vector<16x32xf32>
    %471 = vector.broadcast %352 : vector<1x32xf32> to vector<16x32xf32>
    %472 = arith.addf %470, %471 : vector<16x32xf32>
    %cst_177 = arith.constant dense<0.000000e+00> : vector<16xf32>
    %473 = vector.multi_reduction <add>, %472, %cst_177 [1] : vector<16x32xf32> to vector<16xf32>
    %474 = vector.shape_cast %473 : vector<16xf32> to vector<16x1xf32>
    %cst_178 = arith.constant 3.200000e+01 : f32
    %475 = vector.broadcast %cst_178 : f32 to vector<16x1xf32>
    %476 = arith.divf %474, %475 : vector<16x1xf32>
    %477 = vector.broadcast %476 : vector<16x1xf32> to vector<16x32xf32>
    %478 = arith.subf %472, %477 : vector<16x32xf32>
    %479 = arith.mulf %478, %478 : vector<16x32xf32>
    %cst_179 = arith.constant dense<0.000000e+00> : vector<16xf32>
    %480 = vector.multi_reduction <add>, %479, %cst_179 [1] : vector<16x32xf32> to vector<16xf32>
    %481 = vector.shape_cast %480 : vector<16xf32> to vector<16x1xf32>
    %cst_180 = arith.constant 3.200000e+01 : f32
    %482 = vector.broadcast %cst_180 : f32 to vector<16x1xf32>
    %483 = arith.divf %481, %482 : vector<16x1xf32>
    %cst_181 = arith.constant 9.99999974E-6 : f32
    %484 = vector.broadcast %cst_181 : f32 to vector<16x1xf32>
    %485 = arith.addf %483, %484 : vector<16x1xf32>
    %486 = math.rsqrt %485 : vector<16x1xf32>
    %487 = vector.broadcast %486 : vector<16x1xf32> to vector<16x32xf32>
    %488 = arith.mulf %478, %487 : vector<16x32xf32>
    %489 = vector.broadcast %353 : vector<1x32xf32> to vector<16x32xf32>
    %490 = arith.mulf %488, %489 : vector<16x32xf32>
    %491 = vector.broadcast %354 : vector<1x32xf32> to vector<16x32xf32>
    %492 = arith.addf %490, %491 : vector<16x32xf32>
    %c39 = arith.constant 39 : index
    %c0_182 = arith.constant 0 : index
    %493 = vector.load %arg7[%c39, %c0_182] : memref<42x128xf32, #tpu.memory_space<vmem>>, vector<1x32xf32>
    %c40 = arith.constant 40 : index
    %c0_183 = arith.constant 0 : index
    %494 = vector.load %arg7[%c40, %c0_183] : memref<42x128xf32, #tpu.memory_space<vmem>>, vector<1x32xf32>
    %cst_184 = arith.constant dense<0.000000e+00> : vector<16xf32>
    %495 = vector.multi_reduction <add>, %492, %cst_184 [1] : vector<16x32xf32> to vector<16xf32>
    %496 = vector.shape_cast %495 : vector<16xf32> to vector<16x1xf32>
    %cst_185 = arith.constant 3.200000e+01 : f32
    %497 = vector.broadcast %cst_185 : f32 to vector<16x1xf32>
    %498 = arith.divf %496, %497 : vector<16x1xf32>
    %499 = vector.broadcast %498 : vector<16x1xf32> to vector<16x32xf32>
    %500 = arith.subf %492, %499 : vector<16x32xf32>
    %501 = arith.mulf %500, %500 : vector<16x32xf32>
    %cst_186 = arith.constant dense<0.000000e+00> : vector<16xf32>
    %502 = vector.multi_reduction <add>, %501, %cst_186 [1] : vector<16x32xf32> to vector<16xf32>
    %503 = vector.shape_cast %502 : vector<16xf32> to vector<16x1xf32>
    %cst_187 = arith.constant 3.200000e+01 : f32
    %504 = vector.broadcast %cst_187 : f32 to vector<16x1xf32>
    %505 = arith.divf %503, %504 : vector<16x1xf32>
    %cst_188 = arith.constant 9.99999974E-6 : f32
    %506 = vector.broadcast %cst_188 : f32 to vector<16x1xf32>
    %507 = arith.addf %505, %506 : vector<16x1xf32>
    %508 = math.rsqrt %507 : vector<16x1xf32>
    %509 = vector.broadcast %508 : vector<16x1xf32> to vector<16x32xf32>
    %510 = arith.mulf %500, %509 : vector<16x32xf32>
    %511 = vector.broadcast %493 : vector<1x32xf32> to vector<16x32xf32>
    %512 = arith.mulf %510, %511 : vector<16x32xf32>
    %513 = vector.broadcast %494 : vector<1x32xf32> to vector<16x32xf32>
    %514 = arith.addf %512, %513 : vector<16x32xf32>
    %c0_189 = arith.constant 0 : index
    %c1920 = arith.constant 1920 : index
    %515 = vector.load %arg5[%c0_189, %c1920] : memref<32x2048xf32, #tpu.memory_space<vmem>>, vector<32x10xf32>
    %c41 = arith.constant 41 : index
    %c0_190 = arith.constant 0 : index
    %516 = vector.load %arg7[%c41, %c0_190] : memref<42x128xf32, #tpu.memory_space<vmem>>, vector<1x10xf32>
    %cst_191 = arith.constant dense<0.000000e+00> : vector<16x10xf32>
    %517 = tpu.matmul %514, %515, %cst_191 {dimension_numbers = #tpu.dot_dimension_numbers<[1], [0], [0], [1], [0, 0, 1, 1], [], []>} : vector<16x32xf32>, vector<32x10xf32>, vector<16x10xf32> -> vector<16x10xf32>
    %518 = vector.broadcast %516 : vector<1x10xf32> to vector<16x10xf32>
    %519 = arith.addf %517, %518 : vector<16x10xf32>
    %520 = vector.extract_strided_slice %519 {offsets = [0, 0], sizes = [8, 10], strides = [1, 1]} : vector<16x10xf32> to vector<8x10xf32>
    %c0_192 = arith.constant 0 : index
    %c0_193 = arith.constant 0 : index
    %c0_194 = arith.constant 0 : index
    %521 = vector.load %arg8[%c0_192, %c0_193, %c0_194] : memref<8x2x10xf32, #tpu.memory_space<vmem>>, vector<8x1x10xf32>
    %522 = vector.shape_cast %521 : vector<8x1x10xf32> to vector<8x10xf32>
    %523 = vector.shape_cast %520 : vector<8x10xf32> to vector<8x1x10xf32>
    tpu.vector_store %arg8[%c0_192, %c0_193, %c0_194], %523 {strides = array<i32>} : memref<8x2x10xf32, #tpu.memory_space<vmem>>, vector<8x1x10xf32>,
    %524 = vector.extract_strided_slice %519 {offsets = [8, 0], sizes = [8, 10], strides = [1, 1]} : vector<16x10xf32> to vector<8x10xf32>
    %c0_195 = arith.constant 0 : index
    %c1_196 = arith.constant 1 : index
    %c0_197 = arith.constant 0 : index
    %525 = vector.load %arg8[%c0_195, %c1_196, %c0_197] : memref<8x2x10xf32, #tpu.memory_space<vmem>>, vector<8x1x10xf32>
    %526 = vector.shape_cast %525 : vector<8x1x10xf32> to vector<8x10xf32>
    %527 = vector.shape_cast %524 : vector<8x10xf32> to vector<8x1x10xf32>
    tpu.vector_store %arg8[%c0_195, %c1_196, %c0_197], %527 {strides = array<i32>} : memref<8x2x10xf32, #tpu.memory_space<vmem>>, vector<8x1x10xf32>,
    return
  }
}

</mosaic_0001>

<bundles_post_ra>
// kernel: transformer_forward_fused.1
= control target key start
LH: loop header
LB: loop body
LE: loop exit
PB: predicated region body
PF: predicated region fallthrough
CT: control target
= control target key end

     0   :  { %vm88_vm0 = vcmask 1041409   ;;  %vm91_vm1 = vcmask 1042434   ;;  %vm94_vm2 = vcmask 1043459   ;;  %vm97_vm3 = vcmask 1044484   ;;  %s6515_s0 = inlined_call_operand.vmem [shape: s32[2,8], index: 0, kind: input, shape index: {}]   ;;  %s6516_s1 = inlined_call_operand.vmem [shape: s32[16,1], index: 1, kind: input, shape index: {}]   ;;  %s6517_s2 = inlined_call_operand.vmem [shape: f32[8,2,32], index: 2, kind: input, shape index: {}]   ;;  %s6518_s3 = inlined_call_operand.vmem [shape: f32[2048,32], index: 3, kind: input, shape index: {}]   ;;  %s6519_s4 = inlined_call_operand.vmem [shape: f32[10,32], index: 4, kind: input, shape index: {}]   ;;  %s6520_s5 = inlined_call_operand.vmem [shape: f32[32,2048], index: 5, kind: input, shape index: {}]   ;;  %s6521_s6 = inlined_call_operand.vmem [shape: f32[128,512], index: 6, kind: input, shape index: {}]   ;;  %s6522_s7 = inlined_call_operand.vmem [shape: f32[42,128], index: 7, kind: input, shape index: {}]   ;;  %s6523_s8 = inlined_call_operand.hbm [shape: f32[8,2,10], index: 8, kind: output, shape index: {}]  }
   0x1   :  { %v132_v0 = vld [vmem:[%s6520_s5] sm:$0xff]  ;;  %v35_v11 = vld [vmem:[%s6517_s2 + $0x8] sm:$0x1]  ;;  %v36_v12 = vld [vmem:[%s6517_s2 + $0xa] sm:$0x1]  ;;  %vm100_vm4 = vcmask 1045509  }
   0x2   :  { %v133_v1 = vld [vmem:[%s6520_s5 + $0x80] sm:$0xff]  ;;  %v37_v13 = vld [vmem:[%s6517_s2 + $0xc] sm:$0x1]  ;;  %v38_v15 = vld [vmem:[%s6517_s2 + $0xe] sm:$0x1]  ;;  %vm103_vm5 = vcmask 1046534  }
   0x3   :  { %v134_v2 = vld [vmem:[%s6520_s5 + $0x100] sm:$0xff]  ;;  %v5127_v3 = vpack.c.bf16 %v133_v1, %v132_v0  ;;  %v67_v34 = vld [vmem:[%s6517_s2 + $0x9] sm:$0x1]  ;;  %v68_v35 = vld [vmem:[%s6517_s2 + $0xb] sm:$0x1]  ;;  %vm106_vm6 = vcmask 1047559  }
   0x4   :  { %v135_v4 = vld [vmem:[%s6520_s5 + $0x180] sm:$0xff]  ;;  %v69_v39 = vld [vmem:[%s6517_s2 + $0xd] sm:$0x1]  ;;  %v70_v44 = vld [vmem:[%s6517_s2 + $0xf] sm:$0x1] }
   0x5   :  { %v30_v5 = vld [vmem:[%s6518_s3] sm:$0xff]  ;;  %v5131_v7 = vpack.c.bf16 %v135_v4, %v134_v2  ;;  %5128 = vmatprep.subr.bf16.mxu0 %v5127_v3 }
   0x6   :  { %v31_v6 = vld [vmem:[%s6517_s2] sm:$0x1]  ;;  %v32_v8 = vld [vmem:[%s6517_s2 + $0x2] sm:$0x1]  ;;  %v33_v9 = vld [vmem:[%s6517_s2 + $0x4] sm:$0x1]  ;;  %5130 = vmatpush3.bf16.msra.mxu0 %v5127_v3 }
   0x7   :  { %v34_v10 = vld [vmem:[%s6517_s2 + $0x6] sm:$0x1]  ;;  %v55_v14 = vadd.f32 %v31_v6, %v30_v5  ;;  %v40_v16 = vrot.slane %v30_v5, 1  ;;  %v41_v17 = vrot.slane %v30_v5, 2  ;;  %v42_v18 = vrot.slane %v30_v5, 3  ;;  %5132 = vmatprep.subr.bf16.mxu0 %v5131_v7 }
   0x8   :  { %v43_v19 = vrot.slane %v30_v5, 4  ;;  %v44_v20 = vrot.slane %v30_v5, 5  ;;  %v45_v21 = vrot.slane %v30_v5, 6  ;;  %v46_v22 = vrot.slane %v30_v5, 7  ;;  %v63_v27 = vld [vmem:[%s6517_s2 + $0x1] sm:$0x1] }
   0x9   :  { %v56_v23 = vadd.f32 %v40_v16, %v32_v8  ;;  %v57_v24 = vadd.f32 %v41_v17, %v33_v9  ;;  %v58_v25 = vadd.f32 %v42_v18, %v34_v10  ;;  %v64_v28 = vld [vmem:[%s6517_s2 + $0x3] sm:$0x1]  ;;  %v65_v29 = vld [vmem:[%s6517_s2 + $0x5] sm:$0x1]  ;;  %v66_v33 = vld [vmem:[%s6517_s2 + $0x7] sm:$0x1]  ;;  %v71_v46 = vadd.f32 %v63_v27, %v30_v5 }
   0xa   :  { %v59_v26 = vadd.f32 %v43_v19, %v35_v11  ;;  %v60_v30 = vadd.f32 %v44_v20, %v36_v12  ;;  %v61_v31 = vadd.f32 %v45_v21, %v37_v13  ;;  %v62_v32 = vadd.f32 %v46_v22, %v38_v15  ;;  %5134 = vmatpush3.bf16.msra.mxu0 %v5131_v7 }
   0xb   :  { %v87_v36 = vrot.slane %v56_v23, 7  ;;  %v90_v37 = vrot.slane %v57_v24, 6  ;;  %v93_v38 = vrot.slane %v58_v25, 5  ;;  %v72_v47 = vadd.f32 %v64_v28, %v40_v16 }
   0xc   :  { %v96_v40 = vrot.slane %v59_v26, 4  ;;  %v99_v41 = vrot.slane %v60_v30, 3  ;;  %v102_v42 = vrot.slane %v61_v31, 2  ;;  %v105_v43 = vrot.slane %v62_v32, 1 }
   0xd   :  { %v89_v45 = vsel %vm88_vm0, %v87_v36, %v55_v14  ;;  %v73_v48 = vadd.f32 %v65_v29, %v41_v17 }
   0xe   :  { %13 = vsyncpa [#allocation3], 0  ;;  %v92_v49 = vsel %vm91_vm1, %v90_v37, %v89_v45  ;;  %v74_v50 = vadd.f32 %v66_v33, %v42_v18  ;;  %v75_v51 = vadd.f32 %v67_v34, %v43_v19  ;;  %v76_v52 = vadd.f32 %v68_v35, %v44_v20  ;;  %v4383_v11 = vld [vmem:[%s6522_s7] ss:$0 sm:$0xff]  ;;  %s5515_s26 = smov 96   ;;  %s5516_s27 = smov 64  }
   0xf   :  { %v95_v53 = vsel %vm94_vm2, %v93_v38, %v92_v49  ;;  %v77_v54 = vadd.f32 %v69_v39, %v45_v21  ;;  %v78_v55 = vadd.f32 %v70_v44, %v46_v22  ;;  %v117_v56 = vrot.slane %v72_v47, 7  ;;  %v136_v36 = vld [vmem:[%s6520_s5 + $0x8] sm:$0xff] }
  0x10   :  { %v98_v57 = vsel %vm97_vm3, %v96_v40, %v95_v53  ;;  %v119_v58 = vrot.slane %v73_v48, 6  ;;  %v121_v59 = vrot.slane %v74_v50, 5  ;;  %v123_v60 = vrot.slane %v75_v51, 4  ;;  %v137_v37 = vld [vmem:[%s6520_s5 + $0x88] sm:$0xff] }
  0x11   :  { %v101_v61 = vsel %vm100_vm4, %v99_v41, %v98_v57  ;;  %vm172_vm7 = vcmask 261120   ;;  %v118_v62 = vsel %vm88_vm0, %v117_v56, %v71_v46  ;;  %v125_v63 = vrot.slane %v76_v52, 3  ;;  %v138_v39 = vld [vmem:[%s6520_s5 + $0x108] sm:$0xff] }
  0x12   :  { %v104_v0 = vsel %vm103_vm5, %v102_v42, %v101_v61  ;;  %v120_v1 = vsel %vm91_vm1, %v119_v58, %v118_v62  ;;  %v127_v2 = vrot.slane %v77_v54, 2  ;;  %v129_v5 = vrot.slane %v78_v55, 1  ;;  %v139_v40 = vld [vmem:[%s6520_s5 + $0x188] sm:$0xff]  ;;  %v4394_v54 = vld [vmem:[%s6522_s7 + $0x1] ss:$0 sm:$0xff] }
  0x13   :  { %v5640_v3 = vsel %vm106_vm6, %v105_v43, %v104_v0  ;;  %v122_v4 = vsel %vm94_vm2, %v121_v59, %v120_v1  ;;  %v5513_v10 = vmov 0.0   ;;  %vm5514_vm8 = vmmov 0  }
  0x14   :  { %4712 = vmatprep.mubr.msk.f32.mxu0 %vm172_vm7, %v5640_v3  ;;  %v124_v6 = vsel %vm97_vm3, %v123_v60, %v122_v4  ;;  %4715 = vmatprep.subr.mxu1 %v5513_v10  ;;  %vm406_vm9 = vcmask 64512   ;;  %v5135_v38 = vpack.c.bf16 %v137_v37, %v136_v36  ;;  %v5139_v41 = vpack.c.bf16 %v139_v40, %v138_v39  ;;  %v148_v36 = vld [vmem:[%s6521_s6 + $0x80] sm:$0xff] }
  0x15   :  { %v126_v7 = vsel %vm100_vm4, %v125_v63, %v124_v6  ;;  %4725 = vmatprep.subr.mxu0 %v5513_v10  ;;  %4717 = vmatprep.mubr.msk.f32.mxu1 %vm5514_vm8, %v5513_v10  ;;  %v149_v37 = vld [vmem:[%s6521_s6 + $0xa0] sm:$0xff]  ;;  %vm2550_vm10 = vcmask 1041408   ;;  %vm5518_vm11 = vmmov 1   ;;  %vm2543_vm15 = vcmask 80896  }
  0x16   :  { %v128_v8 = vsel %vm103_vm5, %v127_v2, %v126_v7  ;;  %v140_v7 = vld [vmem:[%s6520_s5 + $0x10] sm:$0xff]  ;;  %v150_v39 = vld [vmem:[%s6521_s6 + $0xc0] sm:$0xff]  ;;  %vm6061_vm12 = vmpackc.low %vm2550_vm10, %vm5518_vm11  ;;  %vm4292_vm3 = vcmask 73728  }
  0x17   :  { %v5649_v9 = vsel %vm106_vm6, %v129_v5, %v128_v8  ;;  %v141_v8 = vld [vmem:[%s6520_s5 + $0x90] sm:$0xff]  ;;  %v151_v40 = vld [vmem:[%s6521_s6 + $0xe0] sm:$0xff] }
  0x18   :  { %4713 = vmatmul.mubr.msk.f32.vlgmr.msra.gmra.mrb[0].mxu0 %vm172_vm7, %v5649_v9 }
  0x19   :  { %4727 = vmatprep.mubr.msk.f32.mxu0 %vm5514_vm8, %v5513_v10 }
  0xeb   :  { %v4714_v12 = vpop.f32.mrb[0].mxu0 }
  0xec   :  { %v243_v13 = vpop.f32.mrb[1].mxu0  ;;  %v249_v15 = vadd.f32 %v4714_v12, %v4383_v11  ;;  %v143_v12 = vld [vmem:[%s6520_s5 + $0x190] sm:$0xff] }
  0xed   :  { %v244_v14 = vadd.f32 %v4383_v11, %v243_v13  ;;  %v142_v11 = vld [vmem:[%s6520_s5 + $0x110] sm:$0xff] }
  0xee   :  { %v5147_v13 = vpack.c.bf16 %v143_v12, %v142_v11 }
  0xef   :  { %253 = vrot.lane.b32.xlu0 %v244_v14, %s5515_s26 }
  0xf3   :  { %330 = vrot.lane.b32.xlu0 %v249_v15, %s5515_s26 }
  0xf7   :  { %425 = vrot.lane.b32.xlu0 %v244_v14, %s5516_s27 }
 0x161   :  { %v254_v16 = vpop.permute.xlu0 %253 }
 0x162   :  { %4716 = vmatpush3.xpose.msk.msra.mxu1 %vm172_vm7, %v254_v16 }
 0x163   :  { %4720 = vmatprep.subr.mxu1 %v5513_v10 }
 0x165   :  { %4718 = vmatmul.mubr.msk.f32.vlgmr.msra.gmra.mrb[0].mxu1 %vm172_vm7, %v244_v14  ;;  %v331_v17 = vpop.permute.xlu0 %330  ;;  %v144_v14 = vld [vmem:[%s6521_s6] sm:$0xff] }
 0x166   :  { %4721 = vmatpush3.xpose.msk.msra.mxu1 %vm172_vm7, %v331_v17  ;;  %4722 = vmatprep.mubr.msk.f32.mxu1 %vm5514_vm8, %v5513_v10 }
 0x167   :  { %4730 = vmatprep.subr.mxu1 %v5513_v10 }
 0x169   :  { %4723 = vmatmul.mubr.msk.f32.vlgmr.msra.gmra.mrb[2].mxu1 %vm172_vm7, %v249_v15  ;;  %v426_v18 = vpop.permute.xlu0 %425 }
 0x16a   :  { %4726 = vmatpush3.msra.mxu0 %v426_v18  ;;  %4732 = vmatprep.mubr.msk.f32.mxu1 %vm5514_vm8, %v5513_v10 }
 0x16b   :  { %5136 = vmatprep.subr.bf16.mxu0 %v5135_v38 }
 0x238   :  { %v325_v19 = vpop.f32.mrb[0].mxu1 }
 0x239   :  { %v4719_v20 = vpop.f32.mrb[1].mxu1  ;;  %v407_v21 = vsel %vm406_vm9, %v325_v19, -inf }
 0x23a   :  { %408 = vmax.xlane.f32.xlu1 %v407_v21 }
 0x23c   :  { %v402_v22 = vpop.f32.mrb[2].mxu1 }
 0x23d   :  { %v4724_v23 = vpop.f32.mrb[3].mxu1  ;;  %v410_v24 = vsel %vm406_vm9, %v402_v22, -inf }
 0x23e   :  { %411 = vmax.xlane.f32.xlu1 %v410_v24  ;;  %v4395_v24 = vld [vmem:[%s6522_s7 + $0x2] ss:$0 sm:$0xff] }
 0x24f   :  { %501 = vrot.lane.b32.xlu1 %v249_v15, %s5516_s27  ;;  %v145_v15 = vld [vmem:[%s6521_s6 + $0x20] sm:$0xff] }
 0x250   :  { %v5151_v16 = vpack.c.bf16 %v145_v15, %v144_v14 }
 0x2c7   :  { %v409_v25 = vpop.xlane.xlu1 %408 }
 0x2c8   :  { %v413_v26 = vsub.f32 %v325_v19, %v409_v25 }
 0x2ca   :  { %v415_v27 = vmul.f32 1.442695, %v413_v26  ;;  %v4396_v26 = vld [vmem:[%s6522_s7 + $0x3] ss:$0 sm:$0xff] }
 0x2cb   :  { %v412_v28 = vpop.xlane.xlu1 %411 }
 0x2cc   :  { %5401 = vpow2.f32 %v415_v27  ;;  %v414_v29 = vsub.f32 %v402_v22, %v412_v28 }
 0x2ce   :  { %v417_v30 = vmul.f32 1.442695, %v414_v29 }
 0x2cf   :  { %v502_v31 = vpop.permute.xlu1 %501 }
 0x2d0   :  { %5403 = vpow2.f32 %v417_v30  ;;  %4731 = vmatpush3.msra.mxu1 %v502_v31  ;;  %v146_v31 = vld [vmem:[%s6521_s6 + $0x40] sm:$0xff] }
 0x2d6   :  { %v5402_v32 = vpop.eup %5401 }
 0x2d7   :  { %4728 = vmatmul.mubr.msk.f32.vlgmr.msra.gmra.mrb[2].mxu0 %vm406_vm9, %v5402_v32  ;;  %v419_v33 = vsel %vm406_vm9, %v5402_v32, 0.0  ;;  %v147_v32 = vld [vmem:[%s6521_s6 + $0x60] sm:$0xff] }
 0x2d8   :  { %420 = vadd.xlane.f32.xlu0 %v419_v33  ;;  %5138 = vmatpush3.bf16.msra.mxu0 %v5135_v38  ;;  %v5159_v38 = vpack.c.bf16 %v149_v37, %v148_v36 }
 0x2d9   :  { %5140 = vmatprep.subr.bf16.mxu0 %v5139_v41 }
 0x2da   :  { %v5404_v34 = vpop.eup %5403 }
 0x2db   :  { %4733 = vmatmul.mubr.msk.f32.vlgmr.msra.gmra.mrb[4].mxu1 %vm406_vm9, %v5404_v34  ;;  %v422_v35 = vsel %vm406_vm9, %v5404_v34, 0.0 }
 0x2dc   :  { %423 = vadd.xlane.f32.xlu1 %v422_v35  ;;  %5142 = vmatpush3.bf16.msra.mxu0 %v5139_v41  ;;  %v5155_v35 = vpack.c.bf16 %v147_v32, %v146_v31  ;;  %v5163_v41 = vpack.c.bf16 %v151_v40, %v150_v39  ;;  %v4403_v39 = vld [vmem:[%s6522_s7 + $0x8] ss:$0 sm:$0xff] }
 0x365   :  { %v421_v42 = vpop.xlane.xlu0 %420 }
 0x366   :  { %5405 = vrcp.f32 %v421_v42  ;;  %v152_v42 = vld [vmem:[%s6521_s6 + $0x100] sm:$0xff] }
 0x369   :  { %v424_v43 = vpop.xlane.xlu1 %423 }
 0x36a   :  { %5407 = vrcp.f32 %v424_v43  ;;  %v153_v43 = vld [vmem:[%s6521_s6 + $0x120] sm:$0xff] }
 0x370   :  { %v5406_v44 = vpop.eup %5405 }
 0x374   :  { %v5408_v48 = vpop.eup %5407 }
 0x3aa   :  { %v497_v45 = vpop.f32.mrb[2].mxu0 }
 0x3ab   :  { %v579_v46 = vmul.f32 %v5406_v44, %v497_v45  ;;  %v4729_v47 = vpop.f32.mrb[3].mxu0  ;;  %v5167_v44 = vpack.c.bf16 %v153_v43, %v152_v42  ;;  %v154_v45 = vld [vmem:[%s6521_s6 + $0x140] sm:$0xff] }
 0x3ad   :  { %4743 = vmatprep.mubr.msk.f32.mxu0 %vm172_vm7, %v579_v46  ;;  %v155_v46 = vld [vmem:[%s6521_s6 + $0x160] sm:$0xff] }
 0x3ae   :  { %v573_v49 = vpop.f32.mrb[4].mxu1  ;;  %v5171_v47 = vpack.c.bf16 %v155_v46, %v154_v45 }
 0x3af   :  { %v580_v50 = vmul.f32 %v5408_v48, %v573_v49  ;;  %v4734_v51 = vpop.f32.mrb[5].mxu1  ;;  %v156_v48 = vld [vmem:[%s6521_s6 + $0x180] sm:$0xff] }
 0x3b0   :  { %v157_v49 = vld [vmem:[%s6521_s6 + $0x1a0] sm:$0xff] }
 0x3b1   :  { %4744 = vmatmul.mubr.msk.f32.vlgmr.msra.gmra.mrb[4].mxu0 %vm172_vm7, %v580_v50  ;;  %v5175_v50 = vpack.c.bf16 %v157_v49, %v156_v48  ;;  %v158_v51 = vld [vmem:[%s6521_s6 + $0x1c0] sm:$0xff] }
 0x484   :  { %v4745_v52 = vpop.f32.mrb[4].mxu0 }
 0x485   :  { %v653_v53 = vpop.f32.mrb[5].mxu0  ;;  %v663_v55 = vadd.f32 %v4745_v52, %v5649_v9  ;;  %v5143_v9 = vpack.c.bf16 %v141_v8, %v140_v7  ;;  %v159_v52 = vld [vmem:[%s6521_s6 + $0x1e0] sm:$0xff] }
 0x486   :  { %v662_v56 = vadd.f32 %v653_v53, %v5640_v3  ;;  %v5179_v53 = vpack.c.bf16 %v159_v52, %v158_v51 }
 0x487   :  { %v669_v59 = vadd.f32 %v4394_v54, %v663_v55  ;;  %5144 = vmatprep.subr.bf16.mxu0 %v5143_v9 }
 0x488   :  { %v668_v57 = vadd.f32 %v4394_v54, %v662_v56  ;;  %5146 = vmatpush3.bf16.msra.mxu0 %v5143_v9  ;;  %v4397_v54 = vld [vmem:[%s6522_s7 + $0x4] ss:$0 sm:$0xff] }
 0x489   :  { %v673_v60 = vsel %vm172_vm7, %v669_v59, 0.0  ;;  %5148 = vmatprep.subr.bf16.mxu0 %v5147_v13 }
 0x48a   :  { %v670_v58 = vsel %vm172_vm7, %v668_v57, 0.0 }
 0x48b   :  { %671 = vadd.xlane.f32.xlu0 %v670_v58 }
 0x48c   :  { %5150 = vmatpush3.bf16.msra.mxu0 %v5147_v13 }
 0x48d   :  { %5152 = vmatprep.subr.bf16.mxu0 %v5151_v16 }
 0x48f   :  { %674 = vadd.xlane.f32.xlu0 %v673_v60 }
 0x518   :  { %v672_v61 = vpop.xlane.xlu0 %671 }
 0x519   :  { %v677_v62 = vmul.f32 0.03125, %v672_v61 }
 0x51b   :  { %v679_v63 = vsub.f32 %v668_v57, %v677_v62  ;;  %v4400_v62 = vld [vmem:[%s6522_s7 + $0x5] ss:$0 sm:$0xff] }
 0x51c   :  { %v675_v0 = vpop.xlane.xlu0 %674 }
 0x51d   :  { %v678_v1 = vmul.f32 0.03125, %v675_v0  ;;  %v681_v2 = vmul.f32 %v679_v63, %v679_v63 }
 0x51f   :  { %v680_v4 = vsub.f32 %v669_v59, %v678_v1  ;;  %v683_v5 = vsel %vm172_vm7, %v681_v2, 0.0 }
 0x520   :  { %684 = vadd.xlane.f32.xlu0 %v683_v5 }
 0x521   :  { %v682_v6 = vmul.f32 %v680_v4, %v680_v4 }
 0x523   :  { %v686_v3 = vsel %vm172_vm7, %v682_v6, 0.0 }
 0x524   :  { %687 = vadd.xlane.f32.xlu0 %v686_v3 }
 0x5ad   :  { %v685_v17 = vpop.xlane.xlu0 %684 }
 0x5ae   :  { %v689_v18 = vmul.f32 0.03125, %v685_v17  ;;  %v917_v17 = vld [vmem:[%s6520_s5 + $0x18] sm:$0xff] }
 0x5b0   :  { %v691_v19 = vadd.f32 1e-05, %v689_v18  ;;  %v918_v18 = vld [vmem:[%s6520_s5 + $0x98] sm:$0xff] }
 0x5b1   :  { %v688_v20 = vpop.xlane.xlu0 %687 }
 0x5b2   :  { %5409 = vrsqrt.f32 %v691_v19  ;;  %v690_v21 = vmul.f32 0.03125, %v688_v20  ;;  %v5183_v19 = vpack.c.bf16 %v918_v18, %v917_v17  ;;  %v919_v20 = vld [vmem:[%s6520_s5 + $0x118] sm:$0xff]  ;;  %v4414_v18 = vld [vmem:[%s6522_s7 + $0x9] ss:$0 sm:$0xff] }
 0x5b4   :  { %v692_v22 = vadd.f32 1e-05, %v690_v21  ;;  %5184 = vmatprep.subr.bf16.mxu1 %v5183_v19  ;;  %v920_v21 = vld [vmem:[%s6520_s5 + $0x198] sm:$0xff] }
 0x5b5   :  { %5186 = vmatpush3.bf16.msra.mxu1 %v5183_v19 }
 0x5b6   :  { %5411 = vrsqrt.f32 %v692_v22  ;;  %v5187_v22 = vpack.c.bf16 %v920_v21, %v919_v20 }
 0x5b8   :  { %5188 = vmatprep.subr.bf16.mxu1 %v5187_v22 }
 0x5b9   :  { %5190 = vmatpush3.bf16.msra.mxu1 %v5187_v22 }
 0x5ba   :  { %4803 = vmatprep.subr.mxu1 %v5513_v10 }
 0x5bc   :  { %v5410_v23 = vpop.eup %5409 }
 0x5bd   :  { %v695_v25 = vmul.f32 %v5410_v23, %v679_v63 }
 0x5bf   :  { %v701_v27 = vmul.f32 %v4395_v24, %v695_v25 }
 0x5c0   :  { %v5412_v28 = vpop.eup %5411 }
 0x5c1   :  { %v696_v29 = vmul.f32 %v5412_v28, %v680_v4  ;;  %v707_v30 = vadd.f32 %v4396_v26, %v701_v27 }
 0x5c3   :  { %v702_v33 = vmul.f32 %v4395_v24, %v696_v29  ;;  %4754 = vmatprep.mubr.msk.f32.mxu0 %vm172_vm7, %v707_v30 }
 0x5c5   :  { %v708_v34 = vadd.f32 %v4396_v26, %v702_v33 }
 0x5c7   :  { %4755 = vmatmul.mubr.msk.f32.vlgmr.msra.gmra.mrb[6].mxu0 %vm172_vm7, %v708_v34 }
 0x5c8   :  { %5154 = vmatpush3.bf16.msra.mxu0 %v5151_v16 }
 0x5c9   :  { %5156 = vmatprep.subr.bf16.mxu0 %v5155_v35 }
 0x5cc   :  { %5158 = vmatpush3.bf16.msra.mxu0 %v5155_v35 }
 0x5cd   :  { %5160 = vmatprep.subr.bf16.mxu0 %v5159_v38 }
 0x5d0   :  { %5162 = vmatpush3.bf16.msra.mxu0 %v5159_v38 }
 0x5d1   :  { %5164 = vmatprep.subr.bf16.mxu0 %v5163_v41 }
 0x5d4   :  { %5166 = vmatpush3.bf16.msra.mxu0 %v5163_v41 }
 0x5d5   :  { %5168 = vmatprep.subr.bf16.mxu0 %v5167_v44 }
 0x5d8   :  { %5170 = vmatpush3.bf16.msra.mxu0 %v5167_v44 }
 0x5d9   :  { %5172 = vmatprep.subr.bf16.mxu0 %v5171_v47 }
 0x5dc   :  { %5174 = vmatpush3.bf16.msra.mxu0 %v5171_v47 }
 0x5dd   :  { %5176 = vmatprep.subr.bf16.mxu0 %v5175_v50 }
 0x5e0   :  { %5178 = vmatpush3.bf16.msra.mxu0 %v5175_v50 }
 0x5e1   :  { %5180 = vmatprep.subr.bf16.mxu0 %v5179_v53 }
 0x5e4   :  { %5182 = vmatpush3.bf16.msra.mxu0 %v5179_v53 }
 0x69a   :  { %v4756_v55 = vpop.f32.mrb[6].mxu0 }
 0x69b   :  { %v791_v56 = vadd.f32 %v4756_v55, %v4397_v54  ;;  %v785_v57 = vpop.f32.mrb[7].mxu0 }
 0x69c   :  { %v786_v58 = vadd.f32 %v4397_v54, %v785_v57 }
 0x69d   :  { %v795_v60 = vmax.f32 %v791_v56, 0.0 }
 0x69e   :  { %v794_v59 = vmax.f32 %v786_v58, 0.0 }
 0x6a0   :  { %4789 = vmatprep.mubr.f32.mxu0 %v794_v59 }
 0x6a1   :  { %4790 = vmatmul.mubr.f32.vlgmr.msra.gmra.mrb[8].mxu0 %v795_v60 }
 0x774   :  { %v4791_v61 = vpop.f32.mrb[8].mxu0 }
 0x775   :  { %v872_v63 = vadd.f32 %v4791_v61, %v708_v34  ;;  %v862_v0 = vpop.f32.mrb[9].mxu0  ;;  %v4402_v34 = vld [vmem:[%s6522_s7 + $0x7] ss:$0 sm:$0xff] }
 0x776   :  { %v871_v1 = vadd.f32 %v862_v0, %v707_v30  ;;  %v4401_v30 = vld [vmem:[%s6522_s7 + $0x6] ss:$0 sm:$0xff] }
 0x777   :  { %v878_v2 = vadd.f32 %v4400_v62, %v872_v63  ;;  %v921_v0 = vld [vmem:[%s6520_s5 + $0x20] sm:$0xff] }
 0x778   :  { %v877_v4 = vadd.f32 %v4400_v62, %v871_v1  ;;  %v922_v1 = vld [vmem:[%s6520_s5 + $0xa0] sm:$0xff] }
 0x779   :  { %v882_v5 = vsel %vm172_vm7, %v878_v2, 0.0 }
 0x77a   :  { %883 = vadd.xlane.f32.xlu1 %v882_v5  ;;  %v879_v6 = vsel %vm172_vm7, %v877_v4, 0.0  ;;  %v924_v5 = vld [vmem:[%s6520_s5 + $0x1a0] sm:$0xff] }
 0x77b   :  { %880 = vadd.xlane.f32.xlu0 %v879_v6 }
 0x807   :  { %v884_v3 = vpop.xlane.xlu1 %883 }
 0x808   :  { %v886_v7 = vmul.f32 0.03125, %v884_v3  ;;  %v881_v8 = vpop.xlane.xlu0 %880 }
 0x809   :  { %v885_v9 = vmul.f32 0.03125, %v881_v8 }
 0x80a   :  { %v888_v11 = vsub.f32 %v878_v2, %v886_v7  ;;  %v5191_v2 = vpack.c.bf16 %v922_v1, %v921_v0 }
 0x80b   :  { %v887_v12 = vsub.f32 %v877_v4, %v885_v9  ;;  %v923_v4 = vld [vmem:[%s6520_s5 + $0x120] sm:$0xff] }
 0x80c   :  { %v890_v13 = vmul.f32 %v888_v11, %v888_v11  ;;  %v5195_v6 = vpack.c.bf16 %v924_v5, %v923_v4 }
 0x80d   :  { %v889_v14 = vmul.f32 %v887_v12, %v887_v12 }
 0x80e   :  { %v894_v15 = vsel %vm172_vm7, %v890_v13, 0.0 }
 0x80f   :  { %895 = vadd.xlane.f32.xlu1 %v894_v15  ;;  %v891_v16 = vsel %vm172_vm7, %v889_v14, 0.0 }
 0x810   :  { %892 = vadd.xlane.f32.xlu0 %v891_v16 }
 0x89c   :  { %v896_v23 = vpop.xlane.xlu1 %895 }
 0x89d   :  { %v898_v24 = vmul.f32 0.03125, %v896_v23  ;;  %v893_v25 = vpop.xlane.xlu0 %892 }
 0x89e   :  { %v897_v26 = vmul.f32 0.03125, %v893_v25 }
 0x89f   :  { %v900_v27 = vadd.f32 1e-05, %v898_v24 }
 0x8a0   :  { %v899_v28 = vadd.f32 1e-05, %v897_v26 }
 0x8a1   :  { %5413 = vrsqrt.f32 %v900_v27 }
 0x8a2   :  { %5415 = vrsqrt.f32 %v899_v28 }
 0x8ab   :  { %v5414_v29 = vpop.eup %5413 }
 0x8ac   :  { %v5416_v31 = vpop.eup %5415  ;;  %v904_v32 = vmul.f32 %v5414_v29, %v888_v11 }
 0x8ad   :  { %v903_v33 = vmul.f32 %v5416_v31, %v887_v12 }
 0x8ae   :  { %v910_v35 = vmul.f32 %v4401_v30, %v904_v32 }
 0x8af   :  { %v909_v36 = vmul.f32 %v4401_v30, %v903_v33 }
 0x8b0   :  { %v5804_v38 = vadd.f32 %v4402_v34, %v910_v35 }
 0x8b1   :  { %v5802_v37 = vadd.f32 %v4402_v34, %v909_v36  ;;  %v925_v36 = vld [vmem:[%s6520_s5 + $0x28] sm:$0xff] }
 0x8b3   :  { %4800 = vmatprep.mubr.msk.f32.mxu1 %vm172_vm7, %v5802_v37 }
 0x8b4   :  { %4801 = vmatmul.mubr.msk.f32.vlgmr.msra.gmra.mrb[6].mxu1 %vm172_vm7, %v5804_v38 }
 0x8b5   :  { %4805 = vmatprep.mubr.msk.f32.mxu1 %vm5514_vm8, %v5513_v10 }
 0x987   :  { %v4802_v40 = vpop.f32.mrb[6].mxu1 }
 0x988   :  { %v1035_v41 = vadd.f32 %v4802_v40, %v4403_v39  ;;  %v1029_v42 = vpop.f32.mrb[7].mxu1  ;;  %v928_v40 = vld [vmem:[%s6520_s5 + $0x1a8] sm:$0xff] }
 0x989   :  { %v1030_v43 = vadd.f32 %v4403_v39, %v1029_v42  ;;  %v927_v39 = vld [vmem:[%s6520_s5 + $0x128] sm:$0xff] }
 0x98a   :  { %1116 = vrot.lane.b32.xlu1 %v1035_v41, %s5515_s26  ;;  %v929_v42 = vld [vmem:[%s6521_s6 + $0x8] sm:$0xff] }
 0x98b   :  { %1039 = vrot.lane.b32.xlu0 %v1030_v43, %s5515_s26 }
 0x9fc   :  { %v1117_v45 = vpop.permute.xlu1 %1116 }
 0x9fd   :  { %v1040_v44 = vpop.permute.xlu0 %1039 }
 0x9fe   :  { %4804 = vmatpush3.xpose.msk.msra.mxu1 %vm172_vm7, %v1040_v44  ;;  %v931_v44 = vld [vmem:[%s6521_s6 + $0x48] sm:$0xff] }
 0x9ff   :  { %4808 = vmatprep.subr.mxu1 %v5513_v10 }
 0xa01   :  { %4806 = vmatmul.mubr.msk.f32.vlgmr.msra.gmra.mrb[8].mxu1 %vm172_vm7, %v1030_v43 }
 0xa02   :  { %4809 = vmatpush3.xpose.msk.msra.mxu1 %vm172_vm7, %v1117_v45  ;;  %4810 = vmatprep.mubr.msk.f32.mxu1 %vm5514_vm8, %v5513_v10 }
 0xa03   :  { %4813 = vmatprep.subr.mxu1 %v5513_v10 }
 0xa05   :  { %4811 = vmatmul.mubr.msk.f32.vlgmr.msra.gmra.mrb[10].mxu1 %vm172_vm7, %v1035_v41 }
 0xa06   :  { %4815 = vmatprep.mubr.msk.f32.mxu1 %vm5514_vm8, %v5513_v10 }
 0xad4   :  { %v1111_v46 = vpop.f32.mrb[8].mxu1 }
 0xad5   :  { %v4807_v47 = vpop.f32.mrb[9].mxu1  ;;  %v1192_v48 = vsel %vm406_vm9, %v1111_v46, -inf }
 0xad6   :  { %1193 = vmax.xlane.f32.xlu1 %v1192_v48  ;;  %v933_v48 = vld [vmem:[%s6521_s6 + $0x88] sm:$0xff] }
 0xad8   :  { %v1188_v49 = vpop.f32.mrb[10].mxu1 }
 0xad9   :  { %v4812_v50 = vpop.f32.mrb[11].mxu1  ;;  %v1195_v51 = vsel %vm406_vm9, %v1188_v49, -inf }
 0xada   :  { %1196 = vmax.xlane.f32.xlu0 %v1195_v51  ;;  %v935_v51 = vld [vmem:[%s6521_s6 + $0xc8] sm:$0xff] }
 0xae7   :  { %1286 = vrot.lane.b32.xlu1 %v1035_v41, %s5516_s27  ;;  %v5203_v41 = vpack.c.bf16 %v928_v40, %v927_v39 }
 0xaf0   :  { %1210 = vrot.lane.b32.xlu0 %v1030_v43, %s5516_s27  ;;  %v930_v43 = vld [vmem:[%s6521_s6 + $0x28] sm:$0xff] }
 0xaf1   :  { %v5207_v45 = vpack.c.bf16 %v930_v43, %v929_v42 }
 0xb63   :  { %v1194_v52 = vpop.xlane.xlu1 %1193 }
 0xb64   :  { %v1198_v53 = vsub.f32 %v1111_v46, %v1194_v52  ;;  %v932_v46 = vld [vmem:[%s6521_s6 + $0x68] sm:$0xff] }
 0xb65   :  { %v5211_v47 = vpack.c.bf16 %v932_v46, %v931_v44  ;;  %v936_v52 = vld [vmem:[%s6521_s6 + $0xe8] sm:$0xff]  ;;  %v1702_v46 = vld [vmem:[%s6520_s5 + $0xb0] sm:$0xff] }
 0xb66   :  { %v1200_v54 = vmul.f32 1.442695, %v1198_v53  ;;  %v5219_v53 = vpack.c.bf16 %v936_v52, %v935_v51 }
 0xb67   :  { %v1197_v55 = vpop.xlane.xlu0 %1196  ;;  %v1287_v60 = vpop.permute.xlu1 %1286 }
 0xb68   :  { %5417 = vpow2.f32 %v1200_v54  ;;  %v1199_v56 = vsub.f32 %v1188_v49, %v1197_v55  ;;  %v934_v49 = vld [vmem:[%s6521_s6 + $0xa8] sm:$0xff] }
 0xb69   :  { %v5215_v50 = vpack.c.bf16 %v934_v49, %v933_v48  ;;  %v937_v54 = vld [vmem:[%s6521_s6 + $0x108] sm:$0xff]  ;;  %v1703_v48 = vld [vmem:[%s6520_s5 + $0x130] sm:$0xff] }
 0xb6a   :  { %v1202_v57 = vmul.f32 1.442695, %v1199_v56  ;;  %v938_v55 = vld [vmem:[%s6521_s6 + $0x128] sm:$0xff]  ;;  %v1704_v49 = vld [vmem:[%s6520_s5 + $0x1b0] sm:$0xff] }
 0xb6b   :  { %v1211_v58 = vpop.permute.xlu0 %1210  ;;  %v5223_v56 = vpack.c.bf16 %v938_v55, %v937_v54 }
 0xb6c   :  { %5419 = vpow2.f32 %v1202_v57  ;;  %4814 = vmatpush3.msra.mxu1 %v1211_v58  ;;  %v939_v57 = vld [vmem:[%s6521_s6 + $0x148] sm:$0xff] }
 0xb6d   :  { %4818 = vmatprep.subr.mxu1 %v5513_v10  ;;  %v940_v58 = vld [vmem:[%s6521_s6 + $0x168] sm:$0xff] }
 0xb72   :  { %v5418_v59 = vpop.eup %5417 }
 0xb73   :  { %4816 = vmatmul.mubr.msk.f32.vlgmr.msra.gmra.mrb[12].mxu1 %vm406_vm9, %v5418_v59  ;;  %v1204_v61 = vsel %vm406_vm9, %v5418_v59, 0.0  ;;  %v5227_v59 = vpack.c.bf16 %v940_v58, %v939_v57  ;;  %v4421_v58 = vld [vmem:[%s6522_s7 + $0xe] ss:$0 sm:$0xff] }
 0xb74   :  { %4819 = vmatpush3.msra.mxu1 %v1287_v60  ;;  %1205 = vadd.xlane.f32.xlu1 %v1204_v61  ;;  %v941_v60 = vld [vmem:[%s6521_s6 + $0x188] sm:$0xff] }
 0xb75   :  { %4820 = vmatprep.mubr.msk.f32.mxu1 %vm5514_vm8, %v5513_v10  ;;  %5192 = vmatprep.subr.bf16.mxu1 %v5191_v2  ;;  %v942_v61 = vld [vmem:[%s6521_s6 + $0x1a8] sm:$0xff] }
 0xb76   :  { %v5420_v62 = vpop.eup %5419 }
 0xb77   :  { %4821 = vmatmul.mubr.msk.f32.vlgmr.msra.gmra.mrb[14].mxu1 %vm406_vm9, %v5420_v62  ;;  %v1207_v63 = vsel %vm406_vm9, %v5420_v62, 0.0  ;;  %v5231_v62 = vpack.c.bf16 %v942_v61, %v941_v60 }
 0xb78   :  { %1208 = vadd.xlane.f32.xlu0 %v1207_v63  ;;  %5194 = vmatpush3.bf16.msra.mxu1 %v5191_v2 }
 0xb79   :  { %5196 = vmatprep.subr.bf16.mxu1 %v5195_v6 }
 0xb7c   :  { %5198 = vmatpush3.bf16.msra.mxu1 %v5195_v6 }
 0xb7d   :  { %5208 = vmatprep.subr.bf16.mxu1 %v5207_v45 }
 0xc01   :  { %v1206_v3 = vpop.xlane.xlu1 %1205 }
 0xc02   :  { %5421 = vrcp.f32 %v1206_v3  ;;  %v4415_v3 = vld [vmem:[%s6522_s7 + $0xa] ss:$0 sm:$0xff] }
 0xc05   :  { %v1209_v7 = vpop.xlane.xlu0 %1208 }
 0xc06   :  { %5423 = vrcp.f32 %v1209_v7 }
 0xc0c   :  { %v5422_v8 = vpop.eup %5421 }
 0xc10   :  { %v5424_v13 = vpop.eup %5423 }
 0xc46   :  { %v1282_v9 = vpop.f32.mrb[12].mxu1 }
 0xc47   :  { %v1364_v11 = vmul.f32 %v5422_v8, %v1282_v9  ;;  %v4817_v12 = vpop.f32.mrb[13].mxu1 }
 0xc49   :  { %4831 = vmatprep.mubr.msk.f32.mxu1 %vm172_vm7, %v1364_v11  ;;  %v4416_v11 = vld [vmem:[%s6522_s7 + $0xb] ss:$0 sm:$0xff] }
 0xc4a   :  { %v1358_v14 = vpop.f32.mrb[14].mxu1 }
 0xc4b   :  { %v1365_v15 = vmul.f32 %v5424_v13, %v1358_v14  ;;  %v4822_v16 = vpop.f32.mrb[15].mxu1 }
 0xc4c   :  { %v943_v16 = vld [vmem:[%s6521_s6 + $0x1c8] sm:$0xff] }
 0xc4d   :  { %4832 = vmatmul.mubr.msk.f32.vlgmr.msra.gmra.mrb[16].mxu1 %vm172_vm7, %v1365_v15 }
 0xc4e   :  { %5210 = vmatpush3.bf16.msra.mxu1 %v5207_v45  ;;  %v1701_v45 = vld [vmem:[%s6520_s5 + $0x30] sm:$0xff] }
 0xc4f   :  { %5212 = vmatprep.subr.bf16.mxu1 %v5211_v47 }
 0xc52   :  { %5214 = vmatpush3.bf16.msra.mxu1 %v5211_v47  ;;  %v5239_v47 = vpack.c.bf16 %v1702_v46, %v1701_v45  ;;  %v4434_v46 = vld [vmem:[%s6522_s7 + $0x11] ss:$0 sm:$0xff] }
 0xc53   :  { %5216 = vmatprep.subr.bf16.mxu1 %v5215_v50 }
 0xc56   :  { %5218 = vmatpush3.bf16.msra.mxu1 %v5215_v50  ;;  %v5243_v50 = vpack.c.bf16 %v1704_v49, %v1703_v48 }
 0xc57   :  { %5220 = vmatprep.subr.bf16.mxu1 %v5219_v53 }
 0xc5a   :  { %5222 = vmatpush3.bf16.msra.mxu1 %v5219_v53 }
 0xc5b   :  { %5224 = vmatprep.subr.bf16.mxu1 %v5223_v56 }
 0xc5e   :  { %5226 = vmatpush3.bf16.msra.mxu1 %v5223_v56 }
 0xc5f   :  { %5228 = vmatprep.subr.bf16.mxu1 %v5227_v59 }
 0xc62   :  { %5230 = vmatpush3.bf16.msra.mxu1 %v5227_v59 }
 0xc63   :  { %5232 = vmatprep.subr.bf16.mxu1 %v5231_v62 }
 0xc66   :  { %5234 = vmatpush3.bf16.msra.mxu1 %v5231_v62  ;;  %v4422_v62 = vld [vmem:[%s6522_s7 + $0xf] ss:$0 sm:$0xff] }
 0xd20   :  { %v4833_v17 = vpop.f32.mrb[16].mxu1 }
 0xd21   :  { %v1448_v19 = vadd.f32 %v4833_v17, %v5804_v38  ;;  %v1438_v20 = vpop.f32.mrb[17].mxu1  ;;  %v944_v17 = vld [vmem:[%s6521_s6 + $0x1e8] sm:$0xff] }
 0xd22   :  { %v1447_v21 = vadd.f32 %v1438_v20, %v5802_v37  ;;  %v926_v37 = vld [vmem:[%s6520_s5 + $0xa8] sm:$0xff] }
 0xd23   :  { %v1454_v22 = vadd.f32 %v4414_v18, %v1448_v19  ;;  %v5199_v38 = vpack.c.bf16 %v926_v37, %v925_v36  ;;  %v4417_v19 = vld [vmem:[%s6522_s7 + $0xc] ss:$0 sm:$0xff] }
 0xd24   :  { %v1453_v23 = vadd.f32 %v4414_v18, %v1447_v21  ;;  %v5235_v18 = vpack.c.bf16 %v944_v17, %v943_v16 }
 0xd25   :  { %v1458_v24 = vsel %vm172_vm7, %v1454_v22, 0.0  ;;  %5200 = vmatprep.subr.bf16.mxu0 %v5199_v38 }
 0xd26   :  { %1459 = vadd.xlane.f32.xlu1 %v1458_v24  ;;  %v1455_v25 = vsel %vm172_vm7, %v1453_v23, 0.0  ;;  %5202 = vmatpush3.bf16.msra.mxu0 %v5199_v38 }
 0xd27   :  { %1456 = vadd.xlane.f32.xlu0 %v1455_v25  ;;  %5204 = vmatprep.subr.bf16.mxu0 %v5203_v41 }
 0xd28   :  { %5236 = vmatprep.subr.bf16.mxu1 %v5235_v18 }
 0xd29   :  { %5238 = vmatpush3.bf16.msra.mxu1 %v5235_v18 }
 0xd2a   :  { %5206 = vmatpush3.bf16.msra.mxu0 %v5203_v41 }
 0xd2b   :  { %5240 = vmatprep.subr.bf16.mxu0 %v5239_v47 }
 0xdb3   :  { %v1460_v26 = vpop.xlane.xlu1 %1459 }
 0xdb4   :  { %v1462_v27 = vmul.f32 0.03125, %v1460_v26  ;;  %v1457_v28 = vpop.xlane.xlu0 %1456 }
 0xdb5   :  { %v1461_v29 = vmul.f32 0.03125, %v1457_v28 }
 0xdb6   :  { %v5859_v30 = vsub.f32 %v1454_v22, %v1462_v27  ;;  %v4420_v27 = vld [vmem:[%s6522_s7 + $0xd] ss:$0 sm:$0xff] }
 0xdb7   :  { %v5861_v31 = vsub.f32 %v1453_v23, %v1461_v29 }
 0xdb8   :  { %v1466_v32 = vmul.f32 %v5859_v30, %v5859_v30 }
 0xdb9   :  { %v1465_v33 = vmul.f32 %v5861_v31, %v5861_v31 }
 0xdba   :  { %v1470_v34 = vsel %vm172_vm7, %v1466_v32, 0.0 }
 0xdbb   :  { %1471 = vadd.xlane.f32.xlu1 %v1470_v34  ;;  %v1467_v35 = vsel %vm172_vm7, %v1465_v33, 0.0 }
 0xdbc   :  { %1468 = vadd.xlane.f32.xlu0 %v1467_v35 }
 0xe48   :  { %v1472_v63 = vpop.xlane.xlu1 %1471 }
 0xe49   :  { %v1474_v0 = vmul.f32 0.03125, %v1472_v63  ;;  %v1469_v1 = vpop.xlane.xlu0 %1468 }
 0xe4a   :  { %v1473_v2 = vmul.f32 0.03125, %v1469_v1 }
 0xe4b   :  { %v1476_v4 = vadd.f32 1e-05, %v1474_v0 }
 0xe4c   :  { %v1475_v5 = vadd.f32 1e-05, %v1473_v2 }
 0xe4d   :  { %5425 = vrsqrt.f32 %v1476_v4  ;;  %v4423_v4 = vld [vmem:[%s6522_s7 + $0x10] ss:$0 sm:$0xff] }
 0xe4e   :  { %5427 = vrsqrt.f32 %v1475_v5 }
 0xe57   :  { %v5426_v6 = vpop.eup %5425 }
 0xe58   :  { %v5428_v7 = vpop.eup %5427  ;;  %v1480_v8 = vmul.f32 %v5426_v6, %v5859_v30 }
 0xe59   :  { %v1479_v9 = vmul.f32 %v5428_v7, %v5861_v31 }
 0xe5a   :  { %v1486_v12 = vmul.f32 %v4415_v3, %v1480_v8 }
 0xe5b   :  { %v1485_v13 = vmul.f32 %v4415_v3, %v1479_v9 }
 0xe5c   :  { %v1492_v15 = vadd.f32 %v4416_v11, %v1486_v12 }
 0xe5d   :  { %v1491_v14 = vadd.f32 %v4416_v11, %v1485_v13 }
 0xe5f   :  { %4842 = vmatprep.mubr.msk.f32.mxu0 %vm172_vm7, %v1491_v14 }
 0xe60   :  { %4843 = vmatmul.mubr.msk.f32.vlgmr.msra.gmra.mrb[10].mxu0 %vm172_vm7, %v1492_v15 }
 0xe61   :  { %5242 = vmatpush3.bf16.msra.mxu0 %v5239_v47 }
 0xe62   :  { %5244 = vmatprep.subr.bf16.mxu0 %v5243_v50 }
 0xe65   :  { %5246 = vmatpush3.bf16.msra.mxu0 %v5243_v50 }
 0xe66   :  { %4891 = vmatprep.subr.mxu0 %v5513_v10 }
 0xf33   :  { %v4844_v20 = vpop.f32.mrb[10].mxu0 }
 0xf34   :  { %v1575_v21 = vadd.f32 %v4844_v20, %v4417_v19  ;;  %v1569_v22 = vpop.f32.mrb[11].mxu0 }
 0xf35   :  { %v1570_v23 = vadd.f32 %v4417_v19, %v1569_v22 }
 0xf36   :  { %v1579_v25 = vmax.f32 %v1575_v21, 0.0 }
 0xf37   :  { %v1578_v24 = vmax.f32 %v1570_v23, 0.0 }
 0xf39   :  { %4877 = vmatprep.mubr.f32.mxu1 %v1578_v24 }
 0xf3a   :  { %4878 = vmatmul.mubr.f32.vlgmr.msra.gmra.mrb[18].mxu1 %v1579_v25 }
0x100d   :  { %v4879_v26 = vpop.f32.mrb[18].mxu1 }
0x100e   :  { %v1656_v28 = vadd.f32 %v4879_v26, %v1492_v15  ;;  %v1646_v29 = vpop.f32.mrb[19].mxu1 }
0x100f   :  { %v1655_v30 = vadd.f32 %v1646_v29, %v1491_v14  ;;  %v1705_v29 = vld [vmem:[%s6520_s5 + $0x38] sm:$0xff] }
0x1010   :  { %v1662_v31 = vadd.f32 %v4420_v27, %v1656_v28 }
0x1011   :  { %v1661_v32 = vadd.f32 %v4420_v27, %v1655_v30  ;;  %v1706_v30 = vld [vmem:[%s6520_s5 + $0xb8] sm:$0xff] }
0x1012   :  { %v1666_v33 = vsel %vm172_vm7, %v1662_v31, 0.0 }
0x1013   :  { %1667 = vadd.xlane.f32.xlu1 %v1666_v33  ;;  %v1663_v34 = vsel %vm172_vm7, %v1661_v32, 0.0  ;;  %v1708_v33 = vld [vmem:[%s6520_s5 + $0x1b8] sm:$0xff] }
0x1014   :  { %1664 = vadd.xlane.f32.xlu0 %v1663_v34 }
0x10a0   :  { %v1668_v35 = vpop.xlane.xlu1 %1667 }
0x10a1   :  { %v1670_v36 = vmul.f32 0.03125, %v1668_v35  ;;  %v1665_v37 = vpop.xlane.xlu0 %1664 }
0x10a2   :  { %v1669_v38 = vmul.f32 0.03125, %v1665_v37 }
0x10a3   :  { %v1672_v39 = vsub.f32 %v1662_v31, %v1670_v36  ;;  %v5247_v31 = vpack.c.bf16 %v1706_v30, %v1705_v29  ;;  %v1723_v29 = vld [vmem:[%s6521_s6 + $0x150] sm:$0xff] }
0x10a4   :  { %v1671_v40 = vsub.f32 %v1661_v32, %v1669_v38  ;;  %v1707_v32 = vld [vmem:[%s6520_s5 + $0x138] sm:$0xff]  ;;  %v1724_v30 = vld [vmem:[%s6521_s6 + $0x170] sm:$0xff] }
0x10a5   :  { %v1674_v41 = vmul.f32 %v1672_v39, %v1672_v39  ;;  %v5251_v34 = vpack.c.bf16 %v1708_v33, %v1707_v32  ;;  %v1725_v32 = vld [vmem:[%s6521_s6 + $0x190] sm:$0xff] }
0x10a6   :  { %v1673_v42 = vmul.f32 %v1671_v40, %v1671_v40  ;;  %v1726_v33 = vld [vmem:[%s6521_s6 + $0x1b0] sm:$0xff] }
0x10a7   :  { %v1678_v43 = vsel %vm172_vm7, %v1674_v41, 0.0 }
0x10a8   :  { %1679 = vadd.xlane.f32.xlu1 %v1678_v43  ;;  %v1675_v44 = vsel %vm172_vm7, %v1673_v42, 0.0 }
0x10a9   :  { %1676 = vadd.xlane.f32.xlu0 %v1675_v44 }
0x1135   :  { %v1680_v51 = vpop.xlane.xlu1 %1679 }
0x1136   :  { %v1682_v52 = vmul.f32 0.03125, %v1680_v51  ;;  %v1677_v53 = vpop.xlane.xlu0 %1676 }
0x1137   :  { %v1681_v54 = vmul.f32 0.03125, %v1677_v53 }
0x1138   :  { %v1684_v55 = vadd.f32 1e-05, %v1682_v52 }
0x1139   :  { %v1683_v56 = vadd.f32 1e-05, %v1681_v54  ;;  %v5517_v54 = vmov 0  }
0x113a   :  { %5429 = vrsqrt.f32 %v1684_v55  ;;  %5399 = vset.pattern.permute.xlu0 %v5517_v54  ;;  %5400 = vset.pattern.permute.xlu1 %v5517_v54 }
0x113b   :  { %5431 = vrsqrt.f32 %v1683_v56 }
0x1144   :  { %v5430_v57 = vpop.eup %5429 }
0x1145   :  { %v5432_v59 = vpop.eup %5431  ;;  %v1688_v60 = vmul.f32 %v5430_v57, %v1672_v39 }
0x1146   :  { %v1687_v61 = vmul.f32 %v5432_v59, %v1671_v40 }
0x1147   :  { %v1694_v63 = vmul.f32 %v4421_v58, %v1688_v60 }
0x1148   :  { %v1693_v0 = vmul.f32 %v4421_v58, %v1687_v61 }
0x1149   :  { %v5970_v2 = vadd.f32 %v4422_v62, %v1694_v63 }
0x114a   :  { %v5968_v1 = vadd.f32 %v4422_v62, %v1693_v0 }
0x114c   :  { %4888 = vmatprep.mubr.msk.f32.mxu0 %vm172_vm7, %v5968_v1 }
0x114d   :  { %4889 = vmatmul.mubr.msk.f32.vlgmr.msra.gmra.mrb[12].mxu0 %vm172_vm7, %v5970_v2 }
0x114e   :  { %4893 = vmatprep.mubr.msk.f32.mxu0 %vm5514_vm8, %v5513_v10 }
0x1220   :  { %v4890_v5 = vpop.f32.mrb[12].mxu0 }
0x1221   :  { %v1819_v6 = vadd.f32 %v4890_v5, %v4423_v4  ;;  %v1813_v3 = vpop.f32.mrb[13].mxu0  ;;  %v1710_v5 = vld [vmem:[%s6520_s5 + $0xc0] sm:$0xff] }
0x1222   :  { %v1814_v7 = vadd.f32 %v4423_v4, %v1813_v3  ;;  %v1709_v4 = vld [vmem:[%s6520_s5 + $0x40] sm:$0xff] }
0x1223   :  { %1900 = vrot.lane.b32.xlu1 %v1819_v6, %s5515_s26  ;;  %v1711_v3 = vld [vmem:[%s6520_s5 + $0x140] sm:$0xff] }
0x1224   :  { %1823 = vrot.lane.b32.xlu0 %v1814_v7, %s5515_s26 }
0x1295   :  { %v1901_v9 = vpop.permute.xlu1 %1900 }
0x1296   :  { %v1824_v8 = vpop.permute.xlu0 %1823 }
0x1297   :  { %4892 = vmatpush3.xpose.msk.msra.mxu0 %vm172_vm7, %v1824_v8 }
0x1298   :  { %4896 = vmatprep.subr.mxu0 %v5513_v10 }
0x129a   :  { %4894 = vmatmul.mubr.msk.f32.vlgmr.msra.gmra.mrb[14].mxu0 %vm172_vm7, %v1814_v7 }
0x129b   :  { %4897 = vmatpush3.xpose.msk.msra.mxu0 %vm172_vm7, %v1901_v9  ;;  %4898 = vmatprep.mubr.msk.f32.mxu0 %vm5514_vm8, %v5513_v10  ;;  %v2541_v9 = vld [vmem:[%s6519_s4] sm:$0xff] }
0x129c   :  { %4901 = vmatprep.subr.mxu0 %v5513_v10 }
0x129e   :  { %4899 = vmatmul.mubr.msk.f32.vlgmr.msra.gmra.mrb[16].mxu0 %vm172_vm7, %v1819_v6 }
0x129f   :  { %4903 = vmatprep.mubr.msk.f32.mxu0 %vm5514_vm8, %v5513_v10 }
0x136d   :  { %v1895_v11 = vpop.f32.mrb[14].mxu0 }
0x136e   :  { %v4895_v12 = vpop.f32.mrb[15].mxu0  ;;  %v1976_v13 = vsel %vm406_vm9, %v1895_v11, -inf }
0x136f   :  { %1977 = vmax.xlane.f32.xlu1 %v1976_v13 }
0x1371   :  { %v1972_v14 = vpop.f32.mrb[16].mxu0 }
0x1372   :  { %v4900_v15 = vpop.f32.mrb[17].mxu0  ;;  %v1979_v16 = vsel %vm406_vm9, %v1972_v14, -inf }
0x1373   :  { %1980 = vmax.xlane.f32.xlu0 %v1979_v16  ;;  %v1714_v15 = vld [vmem:[%s6521_s6 + $0x30] sm:$0xff] }
0x1374   :  { %v1715_v16 = vld [vmem:[%s6521_s6 + $0x50] sm:$0xff] }
0x1380   :  { %2070 = vrot.lane.b32.xlu1 %v1819_v6, %s5516_s27  ;;  %v5255_v6 = vpack.c.bf16 %v1710_v5, %v1709_v4 }
0x1382   :  { %5256 = vmatprep.subr.bf16.mxu1 %v5255_v6 }
0x1383   :  { %5258 = vmatpush3.bf16.msra.mxu1 %v5255_v6 }
0x1389   :  { %1994 = vrot.lane.b32.xlu0 %v1814_v7, %s5516_s27  ;;  %v1712_v7 = vld [vmem:[%s6520_s5 + $0x1c0] sm:$0xff] }
0x138a   :  { %v5259_v8 = vpack.c.bf16 %v1712_v7, %v1711_v3  ;;  %v2629_v7 = vld [vmem:[%s6518_s3 + $0x400] sm:$0xff] }
0x138c   :  { %5260 = vmatprep.subr.bf16.mxu1 %v5259_v8 }
0x138d   :  { %5262 = vmatpush3.bf16.msra.mxu1 %v5259_v8 }
0x13fc   :  { %v1978_v17 = vpop.xlane.xlu1 %1977 }
0x13fd   :  { %v1982_v18 = vsub.f32 %v1895_v11, %v1978_v17  ;;  %v2542_v11 = vld [vmem:[%s6519_s4 + $0x8] sm:$0x3] }
0x13fe   :  { %v6059_v12 = vpack.c.bf16 %v2542_v11, %v2541_v9 }
0x13ff   :  { %v1984_v19 = vmul.f32 1.442695, %v1982_v18  ;;  %v1716_v18 = vld [vmem:[%s6521_s6 + $0x70] sm:$0xff] }
0x1400   :  { %v1981_v20 = vpop.xlane.xlu0 %1980  ;;  %v2071_v25 = vpop.permute.xlu1 %2070  ;;  %5297 = vmatprep.subr.msk.bf16.mxu1 %vm6061_vm12, %v6059_v12 }
0x1401   :  { %5433 = vpow2.f32 %v1984_v19  ;;  %v1983_v21 = vsub.f32 %v1972_v14, %v1981_v20  ;;  %v1713_v14 = vld [vmem:[%s6521_s6 + $0x10] sm:$0xff]  ;;  %v5267_v19 = vpack.c.bf16 %v1716_v18, %v1715_v16 }
0x1402   :  { %v5263_v17 = vpack.c.bf16 %v1714_v15, %v1713_v14  ;;  %v1717_v20 = vld [vmem:[%s6521_s6 + $0x90] sm:$0xff] }
0x1403   :  { %v1986_v22 = vmul.f32 1.442695, %v1983_v21  ;;  %v1718_v21 = vld [vmem:[%s6521_s6 + $0xb0] sm:$0xff] }
0x1404   :  { %v1995_v23 = vpop.permute.xlu0 %1994 }
0x1405   :  { %5435 = vpow2.f32 %v1986_v22  ;;  %4902 = vmatpush3.msra.mxu0 %v1995_v23  ;;  %v5271_v22 = vpack.c.bf16 %v1718_v21, %v1717_v20  ;;  %v1719_v23 = vld [vmem:[%s6521_s6 + $0xd0] sm:$0xff] }
0x1406   :  { %4906 = vmatprep.subr.mxu0 %v5513_v10 }
0x140b   :  { %v5434_v24 = vpop.eup %5433 }
0x140c   :  { %4904 = vmatmul.mubr.msk.f32.vlgmr.msra.gmra.mrb[18].mxu0 %vm406_vm9, %v5434_v24  ;;  %v1988_v26 = vsel %vm406_vm9, %v5434_v24, 0.0  ;;  %v1720_v24 = vld [vmem:[%s6521_s6 + $0xf0] sm:$0xff] }
0x140d   :  { %4907 = vmatpush3.msra.mxu0 %v2071_v25  ;;  %1989 = vadd.xlane.f32.xlu1 %v1988_v26  ;;  %v5275_v25 = vpack.c.bf16 %v1720_v24, %v1719_v23  ;;  %v1721_v26 = vld [vmem:[%s6521_s6 + $0x110] sm:$0xff]  ;;  %v2636_v24 = vld [vmem:[%s6515_s0] sm:$0x1] }
0x140e   :  { %4908 = vmatprep.mubr.msk.f32.mxu0 %vm5514_vm8, %v5513_v10  ;;  %5248 = vmatprep.subr.bf16.mxu0 %v5247_v31  ;;  %vm2637_vm0 = vcmp.eq.s32.totalorder %v2636_v24, 1 }
0x140f   :  { %v5436_v27 = vpop.eup %5435 }
0x1410   :  { %4909 = vmatmul.mubr.msk.f32.vlgmr.msra.gmra.mrb[20].mxu0 %vm406_vm9, %v5436_v27  ;;  %v1991_v28 = vsel %vm406_vm9, %v5436_v27, 0.0  ;;  %v1722_v27 = vld [vmem:[%s6521_s6 + $0x130] sm:$0xff] }
0x1411   :  { %1992 = vadd.xlane.f32.xlu0 %v1991_v28  ;;  %5250 = vmatpush3.bf16.msra.mxu0 %v5247_v31  ;;  %v5279_v28 = vpack.c.bf16 %v1722_v27, %v1721_v26  ;;  %v5283_v31 = vpack.c.bf16 %v1724_v30, %v1723_v29  ;;  %v2644_v26 = vld [vmem:[%s6515_s0 + $0x1] sm:$0x1] }
0x1412   :  { %5252 = vmatprep.subr.bf16.mxu0 %v5251_v34  ;;  %vm2645_vm2 = vcmp.eq.s32.totalorder %v2644_v26, 1 }
0x1415   :  { %5254 = vmatpush3.bf16.msra.mxu0 %v5251_v34  ;;  %v5287_v34 = vpack.c.bf16 %v1726_v33, %v1725_v32 }
0x1416   :  { %5264 = vmatprep.subr.bf16.mxu0 %v5263_v17 }
0x149a   :  { %v1990_v35 = vpop.xlane.xlu1 %1989 }
0x149b   :  { %5437 = vrcp.f32 %v1990_v35 }
0x149e   :  { %v1993_v36 = vpop.xlane.xlu0 %1992 }
0x149f   :  { %5439 = vrcp.f32 %v1993_v36 }
0x14a5   :  { %v5438_v37 = vpop.eup %5437 }
0x14a9   :  { %v5440_v41 = vpop.eup %5439 }
0x14df   :  { %v2066_v38 = vpop.f32.mrb[18].mxu0 }
0x14e0   :  { %v2148_v39 = vmul.f32 %v5438_v37, %v2066_v38  ;;  %v4905_v40 = vpop.f32.mrb[19].mxu0 }
0x14e2   :  { %4919 = vmatprep.mubr.msk.f32.mxu0 %vm172_vm7, %v2148_v39 }
0x14e3   :  { %v2142_v42 = vpop.f32.mrb[20].mxu0 }
0x14e4   :  { %v2149_v43 = vmul.f32 %v5440_v41, %v2142_v42  ;;  %v4910_v44 = vpop.f32.mrb[21].mxu0  ;;  %v2527_v41 = vlaneseq }
0x14e6   :  { %4920 = vmatmul.mubr.msk.f32.vlgmr.msra.gmra.mrb[22].mxu0 %vm172_vm7, %v2149_v43  ;;  %v4435_v43 = vld [vmem:[%s6522_s7 + $0x12] ss:$0 sm:$0xff]  ;;  %v6114_v44 = vand.u32 127, %v2527_v41 }
0x14e7   :  { %5266 = vmatpush3.bf16.msra.mxu0 %v5263_v17  ;;  %v4450_v17 = vld [vmem:[%s6522_s7 + $0x1a] ss:$0 sm:$0xff] }
0x14e8   :  { %5268 = vmatprep.subr.bf16.mxu0 %v5267_v19 }
0x14eb   :  { %5270 = vmatpush3.bf16.msra.mxu0 %v5267_v19 }
0x14ec   :  { %5272 = vmatprep.subr.bf16.mxu0 %v5271_v22 }
0x14ef   :  { %5274 = vmatpush3.bf16.msra.mxu0 %v5271_v22 }
0x14f0   :  { %5276 = vmatprep.subr.bf16.mxu0 %v5275_v25 }
0x14f3   :  { %5278 = vmatpush3.bf16.msra.mxu0 %v5275_v25  ;;  %v6190_v25 = vshrl.u32 %v2527_v41, 7 }
0x14f4   :  { %5280 = vmatprep.subr.bf16.mxu0 %v5279_v28 }
0x14f5   :  { %v2641_v27 = vsub.s32 0, %v6190_v25  ;;  %vm2634_vm1 = vcmp.gt.s32.totalorder %v6114_v44, %v6190_v25 }
0x14f6   :  { %v2635_v30 = vsel %vm2634_vm1, -1e+30, %v5513_v10 }
0x14f7   :  { %5282 = vmatpush3.bf16.msra.mxu0 %v5279_v28  ;;  %v2638_v28 = vsel %vm2637_vm0, -1e+30, %v5513_v10 }
0x14f8   :  { %5284 = vmatprep.subr.bf16.mxu0 %v5283_v31  ;;  %v2642_v29 = vrot.slane %v2638_v28, %v2641_v27 }
0x14fa   :  { %v2643_v32 = vadd.f32 %v2642_v29, %v2635_v30 }
0x14fb   :  { %5286 = vmatpush3.bf16.msra.mxu0 %v5283_v31  ;;  %v2646_v31 = vsel %vm2645_vm2, -1e+30, %v5513_v10 }
0x14fc   :  { %5288 = vmatprep.subr.bf16.mxu0 %v5287_v34  ;;  %v2650_v33 = vrot.slane %v2646_v31, %v2641_v27 }
0x14ff   :  { %5290 = vmatpush3.bf16.msra.mxu0 %v5287_v34 }
0x15b9   :  { %v4921_v45 = vpop.f32.mrb[22].mxu0 }
0x15ba   :  { %v2232_v47 = vadd.f32 %v4921_v45, %v5970_v2  ;;  %v2222_v48 = vpop.f32.mrb[23].mxu0  ;;  %v2525_v2 = vld [vmem:[%s6516_s1] sm:$0xff] }
0x15bb   :  { %v2231_v49 = vadd.f32 %v2222_v48, %v5968_v1  ;;  %v2526_v1 = vld [vmem:[%s6516_s1 + $0x8] sm:$0xff] }
0x15bc   :  { %v2238_v50 = vadd.f32 %v4434_v46, %v2232_v47 }
0x15bd   :  { %v2237_v51 = vadd.f32 %v4434_v46, %v2231_v49  ;;  %v4436_v49 = vld [vmem:[%s6522_s7 + $0x13] ss:$0 sm:$0xff] }
0x15be   :  { %v2242_v52 = vsel %vm172_vm7, %v2238_v50, 0.0 }
0x15bf   :  { %2243 = vadd.xlane.f32.xlu1 %v2242_v52  ;;  %v2239_v53 = vsel %vm172_vm7, %v2237_v51, 0.0 }
0x15c0   :  { %2240 = vadd.xlane.f32.xlu0 %v2239_v53 }
0x164c   :  { %v2244_v55 = vpop.xlane.xlu1 %2243 }
0x164d   :  { %v2246_v56 = vmul.f32 0.03125, %v2244_v55  ;;  %v2241_v57 = vpop.xlane.xlu0 %2240 }
0x164e   :  { %v2245_v58 = vmul.f32 0.03125, %v2241_v57  ;;  %v2652_v57 = vld [vmem:[%s6520_s5 + $0x48] sm:$0xff] }
0x164f   :  { %v6025_v59 = vsub.f32 %v2238_v50, %v2246_v56 }
0x1650   :  { %v6027_v60 = vsub.f32 %v2237_v51, %v2245_v58  ;;  %v2653_v58 = vld [vmem:[%s6520_s5 + $0xc8] sm:$0xff] }
0x1651   :  { %v2250_v61 = vmul.f32 %v6025_v59, %v6025_v59 }
0x1652   :  { %v2249_v62 = vmul.f32 %v6027_v60, %v6027_v60 }
0x1653   :  { %v2254_v63 = vsel %vm172_vm7, %v2250_v61, 0.0  ;;  %v1728_v61 = vld [vmem:[%s6521_s6 + $0x1f0] sm:$0xff] }
0x1654   :  { %2255 = vadd.xlane.f32.xlu1 %v2254_v63  ;;  %v2251_v0 = vsel %vm172_vm7, %v2249_v62, 0.0  ;;  %v2654_v63 = vld [vmem:[%s6520_s5 + $0x148] sm:$0xff] }
0x1655   :  { %2252 = vadd.xlane.f32.xlu0 %v2251_v0  ;;  %v2655_v0 = vld [vmem:[%s6520_s5 + $0x1c8] sm:$0xff] }
0x1665   :  { %2533 = vperm.xlu1 %5400, %v2526_v1   ;;  %v5305_v1 = vpack.c.bf16 %v2655_v0, %v2654_v63  ;;  %v2657_v63 = vld [vmem:[%s6520_s5 + $0xd0] sm:$0xff] }
0x166b   :  { %2530 = vperm.xlu0 %5399, %v2525_v2   ;;  %v4437_v2 = vld [vmem:[%s6522_s7 + $0x14] ss:$0 sm:$0xff] }
0x16e1   :  { %v2256_v35 = vpop.xlane.xlu1 %2255 }
0x16e2   :  { %v2258_v36 = vmul.f32 0.03125, %v2256_v35  ;;  %v2253_v37 = vpop.xlane.xlu0 %2252 }
0x16e3   :  { %v2257_v38 = vmul.f32 0.03125, %v2253_v37  ;;  %v2651_v37 = vadd.f32 %v2650_v33, %v2635_v30 }
0x16e4   :  { %v2260_v39 = vadd.f32 1e-05, %v2258_v36 }
0x16e5   :  { %v2259_v40 = vadd.f32 1e-05, %v2257_v38  ;;  %v2534_v52 = vpop.permute.xlu1 %2533 }
0x16e6   :  { %5441 = vrsqrt.f32 %v2260_v39  ;;  %vm2536_vm14 = vcmp.eq.s32.totalorder %v2534_v52, %v6114_v44 }
0x16e7   :  { %5443 = vrsqrt.f32 %v2259_v40  ;;  %v4446_v56 = vsel %vm2536_vm14, 1.0, %v5513_v10 }
0x16ea   :  { %v2531_v47 = vpop.permute.xlu0 %2530 }
0x16eb   :  { %vm2535_vm13 = vcmp.eq.s32.totalorder %v2531_v47, %v6114_v44 }
0x16ec   :  { %v4445_v55 = vsel %vm2535_vm13, 1.0, %v5513_v10 }
0x16f0   :  { %v5442_v42 = vpop.eup %5441 }
0x16f1   :  { %v5444_v45 = vpop.eup %5443  ;;  %v2264_v46 = vmul.f32 %v5442_v42, %v6025_v59  ;;  %v5301_v59 = vpack.c.bf16 %v2653_v58, %v2652_v57 }
0x16f2   :  { %v2263_v48 = vmul.f32 %v5444_v45, %v6027_v60  ;;  %v1727_v60 = vld [vmem:[%s6521_s6 + $0x1d0] sm:$0xff] }
0x16f3   :  { %v2270_v50 = vmul.f32 %v4435_v43, %v2264_v46  ;;  %v5291_v62 = vpack.c.bf16 %v1728_v61, %v1727_v60 }
0x16f4   :  { %v2269_v51 = vmul.f32 %v4435_v43, %v2263_v48 }
0x16f5   :  { %v6124_v54 = vadd.f32 %v4436_v49, %v2270_v50  ;;  %5292 = vmatprep.subr.bf16.mxu0 %v5291_v62 }
0x16f6   :  { %v6122_v53 = vadd.f32 %v4436_v49, %v2269_v51  ;;  %5294 = vmatpush3.bf16.msra.mxu0 %v5291_v62  ;;  %v4440_v51 = vld [vmem:[%s6522_s7 + $0x15] ss:$0 sm:$0xff] }
0x16f7   :  { %v2656_v62 = vld [vmem:[%s6520_s5 + $0x50] sm:$0xff] }
0x16f8   :  { %4930 = vmatprep.mubr.msk.f32.mxu1 %vm172_vm7, %v6122_v53  ;;  %v5309_v0 = vpack.c.bf16 %v2657_v63, %v2656_v62  ;;  %v2664_v63 = vld [vmem:[%s6520_s5 + $0x60] sm:$0xff] }
0x16f9   :  { %4931 = vmatmul.mubr.msk.f32.vlgmr.msra.gmra.mrb[20].mxu1 %vm172_vm7, %v6124_v54 }
0x16fa   :  { %5300 = vmatpush3.bf16.msk.msra.mxu1 %vm6061_vm12, %v6059_v12  ;;  %4972 = vmatprep.mubr.msk.f32.mxu1 %vm2543_vm15, %v4445_v55 }
0x16fb   :  { %5302 = vmatprep.subr.bf16.mxu1 %v5301_v59 }
0x16fd   :  { %4973 = vmatmul.mubr.msk.f32.vlgmr.msra.gmra.mrb[22].mxu1 %vm2543_vm15, %v4446_v56 }
0x16fe   :  { %5304 = vmatpush3.bf16.msra.mxu1 %v5301_v59 }
0x16ff   :  { %5306 = vmatprep.subr.bf16.mxu1 %v5305_v1 }
0x1702   :  { %5308 = vmatpush3.bf16.msra.mxu1 %v5305_v1  ;;  %v2658_v1 = vld [vmem:[%s6520_s5 + $0x150] sm:$0xff] }
0x1703   :  { %4986 = vmatprep.subr.mxu1 %v5513_v10 }
0x17cc   :  { %v4932_v4 = vpop.f32.mrb[20].mxu1 }
0x17cd   :  { %v2359_v5 = vadd.f32 %v4932_v4, %v4437_v2  ;;  %v2353_v6 = vpop.f32.mrb[21].mxu1 }
0x17ce   :  { %v2354_v3 = vadd.f32 %v4437_v2, %v2353_v6  ;;  %v2659_v2 = vld [vmem:[%s6520_s5 + $0x1d0] sm:$0xff] }
0x17cf   :  { %v2363_v11 = vmax.f32 %v2359_v5, 0.0  ;;  %v5313_v4 = vpack.c.bf16 %v2659_v2, %v2658_v1  ;;  %v2666_v2 = vld [vmem:[%s6520_s5 + $0x160] sm:$0xff] }
0x17d0   :  { %v2362_v8 = vmax.f32 %v2354_v3, 0.0  ;;  %v4974_v9 = vpop.f32.mrb[22].mxu1 }
0x17d1   :  { %v2620_v12 = vpop.f32.mrb[23].mxu1  ;;  %v6163_v14 = vadd.f32 %v4974_v9, %v2629_v7 }
0x17d2   :  { %v6161_v13 = vadd.f32 %v2629_v7, %v2620_v12  ;;  %4965 = vmatprep.mubr.f32.mxu0 %v2362_v8 }
0x17d3   :  { %4966 = vmatmul.mubr.f32.vlgmr.msra.gmra.mrb[24].mxu0 %v2363_v11 }
0x17d4   :  { %4983 = vmatprep.mubr.msk.f32.mxu1 %vm172_vm7, %v6161_v13 }
0x17d5   :  { %4984 = vmatmul.mubr.msk.f32.vlgmr.msra.gmra.mrb[24].mxu1 %vm172_vm7, %v6163_v14 }
0x17d6   :  { %4988 = vmatprep.mubr.msk.f32.mxu1 %vm5514_vm8, %v5513_v10 }
0x18a6   :  { %v4967_v15 = vpop.f32.mrb[24].mxu0 }
0x18a7   :  { %v2430_v16 = vpop.f32.mrb[25].mxu0  ;;  %v2440_v55 = vadd.f32 %v4967_v15, %v6124_v54 }
0x18a8   :  { %v4985_v18 = vpop.f32.mrb[24].mxu1  ;;  %v2439_v50 = vadd.f32 %v2430_v16, %v6122_v53 }
0x18a9   :  { %v2781_v19 = vpop.f32.mrb[25].mxu1  ;;  %v2787_v21 = vadd.f32 %v4985_v18, %v4450_v17  ;;  %v2446_v61 = vadd.f32 %v4440_v51, %v2440_v55 }
0x18aa   :  { %v2782_v20 = vadd.f32 %v4450_v17, %v2781_v19  ;;  %v2445_v58 = vadd.f32 %v4440_v51, %v2439_v50 }
0x18ab   :  { %v2450_v54 = vsel %vm172_vm7, %v2446_v61, 0.0 }
0x18ac   :  { %2791 = vrot.lane.b32.xlu1 %v2782_v20, %s5515_s26  ;;  %v2447_v60 = vsel %vm172_vm7, %v2445_v58, 0.0 }
0x18b0   :  { %2868 = vrot.lane.b32.xlu1 %v2787_v21, %s5515_s26 }
0x191e   :  { %v2792_v22 = vpop.permute.xlu1 %2791 }
0x191f   :  { %4987 = vmatpush3.xpose.msk.msra.mxu1 %vm172_vm7, %v2792_v22 }
0x1920   :  { %4991 = vmatprep.subr.mxu1 %v5513_v10 }
0x1922   :  { %4989 = vmatmul.mubr.msk.f32.vlgmr.msra.gmra.mrb[26].mxu1 %vm172_vm7, %v2782_v20  ;;  %v2869_v23 = vpop.permute.xlu1 %2868 }
0x1923   :  { %4992 = vmatpush3.xpose.msk.msra.mxu1 %vm172_vm7, %v2869_v23  ;;  %4993 = vmatprep.mubr.msk.f32.mxu1 %vm5514_vm8, %v5513_v10 }
0x1924   :  { %4996 = vmatprep.subr.mxu1 %v5513_v10 }
0x1926   :  { %4994 = vmatmul.mubr.msk.f32.vlgmr.msra.gmra.mrb[28].mxu1 %vm172_vm7, %v2787_v21 }
0x1927   :  { %4998 = vmatprep.mubr.msk.f32.mxu1 %vm5514_vm8, %v5513_v10 }
0x19f5   :  { %v2863_v34 = vpop.f32.mrb[26].mxu1 }
0x19f6   :  { %v2864_v35 = vadd.f32 %v2863_v34, %v2643_v32  ;;  %v4990_v36 = vpop.f32.mrb[27].mxu1 }
0x19f8   :  { %v2944_v38 = vsel %vm406_vm9, %v2864_v35, -inf }
0x19f9   :  { %2945 = vmax.xlane.f32.xlu1 %v2944_v38  ;;  %v2940_v39 = vpop.f32.mrb[28].mxu1 }
0x19fa   :  { %v2941_v40 = vadd.f32 %v2940_v39, %v2651_v37  ;;  %v4995_v41 = vpop.f32.mrb[29].mxu1  ;;  %v4442_v37 = vld [vmem:[%s6522_s7 + $0x17] ss:$0 sm:$0xff] }
0x19fc   :  { %v2947_v42 = vsel %vm406_vm9, %v2941_v40, -inf }
0x19fd   :  { %2948 = vmax.xlane.f32.xlu0 %v2947_v42 }
0x1a0a   :  { %2962 = vrot.lane.b32.xlu1 %v2782_v20, %s5516_s27 }
0x1a13   :  { %3038 = vrot.lane.b32.xlu0 %v2787_v21, %s5516_s27 }
0x1a86   :  { %v2946_v43 = vpop.xlane.xlu1 %2945 }
0x1a87   :  { %v2950_v44 = vsub.f32 %v2864_v35, %v2946_v43  ;;  %v4441_v35 = vld [vmem:[%s6522_s7 + $0x16] ss:$0 sm:$0xff] }
0x1a89   :  { %v2952_v45 = vmul.f32 1.442695, %v2950_v44 }
0x1a8a   :  { %v2949_v46 = vpop.xlane.xlu0 %2948  ;;  %v2963_v47 = vpop.permute.xlu1 %2962 }
0x1a8b   :  { %5445 = vpow2.f32 %v2952_v45  ;;  %v2951_v48 = vsub.f32 %v2941_v40, %v2949_v46  ;;  %4997 = vmatpush3.msra.mxu1 %v2963_v47  ;;  %v4461_v47 = vld [vmem:[%s6522_s7 + $0x1b] ss:$0 sm:$0xff] }
0x1a8c   :  { %5001 = vmatprep.subr.mxu1 %v5513_v10 }
0x1a8d   :  { %v2954_v49 = vmul.f32 1.442695, %v2951_v48 }
0x1a8e   :  { %v3039_v56 = vpop.permute.xlu0 %3038 }
0x1a8f   :  { %5447 = vpow2.f32 %v2954_v49 }
0x1a95   :  { %v5446_v52 = vpop.eup %5445 }
0x1a96   :  { %4999 = vmatmul.mubr.msk.f32.vlgmr.msra.gmra.mrb[30].mxu1 %vm406_vm9, %v5446_v52  ;;  %v2956_v57 = vsel %vm406_vm9, %v5446_v52, 0.0 }
0x1a97   :  { %5002 = vmatpush3.msra.mxu1 %v3039_v56  ;;  %2957 = vadd.xlane.f32.xlu1 %v2956_v57 }
0x1a98   :  { %5003 = vmatprep.mubr.msk.f32.mxu1 %vm5514_vm8, %v5513_v10  ;;  %5310 = vmatprep.subr.bf16.mxu1 %v5309_v0 }
0x1a99   :  { %v5448_v59 = vpop.eup %5447 }
0x1a9a   :  { %5004 = vmatmul.mubr.msk.f32.vlgmr.msra.gmra.mrb[32].mxu1 %vm406_vm9, %v5448_v59  ;;  %v2959_v53 = vsel %vm406_vm9, %v5448_v59, 0.0 }
0x1a9b   :  { %2960 = vadd.xlane.f32.xlu0 %v2959_v53  ;;  %2448 = vadd.xlane.f32.xlu1 %v2447_v60 }
0x1a9c   :  { %5312 = vmatpush3.bf16.msra.mxu1 %v5309_v0  ;;  %v2665_v0 = vld [vmem:[%s6520_s5 + $0xe0] sm:$0xff] }
0x1a9d   :  { %5314 = vmatprep.subr.bf16.mxu1 %v5313_v4  ;;  %v5325_v1 = vpack.c.bf16 %v2665_v0, %v2664_v63 }
0x1a9f   :  { %2451 = vadd.xlane.f32.xlu1 %v2450_v54 }
0x1aa0   :  { %5316 = vmatpush3.bf16.msra.mxu1 %v5313_v4  ;;  %v2667_v4 = vld [vmem:[%s6520_s5 + $0x1e0] sm:$0xff] }
0x1aa1   :  { %5326 = vmatprep.subr.bf16.mxu1 %v5325_v1 }
0x1b24   :  { %v2958_v5 = vpop.xlane.xlu1 %2957 }
0x1b25   :  { %5449 = vrcp.f32 %v2958_v5  ;;  %v5329_v5 = vpack.c.bf16 %v2667_v4, %v2666_v2 }
0x1b28   :  { %v2449_v6 = vpop.xlane.xlu1 %2448  ;;  %v2961_v18 = vpop.xlane.xlu0 %2960 }
0x1b29   :  { %v2453_v3 = vmul.f32 0.03125, %v2449_v6  ;;  %5451 = vrcp.f32 %v2961_v18 }
0x1b2b   :  { %v2455_v7 = vsub.f32 %v2445_v58, %v2453_v3 }
0x1b2c   :  { %v2452_v8 = vpop.xlane.xlu1 %2451 }
0x1b2d   :  { %v2454_v9 = vmul.f32 0.03125, %v2452_v8  ;;  %v2457_v11 = vmul.f32 %v2455_v7, %v2455_v7 }
0x1b2f   :  { %v2456_v12 = vsub.f32 %v2446_v61, %v2454_v9  ;;  %v2459_v15 = vsel %vm172_vm7, %v2457_v11, 0.0  ;;  %v5450_v19 = vpop.eup %5449 }
0x1b30   :  { %2460 = vadd.xlane.f32.xlu1 %v2459_v15 }
0x1b31   :  { %v2458_v16 = vmul.f32 %v2456_v12, %v2456_v12 }
0x1b33   :  { %v2462_v17 = vsel %vm172_vm7, %v2458_v16, 0.0  ;;  %v5452_v23 = vpop.eup %5451 }
0x1b34   :  { %2463 = vadd.xlane.f32.xlu0 %v2462_v17 }
0x1b69   :  { %v3034_v20 = vpop.f32.mrb[30].mxu1 }
0x1b6a   :  { %v3116_v21 = vmul.f32 %v5450_v19, %v3034_v20  ;;  %v5000_v22 = vpop.f32.mrb[31].mxu1 }
0x1b6b   :  { %v2661_v22 = vld [vmem:[%s6520_s5 + $0xd8] sm:$0xff] }
0x1b6c   :  { %5014 = vmatprep.mubr.msk.f32.mxu1 %vm172_vm7, %v3116_v21  ;;  %v2660_v21 = vld [vmem:[%s6520_s5 + $0x58] sm:$0xff] }
0x1b6d   :  { %v3110_v24 = vpop.f32.mrb[32].mxu1 }
0x1b6e   :  { %v3117_v26 = vmul.f32 %v5452_v23, %v3110_v24  ;;  %v5005_v27 = vpop.f32.mrb[33].mxu1  ;;  %v5317_v24 = vpack.c.bf16 %v2661_v22, %v2660_v21 }
0x1b6f   :  { %v2662_v27 = vld [vmem:[%s6520_s5 + $0x158] sm:$0xff] }
0x1b70   :  { %5015 = vmatmul.mubr.msk.f32.vlgmr.msra.gmra.mrb[34].mxu1 %vm172_vm7, %v3117_v26  ;;  %5318 = vmatprep.subr.bf16.mxu0 %v5317_v24 }
0x1b71   :  { %5328 = vmatpush3.bf16.msra.mxu1 %v5325_v1  ;;  %5320 = vmatpush3.bf16.msra.mxu0 %v5317_v24 }
0x1b72   :  { %5330 = vmatprep.subr.bf16.mxu1 %v5329_v5 }
0x1b75   :  { %5332 = vmatpush3.bf16.msra.mxu1 %v5329_v5 }
0x1b76   :  { %5049 = vmatprep.subr.mxu1 %v5513_v10 }
0x1bbd   :  { %v2461_v28 = vpop.xlane.xlu1 %2460 }
0x1bbe   :  { %v2465_v29 = vmul.f32 0.03125, %v2461_v28  ;;  %v2663_v28 = vld [vmem:[%s6520_s5 + $0x1d8] sm:$0xff] }
0x1bc0   :  { %v2467_v30 = vadd.f32 1e-05, %v2465_v29  ;;  %v5321_v29 = vpack.c.bf16 %v2663_v28, %v2662_v27 }
0x1bc1   :  { %v2464_v31 = vpop.xlane.xlu0 %2463 }
0x1bc2   :  { %5453 = vrsqrt.f32 %v2467_v30  ;;  %v2466_v32 = vmul.f32 0.03125, %v2464_v31  ;;  %5322 = vmatprep.subr.bf16.mxu0 %v5321_v29 }
0x1bc3   :  { %5324 = vmatpush3.bf16.msra.mxu0 %v5321_v29 }
0x1bc4   :  { %v2468_v33 = vadd.f32 1e-05, %v2466_v32  ;;  %5039 = vmatprep.subr.mxu0 %v5513_v10  ;;  %v4443_v32 = vld [vmem:[%s6522_s7 + $0x18] ss:$0 sm:$0xff] }
0x1bc6   :  { %5455 = vrsqrt.f32 %v2468_v33 }
0x1bcc   :  { %v5454_v34 = vpop.eup %5453 }
0x1bcd   :  { %v2471_v36 = vmul.f32 %v5454_v34, %v2455_v7  ;;  %v4444_v34 = vld [vmem:[%s6522_s7 + $0x19] ss:$0 sm:$0xff] }
0x1bcf   :  { %v2477_v38 = vmul.f32 %v4441_v35, %v2471_v36 }
0x1bd0   :  { %v5456_v39 = vpop.eup %5455 }
0x1bd1   :  { %v2483_v40 = vadd.f32 %v4442_v37, %v2477_v38  ;;  %v2472_v41 = vmul.f32 %v5456_v39, %v2456_v12 }
0x1bd3   :  { %v2487_v42 = vsel %vm172_vm7, %v2483_v40, 0.0  ;;  %v2478_v43 = vmul.f32 %v4441_v35, %v2472_v41 }
0x1bd4   :  { %2488 = vadd.xlane.f32.xlu1 %v2487_v42 }
0x1bd5   :  { %v2484_v44 = vadd.f32 %v4442_v37, %v2478_v43 }
0x1bd7   :  { %v2490_v45 = vsel %vm172_vm7, %v2484_v44, 0.0 }
0x1bd8   :  { %2491 = vadd.xlane.f32.xlu0 %v2490_v45 }
0x1c43   :  { %v5016_v46 = vpop.f32.mrb[34].mxu1 }
0x1c44   :  { %v3200_v48 = vadd.f32 %v5016_v46, %v6163_v14  ;;  %v3190_v49 = vpop.f32.mrb[35].mxu1 }
0x1c45   :  { %v3199_v50 = vadd.f32 %v3190_v49, %v6161_v13 }
0x1c46   :  { %v3206_v51 = vadd.f32 %v4461_v47, %v3200_v48  ;;  %v4462_v48 = vld [vmem:[%s6522_s7 + $0x1c] ss:$0 sm:$0xff] }
0x1c47   :  { %v3205_v52 = vadd.f32 %v4461_v47, %v3199_v50 }
0x1c48   :  { %v3210_v55 = vsel %vm172_vm7, %v3206_v51, 0.0 }
0x1c49   :  { %3211 = vadd.xlane.f32.xlu0 %v3210_v55  ;;  %v3207_v56 = vsel %vm172_vm7, %v3205_v52, 0.0 }
0x1c4a   :  { %3208 = vadd.xlane.f32.xlu1 %v3207_v56 }
0x1c61   :  { %v2489_v57 = vpop.xlane.xlu1 %2488 }
0x1c62   :  { %v2493_v58 = vmul.f32 0.03125, %v2489_v57 }
0x1c64   :  { %v2495_v59 = vsub.f32 %v2483_v40, %v2493_v58 }
0x1c65   :  { %v2492_v53 = vpop.xlane.xlu0 %2491 }
0x1c66   :  { %v2494_v60 = vmul.f32 0.03125, %v2492_v53  ;;  %v2497_v61 = vmul.f32 %v2495_v59, %v2495_v59 }
0x1c68   :  { %v2496_v54 = vsub.f32 %v2484_v44, %v2494_v60  ;;  %v2499_v14 = vsel %vm172_vm7, %v2497_v61, 0.0 }
0x1c69   :  { %2500 = vadd.xlane.f32.xlu1 %v2499_v14 }
0x1c6a   :  { %v2498_v62 = vmul.f32 %v2496_v54, %v2496_v54 }
0x1c6c   :  { %v2502_v13 = vsel %vm172_vm7, %v2498_v62, 0.0 }
0x1c6d   :  { %2503 = vadd.xlane.f32.xlu0 %v2502_v13 }
0x1cd6   :  { %v3212_v6 = vpop.xlane.xlu0 %3211 }
0x1cd7   :  { %v3214_v3 = vmul.f32 0.03125, %v3212_v6  ;;  %v3209_v7 = vpop.xlane.xlu1 %3208 }
0x1cd8   :  { %v3213_v8 = vmul.f32 0.03125, %v3209_v7 }
0x1cd9   :  { %v3216_v9 = vsub.f32 %v3206_v51, %v3214_v3 }
0x1cda   :  { %v3215_v11 = vsub.f32 %v3205_v52, %v3213_v8  ;;  %v4463_v52 = vld [vmem:[%s6522_s7 + $0x1d] ss:$0 sm:$0xff] }
0x1cdb   :  { %v3218_v12 = vmul.f32 %v3216_v9, %v3216_v9 }
0x1cdc   :  { %v3217_v15 = vmul.f32 %v3215_v11, %v3215_v11 }
0x1cdd   :  { %v3222_v16 = vsel %vm172_vm7, %v3218_v12, 0.0 }
0x1cde   :  { %3223 = vadd.xlane.f32.xlu0 %v3222_v16  ;;  %v3219_v17 = vsel %vm172_vm7, %v3217_v15, 0.0 }
0x1cdf   :  { %3220 = vadd.xlane.f32.xlu1 %v3219_v17 }
0x1cf6   :  { %v2501_v18 = vpop.xlane.xlu1 %2500 }
0x1cf7   :  { %v2505_v19 = vmul.f32 0.03125, %v2501_v18 }
0x1cf9   :  { %v2507_v20 = vadd.f32 1e-05, %v2505_v19 }
0x1cfa   :  { %v2504_v23 = vpop.xlane.xlu0 %2503 }
0x1cfb   :  { %5457 = vrsqrt.f32 %v2507_v20  ;;  %v2506_v26 = vmul.f32 0.03125, %v2504_v23 }
0x1cfd   :  { %v2508_v30 = vadd.f32 1e-05, %v2506_v26 }
0x1cff   :  { %5459 = vrsqrt.f32 %v2508_v30 }
0x1d05   :  { %v5458_v31 = vpop.eup %5457 }
0x1d06   :  { %v2511_v33 = vmul.f32 %v5458_v31, %v2495_v59  ;;  %v6309_v59 = vld [vmem:[%s6522_s7 + $0x1f] ss:$0 sm:$0xff] }
0x1d08   :  { %v2517_v35 = vmul.f32 %v4443_v32, %v2511_v33 }
0x1d09   :  { %v5460_v36 = vpop.eup %5459 }
0x1d0a   :  { %v2512_v37 = vmul.f32 %v5460_v36, %v2496_v54  ;;  %v2523_v38 = vadd.f32 %v4444_v34, %v2517_v35  ;;  %v4464_v54 = vld [vmem:[%s6522_s7 + $0x1e] ss:$0 sm:$0xff] }
0x1d0c   :  { %v2518_v39 = vmul.f32 %v4443_v32, %v2512_v37  ;;  %5036 = vmatprep.mubr.msk.f32.mxu1 %vm172_vm7, %v2523_v38  ;;  %v2668_v38 = vld [vmem:[%s6520_s5 + $0x68] sm:$0xff] }
0x1d0e   :  { %v2524_v40 = vadd.f32 %v4444_v34, %v2518_v39  ;;  %v2669_v39 = vld [vmem:[%s6520_s5 + $0xe8] sm:$0xff] }
0x1d10   :  { %5037 = vmatmul.mubr.msk.f32.vlgmr.msra.gmra.mrb[36].mxu1 %vm172_vm7, %v2524_v40  ;;  %v5333_v40 = vpack.c.bf16 %v2669_v39, %v2668_v38  ;;  %v2687_v38 = vld [vmem:[%s6521_s6 + $0x178] sm:$0xff] }
0x1d11   :  { %5051 = vmatprep.mubr.msk.f32.mxu1 %vm5514_vm8, %v5513_v10 }
0x1d6b   :  { %v3224_v41 = vpop.xlane.xlu0 %3223 }
0x1d6c   :  { %v3226_v42 = vmul.f32 0.03125, %v3224_v41  ;;  %v3221_v43 = vpop.xlane.xlu1 %3220  ;;  %v2670_v41 = vld [vmem:[%s6520_s5 + $0x168] sm:$0xff] }
0x1d6d   :  { %v3225_v44 = vmul.f32 0.03125, %v3221_v43 }
0x1d6e   :  { %v3228_v45 = vadd.f32 1e-05, %v3226_v42  ;;  %v2671_v42 = vld [vmem:[%s6520_s5 + $0x1e8] sm:$0xff] }
0x1d6f   :  { %v3227_v46 = vadd.f32 1e-05, %v3225_v44  ;;  %v5337_v43 = vpack.c.bf16 %v2671_v42, %v2670_v41  ;;  %v2689_v41 = vld [vmem:[%s6521_s6 + $0x1b8] sm:$0xff] }
0x1d70   :  { %5461 = vrsqrt.f32 %v3228_v45 }
0x1d71   :  { %5463 = vrsqrt.f32 %v3227_v46 }
0x1d7a   :  { %v5462_v47 = vpop.eup %5461 }
0x1d7b   :  { %v5464_v49 = vpop.eup %5463  ;;  %v3232_v50 = vmul.f32 %v5462_v47, %v3216_v9 }
0x1d7c   :  { %v3231_v51 = vmul.f32 %v5464_v49, %v3215_v11 }
0x1d7d   :  { %v3238_v55 = vmul.f32 %v4462_v48, %v3232_v50 }
0x1d7e   :  { %v3237_v56 = vmul.f32 %v4462_v48, %v3231_v51 }
0x1d7f   :  { %v6298_v58 = vadd.f32 %v4463_v52, %v3238_v55 }
0x1d80   :  { %v6296_v57 = vadd.f32 %v4463_v52, %v3237_v56 }
0x1d82   :  { %5025 = vmatprep.mubr.msk.f32.mxu0 %vm172_vm7, %v6296_v57 }
0x1d83   :  { %5026 = vmatmul.mubr.msk.f32.vlgmr.msra.gmra.mrb[26].mxu0 %vm172_vm7, %v6298_v58 }
0x1d84   :  { %5041 = vmatprep.mubr.msk.f32.mxu0 %vm5514_vm8, %v5513_v10 }
0x1de3   :  { %v5038_v53 = vpop.f32.mrb[36].mxu1 }
0x1de4   :  { %v3406_v60 = vpop.f32.mrb[37].mxu1  ;;  %v3412_v0 = vadd.f32 %v5038_v53, %v6309_v59 }
0x1de5   :  { %v3407_v61 = vadd.f32 %v6309_v59, %v3406_v60 }
0x1de7   :  { %5040 = vmatpush3.xpose.msk.msra.mxu0 %vm172_vm7, %v3407_v61 }
0x1de8   :  { %5044 = vmatprep.subr.mxu0 %v5513_v10 }
0x1e56   :  { %v5027_v14 = vpop.f32.mrb[26].mxu0 }
0x1e57   :  { %v3327_v62 = vadd.f32 %v5027_v14, %v4464_v54  ;;  %v3321_v13 = vpop.f32.mrb[27].mxu0 }
0x1e58   :  { %v3322_v63 = vadd.f32 %v4464_v54, %v3321_v13 }
0x1e59   :  { %v3574_v1 = vmul.f32 %v6309_v59, %v3327_v62 }
0x1e5a   :  { %5042 = vmatmul.mubr.msk.f32.vlgmr.msra.gmra.mrb[28].mxu0 %vm172_vm7, %v3322_v63  ;;  %v3573_v4 = vmul.f32 %v6309_v59, %v3322_v63 }
0x1e5b   :  { %5045 = vmatpush3.xpose.msk.msra.mxu0 %vm172_vm7, %v3412_v0  ;;  %v3578_v2 = vsel %vm172_vm7, %v3574_v1, 0.0  ;;  %5046 = vmatprep.mubr.msk.f32.mxu0 %vm5514_vm8, %v5513_v10 }
0x1e5c   :  { %3579 = vadd.xlane.f32.xlu0 %v3578_v2  ;;  %5054 = vmatprep.subr.mxu0 %v5513_v10  ;;  %v3575_v5 = vsel %vm172_vm7, %v3573_v4, 0.0 }
0x1e5e   :  { %5047 = vmatmul.mubr.msk.f32.vlgmr.msra.gmra.mrb[30].mxu0 %vm172_vm7, %v3327_v62  ;;  %v4478_v62 = vld [vmem:[%s6522_s7 + $0x20] ss:$0 sm:$0xff] }
0x1e5f   :  { %5056 = vmatprep.mubr.msk.f32.mxu0 %vm5514_vm8, %v5513_v10 }
0x1e60   :  { %3576 = vadd.xlane.f32.xlu0 %v3575_v5 }
0x1e76   :  { %3685 = vrot.lane.b32.xlu0 %v3412_v0, %s5515_s26 }
0x1ee9   :  { %v3580_v6 = vpop.xlane.xlu0 %3579 }
0x1eed   :  { %v3577_v3 = vpop.xlane.xlu0 %3576 }
0x1ef1   :  { %v3686_v7 = vpop.permute.xlu0 %3685 }
0x1ef2   :  { %5055 = vmatpush3.msra.mxu0 %v3686_v7 }
0x1f2d   :  { %v3487_v8 = vpop.f32.mrb[28].mxu0 }
0x1f2e   :  { %v5043_v9 = vpop.f32.mrb[29].mxu0  ;;  %v3567_v11 = vsel %vm406_vm9, %v3487_v8, -inf }
0x1f2f   :  { %3568 = vmax.xlane.f32.xlu1 %v3567_v11 }
0x1f31   :  { %v3563_v12 = vpop.f32.mrb[30].mxu0 }
0x1f32   :  { %v5048_v15 = vpop.f32.mrb[31].mxu0  ;;  %v3570_v16 = vsel %vm406_vm9, %v3563_v12, -inf }
0x1f33   :  { %3571 = vmax.xlane.f32.xlu1 %v3570_v16  ;;  %v2672_v16 = vld [vmem:[%s6520_s5 + $0x70] sm:$0xff] }
0x1f44   :  { %3605 = vrot.lane.b32.xlu1 %v3407_v61, %s5515_s26 }
0x1fbc   :  { %v3569_v10 = vpop.xlane.xlu1 %3568 }
0x1fbd   :  { %v3581_v17 = vmax.f32 %v3569_v10, %v3577_v3  ;;  %v2673_v10 = vld [vmem:[%s6520_s5 + $0xf0] sm:$0xff] }
0x1fbf   :  { %v3583_v18 = vsub.f32 %v3487_v8, %v3581_v17  ;;  %v3595_v26 = vsub.f32 %v3577_v3, %v3581_v17  ;;  %v5341_v17 = vpack.c.bf16 %v2673_v10, %v2672_v16 }
0x1fc0   :  { %v3572_v19 = vpop.xlane.xlu1 %3571 }
0x1fc1   :  { %v3585_v20 = vmul.f32 1.442695, %v3583_v18  ;;  %v3582_v21 = vmax.f32 %v3572_v19, %v3580_v6  ;;  %v3597_v28 = vmul.f32 1.442695, %v3595_v26  ;;  %v2674_v18 = vld [vmem:[%s6520_s5 + $0x170] sm:$0xff]  ;;  %5342 = vmatprep.subr.bf16.mxu0 %v5341_v17  ;;  %v2679_v26 = vld [vmem:[%s6521_s6 + $0x78] sm:$0xff] }
0x1fc2   :  { %v2675_v19 = vld [vmem:[%s6520_s5 + $0x1f0] sm:$0xff] }
0x1fc3   :  { %5465 = vpow2.f32 %v3585_v20  ;;  %v3584_v22 = vsub.f32 %v3563_v12, %v3582_v21  ;;  %v3596_v31 = vsub.f32 %v3580_v6, %v3582_v21  ;;  %v5345_v20 = vpack.c.bf16 %v2675_v19, %v2674_v18  ;;  %v2676_v21 = vld [vmem:[%s6521_s6 + $0x18] sm:$0xff] }
0x1fc4   :  { %v3606_v23 = vpop.permute.xlu1 %3605 }
0x1fc5   :  { %v3587_v24 = vmul.f32 1.442695, %v3584_v22  ;;  %5050 = vmatpush3.msra.mxu1 %v3606_v23  ;;  %v3599_v33 = vmul.f32 1.442695, %v3596_v31  ;;  %v2677_v22 = vld [vmem:[%s6521_s6 + $0x38] sm:$0xff] }
0x1fc6   :  { %5334 = vmatprep.subr.bf16.mxu1 %v5333_v40  ;;  %v2678_v23 = vld [vmem:[%s6521_s6 + $0x58] sm:$0xff] }
0x1fc7   :  { %5467 = vpow2.f32 %v3587_v24  ;;  %v5349_v24 = vpack.c.bf16 %v2677_v22, %v2676_v21  ;;  %v2682_v31 = vld [vmem:[%s6521_s6 + $0xd8] sm:$0xff] }
0x1fc8   :  { %5469 = vpow2.f32 %v3597_v28  ;;  %v2680_v28 = vld [vmem:[%s6521_s6 + $0x98] sm:$0xff] }
0x1fc9   :  { %5471 = vpow2.f32 %v3599_v33 }
0x1fcd   :  { %v5466_v27 = vpop.eup %5465 }
0x1fce   :  { %5052 = vmatmul.mubr.msk.f32.vlgmr.msra.gmra.mrb[38].mxu1 %vm406_vm9, %v5466_v27  ;;  %v3589_v29 = vsel %vm406_vm9, %v5466_v27, 0.0  ;;  %v5353_v27 = vpack.c.bf16 %v2679_v26, %v2678_v23 }
0x1fcf   :  { %3590 = vadd.xlane.f32.xlu1 %v3589_v29  ;;  %5336 = vmatpush3.bf16.msra.mxu1 %v5333_v40  ;;  %v2681_v29 = vld [vmem:[%s6521_s6 + $0xb8] sm:$0xff] }
0x1fd0   :  { %5338 = vmatprep.subr.bf16.mxu1 %v5337_v43  ;;  %v2688_v40 = vld [vmem:[%s6521_s6 + $0x198] sm:$0xff] }
0x1fd1   :  { %v5468_v30 = vpop.eup %5467  ;;  %v5373_v42 = vpack.c.bf16 %v2689_v41, %v2688_v40 }
0x1fd2   :  { %5057 = vmatmul.mubr.msk.f32.vlgmr.msra.gmra.mrb[32].mxu0 %vm406_vm9, %v5468_v30  ;;  %v3592_v32 = vsel %vm406_vm9, %v5468_v30, 0.0  ;;  %v5470_v34 = vpop.eup %5469  ;;  %v5357_v30 = vpack.c.bf16 %v2681_v29, %v2680_v28 }
0x1fd3   :  { %3593 = vadd.xlane.f32.xlu0 %v3592_v32  ;;  %v3603_v35 = vmul.f32 %v5470_v34, %v6309_v59  ;;  %v5472_v36 = vpop.eup %5471  ;;  %5340 = vmatpush3.bf16.msra.mxu1 %v5337_v43  ;;  %v2683_v32 = vld [vmem:[%s6521_s6 + $0xf8] sm:$0xff] }
0x1fd4   :  { %v3604_v37 = vmul.f32 %v5472_v36, %v6309_v59  ;;  %5344 = vmatpush3.bf16.msra.mxu0 %v5341_v17  ;;  %5350 = vmatprep.subr.bf16.mxu1 %v5349_v24  ;;  %v5361_v33 = vpack.c.bf16 %v2683_v32, %v2682_v31  ;;  %v4485_v32 = vld [vmem:[%s6522_s7 + $0x25] ss:$0 sm:$0xff] }
0x1fd5   :  { %5346 = vmatprep.subr.bf16.mxu0 %v5345_v20 }
0x1fd8   :  { %5348 = vmatpush3.bf16.msra.mxu0 %v5345_v20 }
0x1fe0   :  { %3609 = vrot.lane.b32.xlu1 %v3603_v35, %s5515_s26  ;;  %v2685_v35 = vld [vmem:[%s6521_s6 + $0x138] sm:$0xff] }
0x1fe9   :  { %3689 = vrot.lane.b32.xlu0 %v3604_v37, %s5515_s26  ;;  %v2686_v37 = vld [vmem:[%s6521_s6 + $0x158] sm:$0xff] }
0x1fea   :  { %v5369_v39 = vpack.c.bf16 %v2687_v38, %v2686_v37 }
0x205c   :  { %v3591_v44 = vpop.xlane.xlu1 %3590 }
0x205d   :  { %v3601_v45 = vadd.f32 %v5470_v34, %v3591_v44  ;;  %v2684_v34 = vld [vmem:[%s6521_s6 + $0x118] sm:$0xff] }
0x205f   :  { %5473 = vrcp.f32 %v3601_v45 }
0x2060   :  { %v3594_v46 = vpop.xlane.xlu0 %3593  ;;  %v3610_v48 = vpop.permute.xlu1 %3609 }
0x2061   :  { %v3602_v47 = vadd.f32 %v5472_v36, %v3594_v46  ;;  %v5365_v36 = vpack.c.bf16 %v2685_v35, %v2684_v34  ;;  %v4486_v35 = vld [vmem:[%s6522_s7 + $0x26] ss:$0 sm:$0xff] }
0x2063   :  { %5475 = vrcp.f32 %v3602_v47 }
0x2064   :  { %v3690_v56 = vpop.permute.xlu0 %3689 }
0x2069   :  { %v5474_v52 = vpop.eup %5473 }
0x206d   :  { %v5476_v61 = vpop.eup %5475 }
0x20a1   :  { %v3681_v49 = vpop.f32.mrb[38].mxu1 }
0x20a2   :  { %v3682_v50 = vadd.f32 %v3681_v49, %v3610_v48  ;;  %v5053_v51 = vpop.f32.mrb[39].mxu1 }
0x20a4   :  { %v3767_v55 = vmul.f32 %v5474_v52, %v3682_v50  ;;  %v4479_v50 = vld [vmem:[%s6522_s7 + $0x21] ss:$0 sm:$0xff] }
0x20a5   :  { %v3761_v59 = vpop.f32.mrb[32].mxu0 }
0x20a6   :  { %v3762_v53 = vadd.f32 %v3761_v59, %v3690_v56  ;;  %v5058_v60 = vpop.f32.mrb[33].mxu0  ;;  %5067 = vmatprep.mubr.msk.f32.mxu1 %vm172_vm7, %v3767_v55  ;;  %v4480_v56 = vld [vmem:[%s6522_s7 + $0x22] ss:$0 sm:$0xff] }
0x20a8   :  { %v3768_v54 = vmul.f32 %v5476_v61, %v3762_v53 }
0x20aa   :  { %5068 = vmatmul.mubr.msk.f32.vlgmr.msra.gmra.mrb[40].mxu1 %vm172_vm7, %v3768_v54  ;;  %v2690_v54 = vld [vmem:[%s6521_s6 + $0x1d8] sm:$0xff] }
0x20ab   :  { %5352 = vmatpush3.bf16.msra.mxu1 %v5349_v24 }
0x20ac   :  { %5354 = vmatprep.subr.bf16.mxu1 %v5353_v27 }
0x20af   :  { %5356 = vmatpush3.bf16.msra.mxu1 %v5353_v27 }
0x20b0   :  { %5358 = vmatprep.subr.bf16.mxu1 %v5357_v30 }
0x20b3   :  { %5360 = vmatpush3.bf16.msra.mxu1 %v5357_v30 }
0x20b4   :  { %5362 = vmatprep.subr.bf16.mxu1 %v5361_v33 }
0x20b7   :  { %5364 = vmatpush3.bf16.msra.mxu1 %v5361_v33 }
0x20b8   :  { %5366 = vmatprep.subr.bf16.mxu1 %v5365_v36 }
0x20bb   :  { %5368 = vmatpush3.bf16.msra.mxu1 %v5365_v36 }
0x20bc   :  { %5370 = vmatprep.subr.bf16.mxu1 %v5369_v39 }
0x20bf   :  { %5372 = vmatpush3.bf16.msra.mxu1 %v5369_v39 }
0x20c0   :  { %5374 = vmatprep.subr.bf16.mxu1 %v5373_v42 }
0x20c3   :  { %5376 = vmatpush3.bf16.msra.mxu1 %v5373_v42 }
0x217d   :  { %v5069_v14 = vpop.f32.mrb[40].mxu1 }
0x217e   :  { %v3851_v13 = vadd.f32 %v5069_v14, %v6298_v58  ;;  %v3841_v63 = vpop.f32.mrb[41].mxu1  ;;  %v2691_v14 = vld [vmem:[%s6521_s6 + $0x1f8] sm:$0xff] }
0x217f   :  { %v3850_v0 = vadd.f32 %v3841_v63, %v6296_v57 }
0x2180   :  { %v3857_v1 = vadd.f32 %v4478_v62, %v3851_v13  ;;  %v4481_v13 = vld [vmem:[%s6522_s7 + $0x23] ss:$0 sm:$0xff] }
0x2181   :  { %v3856_v2 = vadd.f32 %v4478_v62, %v3850_v0  ;;  %v5377_v62 = vpack.c.bf16 %v2691_v14, %v2690_v54 }
0x2182   :  { %v3861_v4 = vsel %vm172_vm7, %v3857_v1, 0.0 }
0x2183   :  { %3862 = vadd.xlane.f32.xlu0 %v3861_v4  ;;  %v3858_v5 = vsel %vm172_vm7, %v3856_v2, 0.0  ;;  %5378 = vmatprep.subr.bf16.mxu1 %v5377_v62 }
0x2184   :  { %3859 = vadd.xlane.f32.xlu1 %v3858_v5  ;;  %5380 = vmatpush3.bf16.msra.mxu1 %v5377_v62 }
0x2210   :  { %v3863_v6 = vpop.xlane.xlu0 %3862 }
0x2211   :  { %v3865_v3 = vmul.f32 0.03125, %v3863_v6  ;;  %v3860_v7 = vpop.xlane.xlu1 %3859 }
0x2212   :  { %v3864_v8 = vmul.f32 0.03125, %v3860_v7 }
0x2213   :  { %v6363_v9 = vsub.f32 %v3857_v1, %v3865_v3  ;;  %v4484_v3 = vld [vmem:[%s6522_s7 + $0x24] ss:$0 sm:$0xff] }
0x2214   :  { %v6365_v11 = vsub.f32 %v3856_v2, %v3864_v8 }
0x2215   :  { %v3869_v58 = vmul.f32 %v6363_v9, %v6363_v9 }
0x2216   :  { %v3868_v57 = vmul.f32 %v6365_v11, %v6365_v11 }
0x2217   :  { %v3873_v12 = vsel %vm172_vm7, %v3869_v58, 0.0 }
0x2218   :  { %3874 = vadd.xlane.f32.xlu0 %v3873_v12  ;;  %v3870_v15 = vsel %vm172_vm7, %v3868_v57, 0.0 }
0x2219   :  { %3871 = vadd.xlane.f32.xlu1 %v3870_v15 }
0x22a5   :  { %v3875_v43 = vpop.xlane.xlu0 %3874 }
0x22a6   :  { %v3877_v44 = vmul.f32 0.03125, %v3875_v43  ;;  %v3872_v45 = vpop.xlane.xlu1 %3871 }
0x22a7   :  { %v3876_v46 = vmul.f32 0.03125, %v3872_v45 }
0x22a8   :  { %v3879_v47 = vadd.f32 1e-05, %v3877_v44 }
0x22a9   :  { %v3878_v48 = vadd.f32 1e-05, %v3876_v46 }
0x22aa   :  { %5477 = vrsqrt.f32 %v3879_v47 }
0x22ab   :  { %5479 = vrsqrt.f32 %v3878_v48 }
0x22b4   :  { %v5478_v49 = vpop.eup %5477 }
0x22b5   :  { %v5480_v51 = vpop.eup %5479  ;;  %v3883_v52 = vmul.f32 %v5478_v49, %v6363_v9 }
0x22b6   :  { %v3882_v55 = vmul.f32 %v5480_v51, %v6365_v11 }
0x22b7   :  { %v3889_v59 = vmul.f32 %v4479_v50, %v3883_v52 }
0x22b8   :  { %v3888_v53 = vmul.f32 %v4479_v50, %v3882_v55  ;;  %v4144_v55 = vld [vmem:[%s6520_s5 + $0x78] sm:$0xff] }
0x22b9   :  { %v3895_v61 = vadd.f32 %v4480_v56, %v3889_v59 }
0x22ba   :  { %v3894_v60 = vadd.f32 %v4480_v56, %v3888_v53  ;;  %v4145_v56 = vld [vmem:[%s6520_s5 + $0xf8] sm:$0xff] }
0x22bb   :  { %v5381_v59 = vpack.c.bf16 %v4145_v56, %v4144_v55  ;;  %v4146_v53 = vld [vmem:[%s6520_s5 + $0x178] sm:$0xff] }
0x22bc   :  { %5078 = vmatprep.mubr.msk.f32.mxu0 %vm172_vm7, %v3894_v60 }
0x22bd   :  { %5079 = vmatmul.mubr.msk.f32.vlgmr.msra.gmra.mrb[34].mxu0 %vm172_vm7, %v3895_v61  ;;  %5382 = vmatprep.subr.bf16.mxu0 %v5381_v59 }
0x22be   :  { %5384 = vmatpush3.bf16.msra.mxu0 %v5381_v59 }
0x2390   :  { %v5080_v63 = vpop.f32.mrb[34].mxu0 }
0x2391   :  { %v3978_v0 = vadd.f32 %v5080_v63, %v4481_v13  ;;  %v3972_v1 = vpop.f32.mrb[35].mxu0 }
0x2392   :  { %v3973_v2 = vadd.f32 %v4481_v13, %v3972_v1 }
0x2393   :  { %v3982_v5 = vmax.f32 %v3978_v0, 0.0 }
0x2394   :  { %v3981_v4 = vmax.f32 %v3973_v2, 0.0  ;;  %v4487_v2 = vld [vmem:[%s6522_s7 + $0x27] ss:$0 sm:$0xff] }
0x2396   :  { %5113 = vmatprep.mubr.f32.mxu1 %v3981_v4 }
0x2397   :  { %5114 = vmatmul.mubr.f32.vlgmr.msra.gmra.mrb[42].mxu1 %v3982_v5 }
0x246a   :  { %v5115_v6 = vpop.f32.mrb[42].mxu1 }
0x246b   :  { %v4059_v7 = vadd.f32 %v5115_v6, %v3895_v61  ;;  %v4049_v8 = vpop.f32.mrb[43].mxu1 }
0x246c   :  { %v4058_v9 = vadd.f32 %v4049_v8, %v3894_v60  ;;  %v4147_v60 = vld [vmem:[%s6520_s5 + $0x1f8] sm:$0xff] }
0x246d   :  { %v4065_v11 = vadd.f32 %v4484_v3, %v4059_v7  ;;  %v5385_v61 = vpack.c.bf16 %v4147_v60, %v4146_v53 }
0x246e   :  { %v4064_v58 = vadd.f32 %v4484_v3, %v4058_v9  ;;  %v4488_v3 = vld [vmem:[%s6522_s7 + $0x28] ss:$0 sm:$0xff] }
0x246f   :  { %v4069_v57 = vsel %vm172_vm7, %v4065_v11, 0.0  ;;  %5386 = vmatprep.subr.bf16.mxu0 %v5385_v61 }
0x2470   :  { %4070 = vadd.xlane.f32.xlu0 %v4069_v57  ;;  %v4066_v12 = vsel %vm172_vm7, %v4064_v58, 0.0  ;;  %5388 = vmatpush3.bf16.msra.mxu0 %v5385_v61 }
0x2471   :  { %4067 = vadd.xlane.f32.xlu1 %v4066_v12 }
0x24fd   :  { %v4071_v15 = vpop.xlane.xlu0 %4070 }
0x24fe   :  { %v4073_v16 = vmul.f32 0.03125, %v4071_v15  ;;  %v4068_v10 = vpop.xlane.xlu1 %4067  ;;  %v4489_v15 = vld [vmem:[%s6522_s7 + $0x29] ss:$0 sm:$0xff]  ;;  %s5520_s7 = smov [#allocation2]  }
0x24ff   :  { %v4072_v17 = vmul.f32 0.03125, %v4068_v10  ;;  %s4372_s22 = sshll.u32 %s5520_s7, 4  ;;  %s4373_s22 = int_to_ptr.vmem [resolvable:$true] %s4372_s22 }
0x2500   :  { %v4075_v18 = vsub.f32 %v4065_v11, %v4073_v16  ;;  %s5489_s23 = scalar_lea.vmem %s4373_s22, 256  ;;  %p5494_p1 = scmp.lt.s32.totalorder %s4373_s22, %s4373_s22 }
0x2501   :  { %v4074_v19 = vsub.f32 %v4064_v58, %v4072_v17  ;;  %v5519_v58 = vmov 1966171168   ;;  %p5490_p0 = scmp.ne.s32.totalorder %s4373_s22, %s5489_s23  ;;  %p5495_p2 = scmp.lt.s32.totalorder %s5489_s23, %s5489_s23 }
0x2502   :  { %v4077_v20 = vmul.f32 %v4075_v18, %v4075_v18  ;;  %v4237_v57 = vunpack.c.l.s4 %v5519_v58 }
0x2503   :  { %v4076_v21 = vmul.f32 %v4074_v19, %v4074_v19  ;;  %p5496_p3 = por %p5495_p2, %p5494_p1 }
0x2504   :  { %v4081_v22 = vsel %vm172_vm7, %v4077_v20, 0.0  ;;  %v4238_v12 = vunpack.c.0.s8 %v4237_v57 }
0x2505   :  { %4082 = vadd.xlane.f32.xlu0 %v4081_v22  ;;  %v4078_v23 = vsel %vm172_vm7, %v4076_v21, 0.0  ;;  %p5497_p4 = pnand %p5496_p3, %p5490_p0 }
0x2506   :  { %4079 = vadd.xlane.f32.xlu1 %v4078_v23  ;;  %v4241_v16 = vsub.s32 %v4238_v12, %v6190_v25 }
0x2592   :  { %v4083_v24 = vpop.xlane.xlu0 %4082 }
0x2593   :  { %v4085_v26 = vmul.f32 0.03125, %v4083_v24  ;;  %v4080_v27 = vpop.xlane.xlu1 %4079 }
0x2594   :  { %v4084_v28 = vmul.f32 0.03125, %v4080_v27 }
0x2595   :  { %v4087_v29 = vadd.f32 1e-05, %v4085_v26 }
0x2596   :  { %v4086_v30 = vadd.f32 1e-05, %v4084_v28 }
0x2597   :  { %5481 = vrsqrt.f32 %v4087_v29 }
0x2598   :  { %5483 = vrsqrt.f32 %v4086_v30 }
0x25a1   :  { %v5482_v31 = vpop.eup %5481 }
0x25a2   :  { %v5484_v33 = vpop.eup %5483  ;;  %v4091_v34 = vmul.f32 %v5482_v31, %v4075_v18 }
0x25a3   :  { %v4090_v36 = vmul.f32 %v5484_v33, %v4074_v19 }
0x25a4   :  { %v4097_v37 = vmul.f32 %v4485_v32, %v4091_v34 }
0x25a5   :  { %v4096_v38 = vmul.f32 %v4485_v32, %v4090_v36 }
0x25a6   :  { %v4103_v39 = vadd.f32 %v4486_v35, %v4097_v37 }
0x25a7   :  { %v4102_v40 = vadd.f32 %v4486_v35, %v4096_v38 }
0x25a8   :  { %v4109_v41 = vsel %vm172_vm7, %v4103_v39, 0.0 }
0x25a9   :  { %4110 = vadd.xlane.f32.xlu0 %v4109_v41  ;;  %v4106_v42 = vsel %vm172_vm7, %v4102_v40, 0.0 }
0x25aa   :  { %4107 = vadd.xlane.f32.xlu1 %v4106_v42 }
0x2636   :  { %v4111_v43 = vpop.xlane.xlu0 %4110 }
0x2637   :  { %v4113_v44 = vmul.f32 0.03125, %v4111_v43  ;;  %v4108_v45 = vpop.xlane.xlu1 %4107 }
0x2638   :  { %v4112_v46 = vmul.f32 0.03125, %v4108_v45 }
0x2639   :  { %v4115_v47 = vsub.f32 %v4103_v39, %v4113_v44 }
0x263a   :  { %v4114_v48 = vsub.f32 %v4102_v40, %v4112_v46 }
0x263b   :  { %v4117_v49 = vmul.f32 %v4115_v47, %v4115_v47 }
0x263c   :  { %v4116_v50 = vmul.f32 %v4114_v48, %v4114_v48 }
0x263d   :  { %v4121_v51 = vsel %vm172_vm7, %v4117_v49, 0.0 }
0x263e   :  { %4122 = vadd.xlane.f32.xlu0 %v4121_v51  ;;  %v4118_v52 = vsel %vm172_vm7, %v4116_v50, 0.0 }
0x263f   :  { %4119 = vadd.xlane.f32.xlu1 %v4118_v52 }
0x26cb   :  { %v4123_v54 = vpop.xlane.xlu0 %4122 }
0x26cc   :  { %v4125_v14 = vmul.f32 0.03125, %v4123_v54  ;;  %v4120_v62 = vpop.xlane.xlu1 %4119 }
0x26cd   :  { %v4124_v13 = vmul.f32 0.03125, %v4120_v62 }
0x26ce   :  { %v4127_v63 = vadd.f32 1e-05, %v4125_v14 }
0x26cf   :  { %v4126_v0 = vadd.f32 1e-05, %v4124_v13 }
0x26d0   :  { %5485 = vrsqrt.f32 %v4127_v63 }
0x26d1   :  { %5487 = vrsqrt.f32 %v4126_v0 }
0x26da   :  { %v5486_v1 = vpop.eup %5485 }
0x26db   :  { %v5488_v4 = vpop.eup %5487  ;;  %v4131_v5 = vmul.f32 %v5486_v1, %v4115_v47 }
0x26dc   :  { %v4130_v6 = vmul.f32 %v5488_v4, %v4114_v48 }
0x26dd   :  { %v4137_v7 = vmul.f32 %v4487_v2, %v4131_v5 }
0x26de   :  { %v4136_v8 = vmul.f32 %v4487_v2, %v4130_v6 }
0x26df   :  { %v4143_v11 = vadd.f32 %v4488_v3, %v4137_v7 }
0x26e0   :  { %v4142_v9 = vadd.f32 %v4488_v3, %v4136_v8 }
0x26e2   :  { %5124 = vmatprep.mubr.msk.f32.mxu0 %vm172_vm7, %v4142_v9 }
0x26e3   :  { %5125 = vmatmul.mubr.msk.f32.vlgmr.msra.gmra.mrb[36].mxu0 %vm172_vm7, %v4143_v11 }
0x27b6   :  { %v5126_v10 = vpop.f32.mrb[36].mxu0 }
0x27b7   :  { %v4231_v17 = vadd.f32 %v5126_v10, %v4489_v15  ;;  %v4225_v18 = vpop.f32.mrb[37].mxu0 }
0x27b8   :  { %v4226_v19 = vadd.f32 %v4489_v15, %v4225_v18 }
0x27b9   :  { %v4302_v20 = vcombine.high %v4231_v17, %v4231_v17  ;;  %v4309_v21 = vrot.slane %v4231_v17, %v4241_v16 }
0x27ba   :  { %v4235_v22 = vcombine.high %v4226_v19, %v4226_v19  ;;  %v4242_v23 = vrot.slane %v4226_v19, %v4241_v16 }
0x27bb   :  { %v4316_v24 = vrot.slane %v4302_v20, %v4241_v16  ;;  %v4317_v26 = vcombine.high %v4309_v21, %v4309_v21  ;;  %v4325_v27 = vrot.slane %v4309_v21, %v4241_v16 }
0x27bc   :  { %v4249_v28 = vrot.slane %v4235_v22, %v4241_v16  ;;  %v4250_v29 = vcombine.high %v4242_v23, %v4242_v23  ;;  %v4258_v30 = vrot.slane %v4242_v23, %v4241_v16 }
0x27bd   :  { %v4318_v31 = vcombine.high %v4316_v24, %v4316_v24  ;;  %v4332_v32 = vrot.slane %v4316_v24, %v4241_v16  ;;  %v4339_v33 = vrot.slane %v4317_v26, %v4241_v16  ;;  %v4347_v34 = vcombine.high %v4325_v27, %v4325_v27  ;;  %4359 = vst.msk [vmem:[#allocation2 + $0x1] sm:$0x1] %vm4292_vm3, %v4325_v27 }
0x27be   :  { %v4251_v25 = vcombine.high %v4249_v28, %v4249_v28  ;;  %v4265_v35 = vrot.slane %v4249_v28, %v4241_v16  ;;  %v4272_v36 = vrot.slane %v4250_v29, %v4241_v16  ;;  %v4280_v37 = vcombine.high %v4258_v30, %v4258_v30  ;;  %4293 = vst.msk [vmem:[#allocation2] sm:$0x1] %vm4292_vm3, %v4258_v30 }
0x27bf   :  { %v4346_v38 = vrot.slane %v4318_v31, %v4241_v16  ;;  %v4348_v39 = vcombine.high %v4332_v32, %v4332_v32  ;;  %v4349_v40 = vcombine.high %v4339_v33, %v4339_v33  ;;  %4360 = vst.msk [vmem:[#allocation2 + $0x3] sm:$0x1] %vm4292_vm3, %v4339_v33  ;;  %4361 = vst.msk [vmem:[#allocation2 + $0x5] sm:$0x1] %vm4292_vm3, %v4347_v34 }
0x27c0   :  { %4363 = vst.msk [vmem:[#allocation2 + $0x9] sm:$0x1] %vm4292_vm3, %v4332_v32  ;;  %v4279_v41 = vrot.slane %v4251_v25, %v4241_v16  ;;  %v4281_v42 = vcombine.high %v4265_v35, %v4265_v35  ;;  %v4282_v43 = vcombine.high %v4272_v36, %v4272_v36  ;;  %4294 = vst.msk [vmem:[#allocation2 + $0x2] sm:$0x1] %vm4292_vm3, %v4272_v36 }
0x27c1   :  { %4295 = vst.msk [vmem:[#allocation2 + $0x4] sm:$0x1] %vm4292_vm3, %v4280_v37  ;;  %4297 = vst.msk [vmem:[#allocation2 + $0x8] sm:$0x1] %vm4292_vm3, %v4265_v35  ;;  %v4350_v44 = vcombine.high %v4346_v38, %v4346_v38 }
0x27c2   :  { %4362 = vst.msk [vmem:[#allocation2 + $0x7] sm:$0x1] %vm4292_vm3, %v4349_v40  ;;  %4364 = vst.msk [vmem:[#allocation2 + $0xb] sm:$0x1] %vm4292_vm3, %v4346_v38  ;;  %v4283_v45 = vcombine.high %v4279_v41, %v4279_v41 }
0x27c3   :  { %4365 = vst.msk [vmem:[#allocation2 + $0xd] sm:$0x1] %vm4292_vm3, %v4348_v39  ;;  %4296 = vst.msk [vmem:[#allocation2 + $0x6] sm:$0x1] %vm4292_vm3, %v4282_v43 }
0x27c4   :  { %4298 = vst.msk [vmem:[#allocation2 + $0xa] sm:$0x1] %vm4292_vm3, %v4279_v41  ;;  %4299 = vst.msk [vmem:[#allocation2 + $0xc] sm:$0x1] %vm4292_vm3, %v4281_v42 }
0x27c5   :  { %4366 = vst.msk [vmem:[#allocation2 + $0xf] sm:$0x1] %vm4292_vm3, %v4350_v44  ;;  %4300 = vst.msk [vmem:[#allocation2 + $0xe] sm:$0x1] %vm4292_vm3, %v4283_v45 }
0x27c6   :  { %5500 = shalt.err (!%p5497_p4)
}
0x27c7   :  { %s5501_s2 = scalar_lea.hbm %s6523_s8, 256 }
0x27c8   :  { %p5502_p5 = scmp.ne.s32.totalorder %s6523_s8, %s5501_s2  ;;  %p5505_p6 = scmp.lt.u32.totalorder %s5501_s2, %s6523_s8 }
0x27ca   :  { %p5507_p7 = pnand %p5505_p6, %p5502_p5 }
0x27cc   :  { %5510 = shalt.err (!%p5507_p7)
}
0x27cd   :  { %s5521_s3 = smov 32   ;;  %s5522_s9 = smov 2  }
0x27ce   :  { %4378 = dma.vmem_to_hbm [thread:$0]  %s4373_s22, 256, %s6523_s8, [#allocation3], %s5521_s3, %s5521_s3, %s5522_s9  }
0x27cf   :  { %5511 = dma.done.wait [#allocation3], 256  }
0x27d0   :  { %5512 = vsyncadd [#allocation3], 4294967040 }
0x27d1   :  { %4382 = vsyncpa [#allocation3], 1 }

</bundles_post_ra>
